<compile_context>
chip_gen: v5e
topology: v5e:2x2
jax: 0.10.0
libtpu: 0.0.40
codegen_flags: <defaults>
</compile_context>

<pallas_src>
import functools
import numpy as np
import jax
import jax.numpy as jnp
from jax import lax
from jax.experimental import pallas as pl
from jax.experimental.pallas import tpu as pltpu

NEG_SLOPE = 0.01          # F.leaky_relu default
F32 = jnp.float32

_VMEM = pl.BlockSpec(memory_space=pltpu.MemorySpace.VMEM)


def _leaky(x):
    return jnp.where(x >= 0, x, NEG_SLOPE * x)


def _dot(a, b):
    return jnp.dot(a, b, preferred_element_type=F32)


def _dot_t(a, b):
    # a @ b^T (contract last dim of both)
    return lax.dot_general(a, b, (((1,), (1,)), ((), ())), preferred_element_type=F32)


# -----------------------------------------------------------------------------
# In-kernel EdgeNodeFusion block (traced per call-site shape, all f32)
# -----------------------------------------------------------------------------
def _fusion_block(edge_in, node_parts, dgw, dgb, gw_parts, gb, cw, cb,
                  psrcT, pdstT, tri_i, tri_j):
    """One EdgeNodeFusion layer entirely in vregs/VMEM (dropout p=0 == identity)."""
    # (1) edge MLP: leaky(dg(edge_attr))
    ea = _leaky(_dot(edge_in, dgw) + dgb)                        # [P, Fe]
    fe = ea.shape[1]

    # (2) per-edge scalar weight = feature mean, produced lane-dense as [1, P]
    w_row = _dot_t(jnp.full((1, fe), 1.0 / fe, F32), ea)         # [1, P]

    # (3) dense symmetric adjacency with self loops:
    #     A = I + Pdst^T diag(w) Psrc + Psrc^T diag(w) Pdst  (symmetric by build)
    b1 = _dot_t(pdstT * w_row, psrcT)                            # [N, N]
    b2 = _dot_t(psrcT * w_row, pdstT)                            # [N, N]
    n = b1.shape[0]
    eye = (lax.broadcasted_iota(jnp.int32, (n, n), 0)
           == lax.broadcasted_iota(jnp.int32, (n, n), 1)).astype(F32)
    a = b1 + b2 + eye
    deg = jnp.sum(a, axis=1, keepdims=True)                      # [N, 1] lane reduce
    dinv = jnp.where(deg > 0, lax.rsqrt(deg), 0.0)               # [N, 1]

    # (4) GCN: x = leaky(D^-1/2 A D^-1/2 (node @ W) + b).  The [node, weather]
    #     concat is a split-weight sum; the symmetric normalization is folded into
    #     two row scalings around the A @ h matmul (no [1,N] transpose, no extra MXU op).
    h = _dot(node_parts[0], gw_parts[0])
    for part, w in zip(node_parts[1:], gw_parts[1:]):
        h = h + _dot(part, w)
    x = _leaky(dinv * _dot(a, dinv * h) + gb)                    # [N, Fh]

    # (5) sigmoid(X X^T) + strict upper triangle in row-major (masked_select) order
    s = jax.nn.sigmoid(_dot_t(x, x))                             # [N, N]
    ew = jnp.sum(_dot(tri_i, s) * tri_j, axis=1, keepdims=True)  # [P, 1]

    # (6) cat_ln gate (in_features=1 -> VPU broadcast) + residual
    gate = ew * cw + cb                                          # [P, Fe]
    return gate * ea + ea, x


# -----------------------------------------------------------------------------
# Whole-forward fused kernel (closure over input names + layer counts)
# -----------------------------------------------------------------------------
def _make_wimn_kernel(names, n_enc, n_dec):
    names = tuple(names)

    def kernel(*refs):
        ins = dict(zip(names, refs[:len(names)]))
        out_ref = refs[len(names)]
        g = lambda k: ins[k][...]

        # ---------------- Encoder (note the literal swap from the reference) ----
        edge_f = g('edge_feat0')          # := node_input_x
        node_f = g('node_feat0')          # := edge_attr_unique
        for i in range(n_enc):
            edge_f, node_f = _fusion_block(
                edge_f, [node_f],
                g(f'enc_dgw{i}'), g(f'enc_dgb{i}'),
                [g(f'enc_gw{i}')], g(f'enc_gb{i}'),
                g(f'enc_cw{i}'), g(f'enc_cb{i}'),
                g('psrcT_enc'), g('pdstT_enc'),
                g('tri_i_ne'), g('tri_j_ne'))
        edge_hidden, node_hidden = edge_f, node_f

        # ---------------- Decoder: top sub-graph path (fixed weights [0]) -------
        top_nodes = _dot(g('sel_top_nodes'), node_hidden)        # node[hub_indices[1]]
        sel_edge_top = _dot(g('sel_top_edges'), edge_hidden)     # edge_mask[1] row select
        top_edge = sel_edge_top
        for _ in range(n_dec):
            top_edge, _ = _fusion_block(
                sel_edge_top, [top_nodes, g('top_weather_x')],
                g('top_dgw'), g('top_dgb'),
                [g('top_gwn'), g('top_gww')], g('top_gb'),
                g('top_cw'), g('top_cb'),
                g('psrcT_top'), g('pdstT_top'),
                g('tri_i_nh'), g('tri_j_nh'))
        top_unpooled = _dot(g('scat_unpool'), top_edge)          # edge_unpool (hub mask)

        # ---------------- Decoder: hub sub-graph path (fixed weights [1]) -------
        hub_nodes = _dot(g('sel_hub_nodes'), node_hidden)
        sel_edge_hub = _dot(g('sel_hub_edges'), edge_hidden)
        hub_edge = sel_edge_hub
        for _ in range(n_dec):
            hub_edge, _ = _fusion_block(
                sel_edge_hub, [hub_nodes, g('hub_weather_x')],
                g('hub_dgw'), g('hub_dgb'),
                [g('hub_gwn'), g('hub_gww')], g('hub_gb'),
                g('hub_cw'), g('hub_cb'),
                g('psrcT_hub'), g('pdstT_hub'),
                g('tri_i_nh'), g('tri_j_nh'))
        hub_unpooled = _dot(g('scat_unpool'), hub_edge)

        # ---------------- Decoder: full-graph path (fixed weights [-1]) ---------
        edge_f = edge_hidden
        for _ in range(n_dec):   # node_attr x is NOT recomputed inside the loop
            edge_f, _ = _fusion_block(
                edge_f, [node_hidden, g('weather_x')],
                g('full_dgw'), g('full_dgb'),
                [g('full_gwn'), g('full_gww')], g('full_gb'),
                g('full_cw'), g('full_cb'),
                g('psrcT_dec'), g('pdstT_dec'),
                g('tri_i_ne'), g('tri_j_ne'))
        full_edge = edge_f

        # ---------------- Final linear over the three blocks, lane-dense (1,Np) -
        out_ref[...] = (_dot_t(g('fin_w1'), top_unpooled)
                        + _dot_t(g('fin_w2'), hub_unpooled)
                        + _dot_t(g('fin_w3'), full_edge)
                        + g('fin_b'))
    return kernel


# -----------------------------------------------------------------------------
# Trace-time graph constants (host numpy -> dense one-hot / scatter matrices)
# -----------------------------------------------------------------------------
def _build_adj_scatter(edge_index, adjacency_indices, num_edge_rows, n_nodes):
    """PsrcT/PdstT [N, P]: A_unnorm = I + PdstT diag(w) PsrcT^T + PsrcT diag(w) PdstT^T
       with w[p] = feature-mean of edge row p (nonzero only at adjacency-selected rows)."""
    ei = np.asarray(edge_index)
    src, dst = ei[0], ei[1]
    adj_sel = np.nonzero(np.asarray(adjacency_indices))[0]
    assert adj_sel.shape[0] == src.shape[0], "mask count must match edge_index columns"
    psrc_t = np.zeros((n_nodes, num_edge_rows), np.float32)
    pdst_t = np.zeros((n_nodes, num_edge_rows), np.float32)
    for e in range(src.shape[0]):
        p = int(adj_sel[e])
        # TODO(synk): PyG to_undirected coalesces duplicate (src,dst) pairs; we
        #             accumulate, which only differs if edge_index has repeats.
        psrc_t[int(src[e]), p] += 1.0
        pdst_t[int(dst[e]), p] += 1.0
    return psrc_t, pdst_t


@functools.lru_cache(maxsize=None)
def _build_triu_select(n_nodes):
    """Row-major strict-upper-triangle selection (torch.masked_select order):
       ew[k] = S[i_k, j_k]  via  sum((Ei @ S) * Ej, axis=1)."""
    rows, cols = np.triu_indices(n_nodes, k=1)
    p = rows.shape[0]
    ei_m = np.zeros((p, n_nodes), np.float32)
    ej_m = np.zeros((p, n_nodes), np.float32)
    ei_m[np.arange(p), rows] = 1.0
    ej_m[np.arange(p), cols] = 1.0
    return ei_m, ej_m


def _onehot_rows(indices, n_cols):
    idx = np.asarray(indices)
    m = np.zeros((idx.shape[0], n_cols), np.float32)
    m[np.arange(idx.shape[0]), idx] = 1.0
    return m


def _mask_select(mask, n_total):
    sel = np.nonzero(np.asarray(mask))[0]
    m = np.zeros((sel.shape[0], n_total), np.float32)
    m[np.arange(sel.shape[0]), sel] = 1.0
    return m


# -----------------------------------------------------------------------------
# WIMN forward: one fused pallas_call
# -----------------------------------------------------------------------------
def wimn_forward(p, edge_index, interaction_index, edge_attr_unique, node_input_x,
                 weather_inputs_x, adjacency_index, hub_indices_list,
                 interaction_indices_lists, adjacency_indices_lists, hub_top_edge_mask):
    del edge_index  # unused in the reference (Encoder calls fusion with interaction_index)
    weather_x, hub_weather_x, top_weather_x = weather_inputs_x
    adjacency_index_full, hub_adjacency_index, top_adjacency_index = adjacency_index
    hub_edge_mask, top_edge_mask = hub_top_edge_mask

    ne = edge_attr_unique.shape[0]          # GCN node count (encoder / full decoder graph)
    np_rows = node_input_x.shape[0]         # pairwise edge-row count for the N=ne graphs
    nh = hub_weather_x.shape[0]             # hub / top sub-graph node count
    ph = nh * (nh - 1) // 2
    fw = weather_x.shape[1]
    fe = p['dg_enc'][-1][0].shape[1]        # edge hidden dim

    assert np_rows == ne * (ne - 1) // 2, "edge rows must equal N*(N-1)/2 node pairs"
    assert int(np.count_nonzero(np.asarray(top_edge_mask))) == ph
    assert int(np.count_nonzero(np.asarray(hub_edge_mask))) == ph

    # ---- static graph constants, built once per forward ----
    psrcT_enc, pdstT_enc = _build_adj_scatter(interaction_index,
                                              interaction_indices_lists[0], np_rows, ne)
    psrcT_dec, pdstT_dec = _build_adj_scatter(adjacency_index_full,
                                              adjacency_indices_lists[0], np_rows, ne)
    psrcT_top, pdstT_top = _build_adj_scatter(top_adjacency_index,
                                              adjacency_indices_lists[-1], ph, nh)
    psrcT_hub, pdstT_hub = _build_adj_scatter(hub_adjacency_index,
                                              adjacency_indices_lists[1], ph, nh)
    tri_i_ne, tri_j_ne = _build_triu_select(ne)
    tri_i_nh, tri_j_nh = _build_triu_select(nh)
    sel_hub_edges = _mask_select(hub_edge_mask, np_rows)         # [Ph, Np]

    inputs = {}

    def add(name, arr):
        inputs[name] = jnp.asarray(arr, jnp.float32)

    # data
    add('edge_feat0', node_input_x)          # swap, as in the reference
    add('node_feat0', edge_attr_unique)
    add('weather_x', weather_x)
    add('hub_weather_x', hub_weather_x)
    add('top_weather_x', top_weather_x)

    # encoder weights
    n_enc = len(p['gcn_enc'])
    for i in range(n_enc):
        dw, db = p['dg_enc'][i]
        gw, gb = p['gcn_enc'][i]
        cw, cb = p['cat_enc'][i]
        add(f'enc_dgw{i}', dw); add(f'enc_dgb{i}', db.reshape(1, -1))
        add(f'enc_gw{i}', gw);  add(f'enc_gb{i}', gb.reshape(1, -1))
        add(f'enc_cw{i}', cw);  add(f'enc_cb{i}', cb.reshape(1, -1))

    # decoder weights (only the fixed indices [0]/[1]/[-1] are ever used, as in
    # the reference); gcn weights split into node / weather parts (replaces concat)
    for tag, suffix, idx in (('top', '_top', 0), ('hub', '_hub', 1), ('full', '', -1)):
        dw, db = p['dg_dec' + suffix][idx]
        gw, gb = p['gcn_dec' + suffix][idx]
        cw, cb = p['cat_dec' + suffix][idx]
        node_part = gw.shape[0] - fw
        add(f'{tag}_dgw', dw); add(f'{tag}_dgb', db.reshape(1, -1))
        add(f'{tag}_gwn', gw[:node_part]); add(f'{tag}_gww', gw[node_part:])
        add(f'{tag}_gb', gb.reshape(1, -1))
        add(f'{tag}_cw', cw); add(f'{tag}_cb', cb.reshape(1, -1))

    # final linear, split so the kernel never materializes the 3*Fe concat
    W, b = p['final_linear']
    add('fin_w1', W[0:fe].T); add('fin_w2', W[fe:2 * fe].T); add('fin_w3', W[2 * fe:3 * fe].T)
    add('fin_b', b.reshape(1, 1))

    # graph constants
    add('psrcT_enc', psrcT_enc); add('pdstT_enc', pdstT_enc)
    add('psrcT_dec', psrcT_dec); add('pdstT_dec', pdstT_dec)
    add('psrcT_top', psrcT_top); add('pdstT_top', pdstT_top)
    add('psrcT_hub', psrcT_hub); add('pdstT_hub', pdstT_hub)
    add('tri_i_ne', tri_i_ne); add('tri_j_ne', tri_j_ne)
    add('tri_i_nh', tri_i_nh); add('tri_j_nh', tri_j_nh)
    add('sel_top_nodes', _onehot_rows(hub_indices_list[1], ne))
    add('sel_hub_nodes', _onehot_rows(hub_indices_list[0], ne))
    add('sel_top_edges', _mask_select(top_edge_mask, np_rows))
    add('sel_hub_edges', sel_hub_edges)
    add('scat_unpool', sel_hub_edges.T)      # edge_unpool scatter (hub mask, as in ref)

    names = tuple(inputs.keys())
    n_dec = len(p['gcn_dec'])
    kernel = _make_wimn_kernel(names, n_enc, n_dec)

    out = pl.pallas_call(
        kernel,
        out_shape=jax.ShapeDtypeStruct((1, np_rows), jnp.float32),
        in_specs=[_VMEM] * len(names),
        out_specs=_VMEM,
    )(*inputs.values())
    return out.reshape(-1)   # == final_linear(concat(...)).squeeze()


# -----------------------------------------------------------------------------
# Deterministic parameter init (shapes from WIMN.__init__)
# -----------------------------------------------------------------------------
def _linear_init(key, fan_in, fan_out):
    k1, k2 = jax.random.split(key)
    bound = 1.0 / np.sqrt(fan_in)
    W = jax.random.uniform(k1, (fan_in, fan_out), jnp.float32, -bound, bound)
    b = jax.random.uniform(k2, (fan_out,), jnp.float32, -bound, bound)
    return W, b


def init_params(key, node_input_dim, weather_input_dim, node_hidden_dims,
                edge_input_dim, edge_hidden_dims):
    keys = iter(jax.random.split(key, 64))

    def lin(i, o):
        return _linear_init(next(keys), i, o)

    p = {}
    # Encoder
    p["dg_enc"] = [lin(edge_input_dim if i == 0 else edge_hidden_dims[i - 1],
                       edge_hidden_dims[i]) for i in range(len(edge_hidden_dims))]
    p["gcn_enc"] = [lin(node_input_dim if i == 0 else node_hidden_dims[i - 1],
                        node_hidden_dims[i]) for i in range(len(node_hidden_dims))]
    p["cat_enc"] = [lin(1, edge_hidden_dims[i]) for i in range(len(node_hidden_dims))]
    # Decoder (WIMN wiring: node_in = node_hidden[-1], edge_in = edge_hidden[-1],
    #          node_hidden = edge_hidden)
    d_node_in, d_edge_in = node_hidden_dims[-1], edge_hidden_dims[-1]
    d_node_hid, d_edge_hid = edge_hidden_dims, edge_hidden_dims
    for tag in ("_top", "_hub", ""):
        p["dg_dec" + tag] = [lin(d_edge_in if i == 0 else d_edge_hid[i - 1],
                                 d_edge_hid[i]) for i in range(len(d_edge_hid))]
        p["gcn_dec" + tag] = [lin((d_node_in if i == 0 else d_node_hid[i - 1])
                                  + weather_input_dim, d_node_hid[i])
                              for i in range(len(d_node_hid))]
        p["cat_dec" + tag] = [lin(1, d_edge_hid[i]) for i in range(len(d_node_hid))]
    p["final_linear"] = lin(edge_hidden_dims[-1] * 3, 1)
    return p


# -----------------------------------------------------------------------------
# Example run
# -----------------------------------------------------------------------------
if __name__ == "__main__":
    key = jax.random.PRNGKey(0)
    node_input_dim, weather_input_dim, edge_input_dim = 16, 8, 24
    node_hidden_dims = [32, 32]
    edge_hidden_dims = [32, 32]

    Ne = 8                       # rows of edge_attr_unique (GCN node count)
    Np = Ne * (Ne - 1) // 2      # 28 = rows of node_input_x / pairwise edge count
    Nh = 4                       # hub / top subgraph size
    Ph = Nh * (Nh - 1) // 2      # 6

    ks = iter(jax.random.split(key, 16))
    params = init_params(next(ks), node_input_dim, weather_input_dim,
                         node_hidden_dims, edge_input_dim, edge_hidden_dims)

    node_input_x = jax.random.normal(next(ks), (Np, edge_input_dim), jnp.float32)
    edge_attr_unique = jax.random.normal(next(ks), (Ne, node_input_dim), jnp.float32)
    weather_x = jax.random.normal(next(ks), (Ne, weather_input_dim), jnp.float32)
    hub_weather_x = jax.random.normal(next(ks), (Nh, weather_input_dim), jnp.float32)
    top_weather_x = jax.random.normal(next(ks), (Nh, weather_input_dim), jnp.float32)

    rng = np.random.default_rng(0)

    def rand_edges(n_nodes, m):
        pairs = [(i, j) for i in range(n_nodes) for j in range(n_nodes) if i != j]
        sel = rng.choice(len(pairs), size=m, replace=False)
        return jnp.asarray(np.array([pairs[k] for k in sel], dtype=np.int32).T)

    def rand_mask(length, n_true):
        m = np.zeros(length, dtype=bool)
        m[rng.choice(length, size=n_true, replace=False)] = True
        return m

    M_int, M_adj, M_hub, M_top = 10, 12, 3, 4
    interaction_index = rand_edges(Ne, M_int)
    adjacency_index_full = rand_edges(Ne, M_adj)
    hub_adjacency_index = rand_edges(Nh, M_hub)
    top_adjacency_index = rand_edges(Nh, M_top)

    interaction_indices_lists = [rand_mask(Np, M_int)]
    adjacency_indices_lists = [rand_mask(Np, M_adj), rand_mask(Ph, M_hub),
                               rand_mask(Ph, M_top)]
    hub_edge_mask = rand_mask(Np, Ph)
    top_edge_mask = rand_mask(Np, Ph)
    hub_indices = jnp.asarray(rng.choice(Ne, size=Nh, replace=False).astype(np.int32))
    top_indices = jnp.asarray(rng.choice(Ne, size=Nh, replace=False).astype(np.int32))

    out = wimn_forward(
        params,
        edge_index=adjacency_index_full,     # unused downstream (signature fidelity)
        interaction_index=interaction_index,
        edge_attr_unique=edge_attr_unique,
        node_input_x=node_input_x,
        weather_inputs_x=(weather_x, hub_weather_x, top_weather_x),
        adjacency_index=(adjacency_index_full, hub_adjacency_index, top_adjacency_index),
        hub_indices_list=[hub_indices, top_indices],
        interaction_indices_lists=interaction_indices_lists,
        adjacency_indices_lists=adjacency_indices_lists,
        hub_top_edge_mask=(hub_edge_mask, top_edge_mask),
    )
    jax.block_until_ready(out)
    assert out.shape == (Np,) and jnp.all(jnp.isfinite(out))
    print("KERNEL_OK")
</pallas_src>

<mosaic_0001>
module attributes {stable_mosaic.version = 11 : i64} {
  func.func @kernel(%arg0: memref<28x24xf32, #tpu.memory_space<vmem>>, %arg1: memref<8x16xf32, #tpu.memory_space<vmem>>, %arg2: memref<8x8xf32, #tpu.memory_space<vmem>>, %arg3: memref<4x8xf32, #tpu.memory_space<vmem>>, %arg4: memref<4x8xf32, #tpu.memory_space<vmem>>, %arg5: memref<24x32xf32, #tpu.memory_space<vmem>>, %arg6: memref<1x32xf32, #tpu.memory_space<vmem>>, %arg7: memref<16x32xf32, #tpu.memory_space<vmem>>, %arg8: memref<1x32xf32, #tpu.memory_space<vmem>>, %arg9: memref<1x32xf32, #tpu.memory_space<vmem>>, %arg10: memref<1x32xf32, #tpu.memory_space<vmem>>, %arg11: memref<32x32xf32, #tpu.memory_space<vmem>>, %arg12: memref<1x32xf32, #tpu.memory_space<vmem>>, %arg13: memref<32x32xf32, #tpu.memory_space<vmem>>, %arg14: memref<1x32xf32, #tpu.memory_space<vmem>>, %arg15: memref<1x32xf32, #tpu.memory_space<vmem>>, %arg16: memref<1x32xf32, #tpu.memory_space<vmem>>, %arg17: memref<32x32xf32, #tpu.memory_space<vmem>>, %arg18: memref<1x32xf32, #tpu.memory_space<vmem>>, %arg19: memref<32x32xf32, #tpu.memory_space<vmem>>, %arg20: memref<8x32xf32, #tpu.memory_space<vmem>>, %arg21: memref<1x32xf32, #tpu.memory_space<vmem>>, %arg22: memref<1x32xf32, #tpu.memory_space<vmem>>, %arg23: memref<1x32xf32, #tpu.memory_space<vmem>>, %arg24: memref<32x32xf32, #tpu.memory_space<vmem>>, %arg25: memref<1x32xf32, #tpu.memory_space<vmem>>, %arg26: memref<32x32xf32, #tpu.memory_space<vmem>>, %arg27: memref<8x32xf32, #tpu.memory_space<vmem>>, %arg28: memref<1x32xf32, #tpu.memory_space<vmem>>, %arg29: memref<1x32xf32, #tpu.memory_space<vmem>>, %arg30: memref<1x32xf32, #tpu.memory_space<vmem>>, %arg31: memref<32x32xf32, #tpu.memory_space<vmem>>, %arg32: memref<1x32xf32, #tpu.memory_space<vmem>>, %arg33: memref<32x32xf32, #tpu.memory_space<vmem>>, %arg34: memref<8x32xf32, #tpu.memory_space<vmem>>, %arg35: memref<1x32xf32, #tpu.memory_space<vmem>>, %arg36: memref<1x32xf32, #tpu.memory_space<vmem>>, %arg37: memref<1x32xf32, #tpu.memory_space<vmem>>, %arg38: memref<1x32xf32, #tpu.memory_space<vmem>>, %arg39: memref<1x32xf32, #tpu.memory_space<vmem>>, %arg40: memref<1x32xf32, #tpu.memory_space<vmem>>, %arg41: memref<1x1xf32, #tpu.memory_space<vmem>>, %arg42: memref<8x28xf32, #tpu.memory_space<vmem>>, %arg43: memref<8x28xf32, #tpu.memory_space<vmem>>, %arg44: memref<8x28xf32, #tpu.memory_space<vmem>>, %arg45: memref<8x28xf32, #tpu.memory_space<vmem>>, %arg46: memref<4x6xf32, #tpu.memory_space<vmem>>, %arg47: memref<4x6xf32, #tpu.memory_space<vmem>>, %arg48: memref<4x6xf32, #tpu.memory_space<vmem>>, %arg49: memref<4x6xf32, #tpu.memory_space<vmem>>, %arg50: memref<28x8xf32, #tpu.memory_space<vmem>>, %arg51: memref<28x8xf32, #tpu.memory_space<vmem>>, %arg52: memref<6x4xf32, #tpu.memory_space<vmem>>, %arg53: memref<6x4xf32, #tpu.memory_space<vmem>>, %arg54: memref<4x8xf32, #tpu.memory_space<vmem>>, %arg55: memref<4x8xf32, #tpu.memory_space<vmem>>, %arg56: memref<6x28xf32, #tpu.memory_space<vmem>>, %arg57: memref<6x28xf32, #tpu.memory_space<vmem>>, %arg58: memref<28x6xf32, #tpu.memory_space<vmem>>, %arg59: memref<1x28xf32, #tpu.memory_space<vmem>>) attributes {dimension_semantics = [], scalar_prefetch = 0 : i64, scratch_operands = 0 : i64, tpu.core_type = #tpu.core_type<tc>} {
    %c0 = arith.constant 0 : index
    %c0_0 = arith.constant 0 : index
    %0 = vector.load %arg0[%c0, %c0_0] : memref<28x24xf32, #tpu.memory_space<vmem>>, vector<28x24xf32>
    %c0_1 = arith.constant 0 : index
    %c0_2 = arith.constant 0 : index
    %1 = vector.load %arg1[%c0_1, %c0_2] : memref<8x16xf32, #tpu.memory_space<vmem>>, vector<8x16xf32>
    %c0_3 = arith.constant 0 : index
    %c0_4 = arith.constant 0 : index
    %2 = vector.load %arg5[%c0_3, %c0_4] : memref<24x32xf32, #tpu.memory_space<vmem>>, vector<24x32xf32>
    %c0_5 = arith.constant 0 : index
    %c0_6 = arith.constant 0 : index
    %3 = vector.load %arg6[%c0_5, %c0_6] : memref<1x32xf32, #tpu.memory_space<vmem>>, vector<1x32xf32>
    %c0_7 = arith.constant 0 : index
    %c0_8 = arith.constant 0 : index
    %4 = vector.load %arg7[%c0_7, %c0_8] : memref<16x32xf32, #tpu.memory_space<vmem>>, vector<16x32xf32>
    %c0_9 = arith.constant 0 : index
    %c0_10 = arith.constant 0 : index
    %5 = vector.load %arg8[%c0_9, %c0_10] : memref<1x32xf32, #tpu.memory_space<vmem>>, vector<1x32xf32>
    %c0_11 = arith.constant 0 : index
    %c0_12 = arith.constant 0 : index
    %6 = vector.load %arg9[%c0_11, %c0_12] : memref<1x32xf32, #tpu.memory_space<vmem>>, vector<1x32xf32>
    %c0_13 = arith.constant 0 : index
    %c0_14 = arith.constant 0 : index
    %7 = vector.load %arg10[%c0_13, %c0_14] : memref<1x32xf32, #tpu.memory_space<vmem>>, vector<1x32xf32>
    %c0_15 = arith.constant 0 : index
    %c0_16 = arith.constant 0 : index
    %8 = vector.load %arg42[%c0_15, %c0_16] : memref<8x28xf32, #tpu.memory_space<vmem>>, vector<8x28xf32>
    %c0_17 = arith.constant 0 : index
    %c0_18 = arith.constant 0 : index
    %9 = vector.load %arg43[%c0_17, %c0_18] : memref<8x28xf32, #tpu.memory_space<vmem>>, vector<8x28xf32>
    %c0_19 = arith.constant 0 : index
    %c0_20 = arith.constant 0 : index
    %10 = vector.load %arg50[%c0_19, %c0_20] : memref<28x8xf32, #tpu.memory_space<vmem>>, vector<28x8xf32>
    %c0_21 = arith.constant 0 : index
    %c0_22 = arith.constant 0 : index
    %11 = vector.load %arg51[%c0_21, %c0_22] : memref<28x8xf32, #tpu.memory_space<vmem>>, vector<28x8xf32>
    %cst = arith.constant dense<0.000000e+00> : vector<28x32xf32>
    %12 = tpu.matmul %0, %2, %cst {dimension_numbers = #tpu.dot_dimension_numbers<[1], [0], [0], [1], [0, 0, 1, 1], [], []>} : vector<28x24xf32>, vector<24x32xf32>, vector<28x32xf32> -> vector<28x32xf32>
    %13 = vector.broadcast %3 : vector<1x32xf32> to vector<28x32xf32>
    %14 = arith.addf %12, %13 : vector<28x32xf32>
    %cst_23 = arith.constant 0.000000e+00 : f32
    %15 = vector.broadcast %cst_23 : f32 to vector<28x32xf32>
    %16 = arith.cmpf oge, %14, %15 : vector<28x32xf32>
    %cst_24 = arith.constant 0.00999999977 : f32
    %17 = vector.broadcast %cst_24 : f32 to vector<28x32xf32>
    %18 = arith.mulf %17, %14 : vector<28x32xf32>
    %19 = arith.select %16, %14, %18 : vector<28x32xi1>, vector<28x32xf32>
    %cst_25 = arith.constant 3.125000e-02 : f32
    %20 = vector.broadcast %cst_25 : f32 to vector<1x32xf32>
    %cst_26 = arith.constant dense<0.000000e+00> : vector<1x28xf32>
    %21 = tpu.matmul %20, %19, %cst_26 {dimension_numbers = #tpu.dot_dimension_numbers<[1], [1], [0], [0], [0, 0, 1, 0], [], []>} : vector<1x32xf32>, vector<28x32xf32>, vector<1x28xf32> -> vector<1x28xf32>
    %22 = vector.broadcast %21 : vector<1x28xf32> to vector<8x28xf32>
    %23 = arith.mulf %9, %22 : vector<8x28xf32>
    %cst_27 = arith.constant dense<0.000000e+00> : vector<8x8xf32>
    %24 = tpu.matmul %23, %8, %cst_27 {dimension_numbers = #tpu.dot_dimension_numbers<[1], [1], [0], [0], [0, 0, 1, 0], [], []>} : vector<8x28xf32>, vector<8x28xf32>, vector<8x8xf32> -> vector<8x8xf32>
    %25 = vector.broadcast %21 : vector<1x28xf32> to vector<8x28xf32>
    %26 = arith.mulf %8, %25 : vector<8x28xf32>
    %cst_28 = arith.constant dense<0.000000e+00> : vector<8x8xf32>
    %27 = tpu.matmul %26, %9, %cst_28 {dimension_numbers = #tpu.dot_dimension_numbers<[1], [1], [0], [0], [0, 0, 1, 0], [], []>} : vector<8x28xf32>, vector<8x28xf32>, vector<8x8xf32> -> vector<8x8xf32>
    %28 = tpu.iota {dimensions = array<i32: 0>} : vector<8x8xi32>
    %29 = tpu.iota {dimensions = array<i32: 1>} : vector<8x8xi32>
    %30 = arith.cmpi eq, %28, %29 : vector<8x8xi32>
    %31 = arith.extui %30 : vector<8x8xi1> to vector<8x8xi32>
    %32 = arith.sitofp %31 : vector<8x8xi32> to vector<8x8xf32>
    %33 = arith.addf %24, %27 : vector<8x8xf32>
    %34 = arith.addf %33, %32 : vector<8x8xf32>
    %cst_29 = arith.constant dense<0.000000e+00> : vector<8xf32>
    %35 = vector.multi_reduction <add>, %34, %cst_29 [1] : vector<8x8xf32> to vector<8xf32>
    %36 = vector.shape_cast %35 : vector<8xf32> to vector<8x1xf32>
    %cst_30 = arith.constant 0.000000e+00 : f32
    %37 = vector.broadcast %cst_30 : f32 to vector<8x1xf32>
    %38 = arith.cmpf ogt, %36, %37 : vector<8x1xf32>
    %39 = math.rsqrt %36 : vector<8x1xf32>
    %cst_31 = arith.constant 0.000000e+00 : f32
    %40 = vector.broadcast %cst_31 : f32 to vector<8x1xf32>
    %41 = arith.select %38, %39, %40 : vector<8x1xi1>, vector<8x1xf32>
    %cst_32 = arith.constant dense<0.000000e+00> : vector<8x32xf32>
    %42 = tpu.matmul %1, %4, %cst_32 {dimension_numbers = #tpu.dot_dimension_numbers<[1], [0], [0], [1], [0, 0, 1, 1], [], []>} : vector<8x16xf32>, vector<16x32xf32>, vector<8x32xf32> -> vector<8x32xf32>
    %43 = vector.broadcast %41 : vector<8x1xf32> to vector<8x32xf32>
    %44 = arith.mulf %43, %42 : vector<8x32xf32>
    %cst_33 = arith.constant dense<0.000000e+00> : vector<8x32xf32>
    %45 = tpu.matmul %34, %44, %cst_33 {dimension_numbers = #tpu.dot_dimension_numbers<[1], [0], [0], [1], [0, 0, 1, 1], [], []>} : vector<8x8xf32>, vector<8x32xf32>, vector<8x32xf32> -> vector<8x32xf32>
    %46 = vector.broadcast %41 : vector<8x1xf32> to vector<8x32xf32>
    %47 = arith.mulf %46, %45 : vector<8x32xf32>
    %48 = vector.broadcast %5 : vector<1x32xf32> to vector<8x32xf32>
    %49 = arith.addf %47, %48 : vector<8x32xf32>
    %cst_34 = arith.constant 0.000000e+00 : f32
    %50 = vector.broadcast %cst_34 : f32 to vector<8x32xf32>
    %51 = arith.cmpf oge, %49, %50 : vector<8x32xf32>
    %cst_35 = arith.constant 0.00999999977 : f32
    %52 = vector.broadcast %cst_35 : f32 to vector<8x32xf32>
    %53 = arith.mulf %52, %49 : vector<8x32xf32>
    %54 = arith.select %51, %49, %53 : vector<8x32xi1>, vector<8x32xf32>
    %cst_36 = arith.constant dense<0.000000e+00> : vector<8x8xf32>
    %55 = tpu.matmul %54, %54, %cst_36 {dimension_numbers = #tpu.dot_dimension_numbers<[1], [1], [0], [0], [0, 0, 1, 0], [], []>} : vector<8x32xf32>, vector<8x32xf32>, vector<8x8xf32> -> vector<8x8xf32>
    %56 = arith.negf %55 : vector<8x8xf32>
    %57 = math.exp %56 : vector<8x8xf32>
    %cst_37 = arith.constant 1.000000e+00 : f32
    %58 = vector.broadcast %cst_37 : f32 to vector<8x8xf32>
    %59 = arith.addf %58, %57 : vector<8x8xf32>
    %60 = arith.divf %58, %59 : vector<8x8xf32>
    %cst_38 = arith.constant dense<0.000000e+00> : vector<28x8xf32>
    %61 = tpu.matmul %10, %60, %cst_38 {dimension_numbers = #tpu.dot_dimension_numbers<[1], [0], [0], [1], [0, 0, 1, 1], [], []>} : vector<28x8xf32>, vector<8x8xf32>, vector<28x8xf32> -> vector<28x8xf32>
    %62 = arith.mulf %61, %11 : vector<28x8xf32>
    %cst_39 = arith.constant dense<0.000000e+00> : vector<28xf32>
    %63 = vector.multi_reduction <add>, %62, %cst_39 [1] : vector<28x8xf32> to vector<28xf32>
    %64 = vector.shape_cast %63 : vector<28xf32> to vector<28x1xf32>
    %65 = vector.broadcast %64 : vector<28x1xf32> to vector<28x32xf32>
    %66 = vector.broadcast %6 : vector<1x32xf32> to vector<28x32xf32>
    %67 = arith.mulf %65, %66 : vector<28x32xf32>
    %68 = vector.broadcast %7 : vector<1x32xf32> to vector<28x32xf32>
    %69 = arith.addf %67, %68 : vector<28x32xf32>
    %70 = arith.mulf %69, %19 : vector<28x32xf32>
    %71 = arith.addf %70, %19 : vector<28x32xf32>
    %c0_40 = arith.constant 0 : index
    %c0_41 = arith.constant 0 : index
    %72 = vector.load %arg11[%c0_40, %c0_41] : memref<32x32xf32, #tpu.memory_space<vmem>>, vector<32x32xf32>
    %c0_42 = arith.constant 0 : index
    %c0_43 = arith.constant 0 : index
    %73 = vector.load %arg12[%c0_42, %c0_43] : memref<1x32xf32, #tpu.memory_space<vmem>>, vector<1x32xf32>
    %c0_44 = arith.constant 0 : index
    %c0_45 = arith.constant 0 : index
    %74 = vector.load %arg13[%c0_44, %c0_45] : memref<32x32xf32, #tpu.memory_space<vmem>>, vector<32x32xf32>
    %c0_46 = arith.constant 0 : index
    %c0_47 = arith.constant 0 : index
    %75 = vector.load %arg14[%c0_46, %c0_47] : memref<1x32xf32, #tpu.memory_space<vmem>>, vector<1x32xf32>
    %c0_48 = arith.constant 0 : index
    %c0_49 = arith.constant 0 : index
    %76 = vector.load %arg15[%c0_48, %c0_49] : memref<1x32xf32, #tpu.memory_space<vmem>>, vector<1x32xf32>
    %c0_50 = arith.constant 0 : index
    %c0_51 = arith.constant 0 : index
    %77 = vector.load %arg16[%c0_50, %c0_51] : memref<1x32xf32, #tpu.memory_space<vmem>>, vector<1x32xf32>
    %c0_52 = arith.constant 0 : index
    %c0_53 = arith.constant 0 : index
    %78 = vector.load %arg42[%c0_52, %c0_53] : memref<8x28xf32, #tpu.memory_space<vmem>>, vector<8x28xf32>
    %c0_54 = arith.constant 0 : index
    %c0_55 = arith.constant 0 : index
    %79 = vector.load %arg43[%c0_54, %c0_55] : memref<8x28xf32, #tpu.memory_space<vmem>>, vector<8x28xf32>
    %c0_56 = arith.constant 0 : index
    %c0_57 = arith.constant 0 : index
    %80 = vector.load %arg50[%c0_56, %c0_57] : memref<28x8xf32, #tpu.memory_space<vmem>>, vector<28x8xf32>
    %c0_58 = arith.constant 0 : index
    %c0_59 = arith.constant 0 : index
    %81 = vector.load %arg51[%c0_58, %c0_59] : memref<28x8xf32, #tpu.memory_space<vmem>>, vector<28x8xf32>
    %cst_60 = arith.constant dense<0.000000e+00> : vector<28x32xf32>
    %82 = tpu.matmul %71, %72, %cst_60 {dimension_numbers = #tpu.dot_dimension_numbers<[1], [0], [0], [1], [0, 0, 1, 1], [], []>} : vector<28x32xf32>, vector<32x32xf32>, vector<28x32xf32> -> vector<28x32xf32>
    %83 = vector.broadcast %73 : vector<1x32xf32> to vector<28x32xf32>
    %84 = arith.addf %82, %83 : vector<28x32xf32>
    %cst_61 = arith.constant 0.000000e+00 : f32
    %85 = vector.broadcast %cst_61 : f32 to vector<28x32xf32>
    %86 = arith.cmpf oge, %84, %85 : vector<28x32xf32>
    %cst_62 = arith.constant 0.00999999977 : f32
    %87 = vector.broadcast %cst_62 : f32 to vector<28x32xf32>
    %88 = arith.mulf %87, %84 : vector<28x32xf32>
    %89 = arith.select %86, %84, %88 : vector<28x32xi1>, vector<28x32xf32>
    %cst_63 = arith.constant 3.125000e-02 : f32
    %90 = vector.broadcast %cst_63 : f32 to vector<1x32xf32>
    %cst_64 = arith.constant dense<0.000000e+00> : vector<1x28xf32>
    %91 = tpu.matmul %90, %89, %cst_64 {dimension_numbers = #tpu.dot_dimension_numbers<[1], [1], [0], [0], [0, 0, 1, 0], [], []>} : vector<1x32xf32>, vector<28x32xf32>, vector<1x28xf32> -> vector<1x28xf32>
    %92 = vector.broadcast %91 : vector<1x28xf32> to vector<8x28xf32>
    %93 = arith.mulf %79, %92 : vector<8x28xf32>
    %cst_65 = arith.constant dense<0.000000e+00> : vector<8x8xf32>
    %94 = tpu.matmul %93, %78, %cst_65 {dimension_numbers = #tpu.dot_dimension_numbers<[1], [1], [0], [0], [0, 0, 1, 0], [], []>} : vector<8x28xf32>, vector<8x28xf32>, vector<8x8xf32> -> vector<8x8xf32>
    %95 = vector.broadcast %91 : vector<1x28xf32> to vector<8x28xf32>
    %96 = arith.mulf %78, %95 : vector<8x28xf32>
    %cst_66 = arith.constant dense<0.000000e+00> : vector<8x8xf32>
    %97 = tpu.matmul %96, %79, %cst_66 {dimension_numbers = #tpu.dot_dimension_numbers<[1], [1], [0], [0], [0, 0, 1, 0], [], []>} : vector<8x28xf32>, vector<8x28xf32>, vector<8x8xf32> -> vector<8x8xf32>
    %98 = tpu.iota {dimensions = array<i32: 0>} : vector<8x8xi32>
    %99 = tpu.iota {dimensions = array<i32: 1>} : vector<8x8xi32>
    %100 = arith.cmpi eq, %98, %99 : vector<8x8xi32>
    %101 = arith.extui %100 : vector<8x8xi1> to vector<8x8xi32>
    %102 = arith.sitofp %101 : vector<8x8xi32> to vector<8x8xf32>
    %103 = arith.addf %94, %97 : vector<8x8xf32>
    %104 = arith.addf %103, %102 : vector<8x8xf32>
    %cst_67 = arith.constant dense<0.000000e+00> : vector<8xf32>
    %105 = vector.multi_reduction <add>, %104, %cst_67 [1] : vector<8x8xf32> to vector<8xf32>
    %106 = vector.shape_cast %105 : vector<8xf32> to vector<8x1xf32>
    %cst_68 = arith.constant 0.000000e+00 : f32
    %107 = vector.broadcast %cst_68 : f32 to vector<8x1xf32>
    %108 = arith.cmpf ogt, %106, %107 : vector<8x1xf32>
    %109 = math.rsqrt %106 : vector<8x1xf32>
    %cst_69 = arith.constant 0.000000e+00 : f32
    %110 = vector.broadcast %cst_69 : f32 to vector<8x1xf32>
    %111 = arith.select %108, %109, %110 : vector<8x1xi1>, vector<8x1xf32>
    %cst_70 = arith.constant dense<0.000000e+00> : vector<8x32xf32>
    %112 = tpu.matmul %54, %74, %cst_70 {dimension_numbers = #tpu.dot_dimension_numbers<[1], [0], [0], [1], [0, 0, 1, 1], [], []>} : vector<8x32xf32>, vector<32x32xf32>, vector<8x32xf32> -> vector<8x32xf32>
    %113 = vector.broadcast %111 : vector<8x1xf32> to vector<8x32xf32>
    %114 = arith.mulf %113, %112 : vector<8x32xf32>
    %cst_71 = arith.constant dense<0.000000e+00> : vector<8x32xf32>
    %115 = tpu.matmul %104, %114, %cst_71 {dimension_numbers = #tpu.dot_dimension_numbers<[1], [0], [0], [1], [0, 0, 1, 1], [], []>} : vector<8x8xf32>, vector<8x32xf32>, vector<8x32xf32> -> vector<8x32xf32>
    %116 = vector.broadcast %111 : vector<8x1xf32> to vector<8x32xf32>
    %117 = arith.mulf %116, %115 : vector<8x32xf32>
    %118 = vector.broadcast %75 : vector<1x32xf32> to vector<8x32xf32>
    %119 = arith.addf %117, %118 : vector<8x32xf32>
    %cst_72 = arith.constant 0.000000e+00 : f32
    %120 = vector.broadcast %cst_72 : f32 to vector<8x32xf32>
    %121 = arith.cmpf oge, %119, %120 : vector<8x32xf32>
    %cst_73 = arith.constant 0.00999999977 : f32
    %122 = vector.broadcast %cst_73 : f32 to vector<8x32xf32>
    %123 = arith.mulf %122, %119 : vector<8x32xf32>
    %124 = arith.select %121, %119, %123 : vector<8x32xi1>, vector<8x32xf32>
    %cst_74 = arith.constant dense<0.000000e+00> : vector<8x8xf32>
    %125 = tpu.matmul %124, %124, %cst_74 {dimension_numbers = #tpu.dot_dimension_numbers<[1], [1], [0], [0], [0, 0, 1, 0], [], []>} : vector<8x32xf32>, vector<8x32xf32>, vector<8x8xf32> -> vector<8x8xf32>
    %126 = arith.negf %125 : vector<8x8xf32>
    %127 = math.exp %126 : vector<8x8xf32>
    %cst_75 = arith.constant 1.000000e+00 : f32
    %128 = vector.broadcast %cst_75 : f32 to vector<8x8xf32>
    %129 = arith.addf %128, %127 : vector<8x8xf32>
    %130 = arith.divf %128, %129 : vector<8x8xf32>
    %cst_76 = arith.constant dense<0.000000e+00> : vector<28x8xf32>
    %131 = tpu.matmul %80, %130, %cst_76 {dimension_numbers = #tpu.dot_dimension_numbers<[1], [0], [0], [1], [0, 0, 1, 1], [], []>} : vector<28x8xf32>, vector<8x8xf32>, vector<28x8xf32> -> vector<28x8xf32>
    %132 = arith.mulf %131, %81 : vector<28x8xf32>
    %cst_77 = arith.constant dense<0.000000e+00> : vector<28xf32>
    %133 = vector.multi_reduction <add>, %132, %cst_77 [1] : vector<28x8xf32> to vector<28xf32>
    %134 = vector.shape_cast %133 : vector<28xf32> to vector<28x1xf32>
    %135 = vector.broadcast %134 : vector<28x1xf32> to vector<28x32xf32>
    %136 = vector.broadcast %76 : vector<1x32xf32> to vector<28x32xf32>
    %137 = arith.mulf %135, %136 : vector<28x32xf32>
    %138 = vector.broadcast %77 : vector<1x32xf32> to vector<28x32xf32>
    %139 = arith.addf %137, %138 : vector<28x32xf32>
    %140 = arith.mulf %139, %89 : vector<28x32xf32>
    %141 = arith.addf %140, %89 : vector<28x32xf32>
    %c0_78 = arith.constant 0 : index
    %c0_79 = arith.constant 0 : index
    %142 = vector.load %arg54[%c0_78, %c0_79] : memref<4x8xf32, #tpu.memory_space<vmem>>, vector<4x8xf32>
    %cst_80 = arith.constant dense<0.000000e+00> : vector<4x32xf32>
    %143 = tpu.matmul %142, %124, %cst_80 {dimension_numbers = #tpu.dot_dimension_numbers<[1], [0], [0], [1], [0, 0, 1, 1], [], []>} : vector<4x8xf32>, vector<8x32xf32>, vector<4x32xf32> -> vector<4x32xf32>
    %c0_81 = arith.constant 0 : index
    %c0_82 = arith.constant 0 : index
    %144 = vector.load %arg56[%c0_81, %c0_82] : memref<6x28xf32, #tpu.memory_space<vmem>>, vector<6x28xf32>
    %cst_83 = arith.constant dense<0.000000e+00> : vector<6x32xf32>
    %145 = tpu.matmul %144, %141, %cst_83 {dimension_numbers = #tpu.dot_dimension_numbers<[1], [0], [0], [1], [0, 0, 1, 1], [], []>} : vector<6x28xf32>, vector<28x32xf32>, vector<6x32xf32> -> vector<6x32xf32>
    %c0_84 = arith.constant 0 : index
    %c0_85 = arith.constant 0 : index
    %146 = vector.load %arg4[%c0_84, %c0_85] : memref<4x8xf32, #tpu.memory_space<vmem>>, vector<4x8xf32>
    %c0_86 = arith.constant 0 : index
    %c0_87 = arith.constant 0 : index
    %147 = vector.load %arg17[%c0_86, %c0_87] : memref<32x32xf32, #tpu.memory_space<vmem>>, vector<32x32xf32>
    %c0_88 = arith.constant 0 : index
    %c0_89 = arith.constant 0 : index
    %148 = vector.load %arg18[%c0_88, %c0_89] : memref<1x32xf32, #tpu.memory_space<vmem>>, vector<1x32xf32>
    %c0_90 = arith.constant 0 : index
    %c0_91 = arith.constant 0 : index
    %149 = vector.load %arg19[%c0_90, %c0_91] : memref<32x32xf32, #tpu.memory_space<vmem>>, vector<32x32xf32>
    %c0_92 = arith.constant 0 : index
    %c0_93 = arith.constant 0 : index
    %150 = vector.load %arg20[%c0_92, %c0_93] : memref<8x32xf32, #tpu.memory_space<vmem>>, vector<8x32xf32>
    %c0_94 = arith.constant 0 : index
    %c0_95 = arith.constant 0 : index
    %151 = vector.load %arg21[%c0_94, %c0_95] : memref<1x32xf32, #tpu.memory_space<vmem>>, vector<1x32xf32>
    %c0_96 = arith.constant 0 : index
    %c0_97 = arith.constant 0 : index
    %152 = vector.load %arg22[%c0_96, %c0_97] : memref<1x32xf32, #tpu.memory_space<vmem>>, vector<1x32xf32>
    %c0_98 = arith.constant 0 : index
    %c0_99 = arith.constant 0 : index
    %153 = vector.load %arg23[%c0_98, %c0_99] : memref<1x32xf32, #tpu.memory_space<vmem>>, vector<1x32xf32>
    %c0_100 = arith.constant 0 : index
    %c0_101 = arith.constant 0 : index
    %154 = vector.load %arg46[%c0_100, %c0_101] : memref<4x6xf32, #tpu.memory_space<vmem>>, vector<4x6xf32>
    %c0_102 = arith.constant 0 : index
    %c0_103 = arith.constant 0 : index
    %155 = vector.load %arg47[%c0_102, %c0_103] : memref<4x6xf32, #tpu.memory_space<vmem>>, vector<4x6xf32>
    %c0_104 = arith.constant 0 : index
    %c0_105 = arith.constant 0 : index
    %156 = vector.load %arg52[%c0_104, %c0_105] : memref<6x4xf32, #tpu.memory_space<vmem>>, vector<6x4xf32>
    %c0_106 = arith.constant 0 : index
    %c0_107 = arith.constant 0 : index
    %157 = vector.load %arg53[%c0_106, %c0_107] : memref<6x4xf32, #tpu.memory_space<vmem>>, vector<6x4xf32>
    %cst_108 = arith.constant dense<0.000000e+00> : vector<6x32xf32>
    %158 = tpu.matmul %145, %147, %cst_108 {dimension_numbers = #tpu.dot_dimension_numbers<[1], [0], [0], [1], [0, 0, 1, 1], [], []>} : vector<6x32xf32>, vector<32x32xf32>, vector<6x32xf32> -> vector<6x32xf32>
    %159 = vector.broadcast %148 : vector<1x32xf32> to vector<6x32xf32>
    %160 = arith.addf %158, %159 : vector<6x32xf32>
    %cst_109 = arith.constant 0.000000e+00 : f32
    %161 = vector.broadcast %cst_109 : f32 to vector<6x32xf32>
    %162 = arith.cmpf oge, %160, %161 : vector<6x32xf32>
    %cst_110 = arith.constant 0.00999999977 : f32
    %163 = vector.broadcast %cst_110 : f32 to vector<6x32xf32>
    %164 = arith.mulf %163, %160 : vector<6x32xf32>
    %165 = arith.select %162, %160, %164 : vector<6x32xi1>, vector<6x32xf32>
    %cst_111 = arith.constant 3.125000e-02 : f32
    %166 = vector.broadcast %cst_111 : f32 to vector<1x32xf32>
    %cst_112 = arith.constant dense<0.000000e+00> : vector<1x6xf32>
    %167 = tpu.matmul %166, %165, %cst_112 {dimension_numbers = #tpu.dot_dimension_numbers<[1], [1], [0], [0], [0, 0, 1, 0], [], []>} : vector<1x32xf32>, vector<6x32xf32>, vector<1x6xf32> -> vector<1x6xf32>
    %168 = vector.broadcast %167 : vector<1x6xf32> to vector<4x6xf32>
    %169 = arith.mulf %155, %168 : vector<4x6xf32>
    %cst_113 = arith.constant dense<0.000000e+00> : vector<4x4xf32>
    %170 = tpu.matmul %169, %154, %cst_113 {dimension_numbers = #tpu.dot_dimension_numbers<[1], [1], [0], [0], [0, 0, 1, 0], [], []>} : vector<4x6xf32>, vector<4x6xf32>, vector<4x4xf32> -> vector<4x4xf32>
    %171 = vector.broadcast %167 : vector<1x6xf32> to vector<4x6xf32>
    %172 = arith.mulf %154, %171 : vector<4x6xf32>
    %cst_114 = arith.constant dense<0.000000e+00> : vector<4x4xf32>
    %173 = tpu.matmul %172, %155, %cst_114 {dimension_numbers = #tpu.dot_dimension_numbers<[1], [1], [0], [0], [0, 0, 1, 0], [], []>} : vector<4x6xf32>, vector<4x6xf32>, vector<4x4xf32> -> vector<4x4xf32>
    %174 = tpu.iota {dimensions = array<i32: 0>} : vector<4x4xi32>
    %175 = tpu.iota {dimensions = array<i32: 1>} : vector<4x4xi32>
    %176 = arith.cmpi eq, %174, %175 : vector<4x4xi32>
    %177 = arith.extui %176 : vector<4x4xi1> to vector<4x4xi32>
    %178 = arith.sitofp %177 : vector<4x4xi32> to vector<4x4xf32>
    %179 = arith.addf %170, %173 : vector<4x4xf32>
    %180 = arith.addf %179, %178 : vector<4x4xf32>
    %cst_115 = arith.constant dense<0.000000e+00> : vector<4xf32>
    %181 = vector.multi_reduction <add>, %180, %cst_115 [1] : vector<4x4xf32> to vector<4xf32>
    %182 = vector.shape_cast %181 : vector<4xf32> to vector<4x1xf32>
    %cst_116 = arith.constant 0.000000e+00 : f32
    %183 = vector.broadcast %cst_116 : f32 to vector<4x1xf32>
    %184 = arith.cmpf ogt, %182, %183 : vector<4x1xf32>
    %185 = math.rsqrt %182 : vector<4x1xf32>
    %cst_117 = arith.constant 0.000000e+00 : f32
    %186 = vector.broadcast %cst_117 : f32 to vector<4x1xf32>
    %187 = arith.select %184, %185, %186 : vector<4x1xi1>, vector<4x1xf32>
    %cst_118 = arith.constant dense<0.000000e+00> : vector<4x32xf32>
    %188 = tpu.matmul %143, %149, %cst_118 {dimension_numbers = #tpu.dot_dimension_numbers<[1], [0], [0], [1], [0, 0, 1, 1], [], []>} : vector<4x32xf32>, vector<32x32xf32>, vector<4x32xf32> -> vector<4x32xf32>
    %cst_119 = arith.constant dense<0.000000e+00> : vector<4x32xf32>
    %189 = tpu.matmul %146, %150, %cst_119 {dimension_numbers = #tpu.dot_dimension_numbers<[1], [0], [0], [1], [0, 0, 1, 1], [], []>} : vector<4x8xf32>, vector<8x32xf32>, vector<4x32xf32> -> vector<4x32xf32>
    %190 = arith.addf %188, %189 : vector<4x32xf32>
    %191 = vector.broadcast %187 : vector<4x1xf32> to vector<4x32xf32>
    %192 = arith.mulf %191, %190 : vector<4x32xf32>
    %cst_120 = arith.constant dense<0.000000e+00> : vector<4x32xf32>
    %193 = tpu.matmul %180, %192, %cst_120 {dimension_numbers = #tpu.dot_dimension_numbers<[1], [0], [0], [1], [0, 0, 1, 1], [], []>} : vector<4x4xf32>, vector<4x32xf32>, vector<4x32xf32> -> vector<4x32xf32>
    %194 = vector.broadcast %187 : vector<4x1xf32> to vector<4x32xf32>
    %195 = arith.mulf %194, %193 : vector<4x32xf32>
    %196 = vector.broadcast %151 : vector<1x32xf32> to vector<4x32xf32>
    %197 = arith.addf %195, %196 : vector<4x32xf32>
    %cst_121 = arith.constant 0.000000e+00 : f32
    %198 = vector.broadcast %cst_121 : f32 to vector<4x32xf32>
    %199 = arith.cmpf oge, %197, %198 : vector<4x32xf32>
    %cst_122 = arith.constant 0.00999999977 : f32
    %200 = vector.broadcast %cst_122 : f32 to vector<4x32xf32>
    %201 = arith.mulf %200, %197 : vector<4x32xf32>
    %202 = arith.select %199, %197, %201 : vector<4x32xi1>, vector<4x32xf32>
    %cst_123 = arith.constant dense<0.000000e+00> : vector<4x4xf32>
    %203 = tpu.matmul %202, %202, %cst_123 {dimension_numbers = #tpu.dot_dimension_numbers<[1], [1], [0], [0], [0, 0, 1, 0], [], []>} : vector<4x32xf32>, vector<4x32xf32>, vector<4x4xf32> -> vector<4x4xf32>
    %204 = arith.negf %203 : vector<4x4xf32>
    %205 = math.exp %204 : vector<4x4xf32>
    %cst_124 = arith.constant 1.000000e+00 : f32
    %206 = vector.broadcast %cst_124 : f32 to vector<4x4xf32>
    %207 = arith.addf %206, %205 : vector<4x4xf32>
    %208 = arith.divf %206, %207 : vector<4x4xf32>
    %cst_125 = arith.constant dense<0.000000e+00> : vector<6x4xf32>
    %209 = tpu.matmul %156, %208, %cst_125 {dimension_numbers = #tpu.dot_dimension_numbers<[1], [0], [0], [1], [0, 0, 1, 1], [], []>} : vector<6x4xf32>, vector<4x4xf32>, vector<6x4xf32> -> vector<6x4xf32>
    %210 = arith.mulf %209, %157 : vector<6x4xf32>
    %cst_126 = arith.constant dense<0.000000e+00> : vector<6xf32>
    %211 = vector.multi_reduction <add>, %210, %cst_126 [1] : vector<6x4xf32> to vector<6xf32>
    %212 = vector.shape_cast %211 : vector<6xf32> to vector<6x1xf32>
    %213 = vector.broadcast %212 : vector<6x1xf32> to vector<6x32xf32>
    %214 = vector.broadcast %152 : vector<1x32xf32> to vector<6x32xf32>
    %215 = arith.mulf %213, %214 : vector<6x32xf32>
    %216 = vector.broadcast %153 : vector<1x32xf32> to vector<6x32xf32>
    %217 = arith.addf %215, %216 : vector<6x32xf32>
    %218 = arith.mulf %217, %165 : vector<6x32xf32>
    %219 = arith.addf %218, %165 : vector<6x32xf32>
    %c0_127 = arith.constant 0 : index
    %c0_128 = arith.constant 0 : index
    %220 = vector.load %arg58[%c0_127, %c0_128] : memref<28x6xf32, #tpu.memory_space<vmem>>, vector<28x6xf32>
    %cst_129 = arith.constant dense<0.000000e+00> : vector<28x32xf32>
    %221 = tpu.matmul %220, %219, %cst_129 {dimension_numbers = #tpu.dot_dimension_numbers<[1], [0], [0], [1], [0, 0, 1, 1], [], []>} : vector<28x6xf32>, vector<6x32xf32>, vector<28x32xf32> -> vector<28x32xf32>
    %c0_130 = arith.constant 0 : index
    %c0_131 = arith.constant 0 : index
    %222 = vector.load %arg55[%c0_130, %c0_131] : memref<4x8xf32, #tpu.memory_space<vmem>>, vector<4x8xf32>
    %cst_132 = arith.constant dense<0.000000e+00> : vector<4x32xf32>
    %223 = tpu.matmul %222, %124, %cst_132 {dimension_numbers = #tpu.dot_dimension_numbers<[1], [0], [0], [1], [0, 0, 1, 1], [], []>} : vector<4x8xf32>, vector<8x32xf32>, vector<4x32xf32> -> vector<4x32xf32>
    %c0_133 = arith.constant 0 : index
    %c0_134 = arith.constant 0 : index
    %224 = vector.load %arg57[%c0_133, %c0_134] : memref<6x28xf32, #tpu.memory_space<vmem>>, vector<6x28xf32>
    %cst_135 = arith.constant dense<0.000000e+00> : vector<6x32xf32>
    %225 = tpu.matmul %224, %141, %cst_135 {dimension_numbers = #tpu.dot_dimension_numbers<[1], [0], [0], [1], [0, 0, 1, 1], [], []>} : vector<6x28xf32>, vector<28x32xf32>, vector<6x32xf32> -> vector<6x32xf32>
    %c0_136 = arith.constant 0 : index
    %c0_137 = arith.constant 0 : index
    %226 = vector.load %arg3[%c0_136, %c0_137] : memref<4x8xf32, #tpu.memory_space<vmem>>, vector<4x8xf32>
    %c0_138 = arith.constant 0 : index
    %c0_139 = arith.constant 0 : index
    %227 = vector.load %arg24[%c0_138, %c0_139] : memref<32x32xf32, #tpu.memory_space<vmem>>, vector<32x32xf32>
    %c0_140 = arith.constant 0 : index
    %c0_141 = arith.constant 0 : index
    %228 = vector.load %arg25[%c0_140, %c0_141] : memref<1x32xf32, #tpu.memory_space<vmem>>, vector<1x32xf32>
    %c0_142 = arith.constant 0 : index
    %c0_143 = arith.constant 0 : index
    %229 = vector.load %arg26[%c0_142, %c0_143] : memref<32x32xf32, #tpu.memory_space<vmem>>, vector<32x32xf32>
    %c0_144 = arith.constant 0 : index
    %c0_145 = arith.constant 0 : index
    %230 = vector.load %arg27[%c0_144, %c0_145] : memref<8x32xf32, #tpu.memory_space<vmem>>, vector<8x32xf32>
    %c0_146 = arith.constant 0 : index
    %c0_147 = arith.constant 0 : index
    %231 = vector.load %arg28[%c0_146, %c0_147] : memref<1x32xf32, #tpu.memory_space<vmem>>, vector<1x32xf32>
    %c0_148 = arith.constant 0 : index
    %c0_149 = arith.constant 0 : index
    %232 = vector.load %arg29[%c0_148, %c0_149] : memref<1x32xf32, #tpu.memory_space<vmem>>, vector<1x32xf32>
    %c0_150 = arith.constant 0 : index
    %c0_151 = arith.constant 0 : index
    %233 = vector.load %arg30[%c0_150, %c0_151] : memref<1x32xf32, #tpu.memory_space<vmem>>, vector<1x32xf32>
    %c0_152 = arith.constant 0 : index
    %c0_153 = arith.constant 0 : index
    %234 = vector.load %arg48[%c0_152, %c0_153] : memref<4x6xf32, #tpu.memory_space<vmem>>, vector<4x6xf32>
    %c0_154 = arith.constant 0 : index
    %c0_155 = arith.constant 0 : index
    %235 = vector.load %arg49[%c0_154, %c0_155] : memref<4x6xf32, #tpu.memory_space<vmem>>, vector<4x6xf32>
    %c0_156 = arith.constant 0 : index
    %c0_157 = arith.constant 0 : index
    %236 = vector.load %arg52[%c0_156, %c0_157] : memref<6x4xf32, #tpu.memory_space<vmem>>, vector<6x4xf32>
    %c0_158 = arith.constant 0 : index
    %c0_159 = arith.constant 0 : index
    %237 = vector.load %arg53[%c0_158, %c0_159] : memref<6x4xf32, #tpu.memory_space<vmem>>, vector<6x4xf32>
    %cst_160 = arith.constant dense<0.000000e+00> : vector<6x32xf32>
    %238 = tpu.matmul %225, %227, %cst_160 {dimension_numbers = #tpu.dot_dimension_numbers<[1], [0], [0], [1], [0, 0, 1, 1], [], []>} : vector<6x32xf32>, vector<32x32xf32>, vector<6x32xf32> -> vector<6x32xf32>
    %239 = vector.broadcast %228 : vector<1x32xf32> to vector<6x32xf32>
    %240 = arith.addf %238, %239 : vector<6x32xf32>
    %cst_161 = arith.constant 0.000000e+00 : f32
    %241 = vector.broadcast %cst_161 : f32 to vector<6x32xf32>
    %242 = arith.cmpf oge, %240, %241 : vector<6x32xf32>
    %cst_162 = arith.constant 0.00999999977 : f32
    %243 = vector.broadcast %cst_162 : f32 to vector<6x32xf32>
    %244 = arith.mulf %243, %240 : vector<6x32xf32>
    %245 = arith.select %242, %240, %244 : vector<6x32xi1>, vector<6x32xf32>
    %cst_163 = arith.constant 3.125000e-02 : f32
    %246 = vector.broadcast %cst_163 : f32 to vector<1x32xf32>
    %cst_164 = arith.constant dense<0.000000e+00> : vector<1x6xf32>
    %247 = tpu.matmul %246, %245, %cst_164 {dimension_numbers = #tpu.dot_dimension_numbers<[1], [1], [0], [0], [0, 0, 1, 0], [], []>} : vector<1x32xf32>, vector<6x32xf32>, vector<1x6xf32> -> vector<1x6xf32>
    %248 = vector.broadcast %247 : vector<1x6xf32> to vector<4x6xf32>
    %249 = arith.mulf %235, %248 : vector<4x6xf32>
    %cst_165 = arith.constant dense<0.000000e+00> : vector<4x4xf32>
    %250 = tpu.matmul %249, %234, %cst_165 {dimension_numbers = #tpu.dot_dimension_numbers<[1], [1], [0], [0], [0, 0, 1, 0], [], []>} : vector<4x6xf32>, vector<4x6xf32>, vector<4x4xf32> -> vector<4x4xf32>
    %251 = vector.broadcast %247 : vector<1x6xf32> to vector<4x6xf32>
    %252 = arith.mulf %234, %251 : vector<4x6xf32>
    %cst_166 = arith.constant dense<0.000000e+00> : vector<4x4xf32>
    %253 = tpu.matmul %252, %235, %cst_166 {dimension_numbers = #tpu.dot_dimension_numbers<[1], [1], [0], [0], [0, 0, 1, 0], [], []>} : vector<4x6xf32>, vector<4x6xf32>, vector<4x4xf32> -> vector<4x4xf32>
    %254 = tpu.iota {dimensions = array<i32: 0>} : vector<4x4xi32>
    %255 = tpu.iota {dimensions = array<i32: 1>} : vector<4x4xi32>
    %256 = arith.cmpi eq, %254, %255 : vector<4x4xi32>
    %257 = arith.extui %256 : vector<4x4xi1> to vector<4x4xi32>
    %258 = arith.sitofp %257 : vector<4x4xi32> to vector<4x4xf32>
    %259 = arith.addf %250, %253 : vector<4x4xf32>
    %260 = arith.addf %259, %258 : vector<4x4xf32>
    %cst_167 = arith.constant dense<0.000000e+00> : vector<4xf32>
    %261 = vector.multi_reduction <add>, %260, %cst_167 [1] : vector<4x4xf32> to vector<4xf32>
    %262 = vector.shape_cast %261 : vector<4xf32> to vector<4x1xf32>
    %cst_168 = arith.constant 0.000000e+00 : f32
    %263 = vector.broadcast %cst_168 : f32 to vector<4x1xf32>
    %264 = arith.cmpf ogt, %262, %263 : vector<4x1xf32>
    %265 = math.rsqrt %262 : vector<4x1xf32>
    %cst_169 = arith.constant 0.000000e+00 : f32
    %266 = vector.broadcast %cst_169 : f32 to vector<4x1xf32>
    %267 = arith.select %264, %265, %266 : vector<4x1xi1>, vector<4x1xf32>
    %cst_170 = arith.constant dense<0.000000e+00> : vector<4x32xf32>
    %268 = tpu.matmul %223, %229, %cst_170 {dimension_numbers = #tpu.dot_dimension_numbers<[1], [0], [0], [1], [0, 0, 1, 1], [], []>} : vector<4x32xf32>, vector<32x32xf32>, vector<4x32xf32> -> vector<4x32xf32>
    %cst_171 = arith.constant dense<0.000000e+00> : vector<4x32xf32>
    %269 = tpu.matmul %226, %230, %cst_171 {dimension_numbers = #tpu.dot_dimension_numbers<[1], [0], [0], [1], [0, 0, 1, 1], [], []>} : vector<4x8xf32>, vector<8x32xf32>, vector<4x32xf32> -> vector<4x32xf32>
    %270 = arith.addf %268, %269 : vector<4x32xf32>
    %271 = vector.broadcast %267 : vector<4x1xf32> to vector<4x32xf32>
    %272 = arith.mulf %271, %270 : vector<4x32xf32>
    %cst_172 = arith.constant dense<0.000000e+00> : vector<4x32xf32>
    %273 = tpu.matmul %260, %272, %cst_172 {dimension_numbers = #tpu.dot_dimension_numbers<[1], [0], [0], [1], [0, 0, 1, 1], [], []>} : vector<4x4xf32>, vector<4x32xf32>, vector<4x32xf32> -> vector<4x32xf32>
    %274 = vector.broadcast %267 : vector<4x1xf32> to vector<4x32xf32>
    %275 = arith.mulf %274, %273 : vector<4x32xf32>
    %276 = vector.broadcast %231 : vector<1x32xf32> to vector<4x32xf32>
    %277 = arith.addf %275, %276 : vector<4x32xf32>
    %cst_173 = arith.constant 0.000000e+00 : f32
    %278 = vector.broadcast %cst_173 : f32 to vector<4x32xf32>
    %279 = arith.cmpf oge, %277, %278 : vector<4x32xf32>
    %cst_174 = arith.constant 0.00999999977 : f32
    %280 = vector.broadcast %cst_174 : f32 to vector<4x32xf32>
    %281 = arith.mulf %280, %277 : vector<4x32xf32>
    %282 = arith.select %279, %277, %281 : vector<4x32xi1>, vector<4x32xf32>
    %cst_175 = arith.constant dense<0.000000e+00> : vector<4x4xf32>
    %283 = tpu.matmul %282, %282, %cst_175 {dimension_numbers = #tpu.dot_dimension_numbers<[1], [1], [0], [0], [0, 0, 1, 0], [], []>} : vector<4x32xf32>, vector<4x32xf32>, vector<4x4xf32> -> vector<4x4xf32>
    %284 = arith.negf %283 : vector<4x4xf32>
    %285 = math.exp %284 : vector<4x4xf32>
    %cst_176 = arith.constant 1.000000e+00 : f32
    %286 = vector.broadcast %cst_176 : f32 to vector<4x4xf32>
    %287 = arith.addf %286, %285 : vector<4x4xf32>
    %288 = arith.divf %286, %287 : vector<4x4xf32>
    %cst_177 = arith.constant dense<0.000000e+00> : vector<6x4xf32>
    %289 = tpu.matmul %236, %288, %cst_177 {dimension_numbers = #tpu.dot_dimension_numbers<[1], [0], [0], [1], [0, 0, 1, 1], [], []>} : vector<6x4xf32>, vector<4x4xf32>, vector<6x4xf32> -> vector<6x4xf32>
    %290 = arith.mulf %289, %237 : vector<6x4xf32>
    %cst_178 = arith.constant dense<0.000000e+00> : vector<6xf32>
    %291 = vector.multi_reduction <add>, %290, %cst_178 [1] : vector<6x4xf32> to vector<6xf32>
    %292 = vector.shape_cast %291 : vector<6xf32> to vector<6x1xf32>
    %293 = vector.broadcast %292 : vector<6x1xf32> to vector<6x32xf32>
    %294 = vector.broadcast %232 : vector<1x32xf32> to vector<6x32xf32>
    %295 = arith.mulf %293, %294 : vector<6x32xf32>
    %296 = vector.broadcast %233 : vector<1x32xf32> to vector<6x32xf32>
    %297 = arith.addf %295, %296 : vector<6x32xf32>
    %298 = arith.mulf %297, %245 : vector<6x32xf32>
    %299 = arith.addf %298, %245 : vector<6x32xf32>
    %c0_179 = arith.constant 0 : index
    %c0_180 = arith.constant 0 : index
    %300 = vector.load %arg58[%c0_179, %c0_180] : memref<28x6xf32, #tpu.memory_space<vmem>>, vector<28x6xf32>
    %cst_181 = arith.constant dense<0.000000e+00> : vector<28x32xf32>
    %301 = tpu.matmul %300, %299, %cst_181 {dimension_numbers = #tpu.dot_dimension_numbers<[1], [0], [0], [1], [0, 0, 1, 1], [], []>} : vector<28x6xf32>, vector<6x32xf32>, vector<28x32xf32> -> vector<28x32xf32>
    %c0_182 = arith.constant 0 : index
    %c0_183 = arith.constant 0 : index
    %302 = vector.load %arg2[%c0_182, %c0_183] : memref<8x8xf32, #tpu.memory_space<vmem>>, vector<8x8xf32>
    %c0_184 = arith.constant 0 : index
    %c0_185 = arith.constant 0 : index
    %303 = vector.load %arg31[%c0_184, %c0_185] : memref<32x32xf32, #tpu.memory_space<vmem>>, vector<32x32xf32>
    %c0_186 = arith.constant 0 : index
    %c0_187 = arith.constant 0 : index
    %304 = vector.load %arg32[%c0_186, %c0_187] : memref<1x32xf32, #tpu.memory_space<vmem>>, vector<1x32xf32>
    %c0_188 = arith.constant 0 : index
    %c0_189 = arith.constant 0 : index
    %305 = vector.load %arg33[%c0_188, %c0_189] : memref<32x32xf32, #tpu.memory_space<vmem>>, vector<32x32xf32>
    %c0_190 = arith.constant 0 : index
    %c0_191 = arith.constant 0 : index
    %306 = vector.load %arg34[%c0_190, %c0_191] : memref<8x32xf32, #tpu.memory_space<vmem>>, vector<8x32xf32>
    %c0_192 = arith.constant 0 : index
    %c0_193 = arith.constant 0 : index
    %307 = vector.load %arg35[%c0_192, %c0_193] : memref<1x32xf32, #tpu.memory_space<vmem>>, vector<1x32xf32>
    %c0_194 = arith.constant 0 : index
    %c0_195 = arith.constant 0 : index
    %308 = vector.load %arg36[%c0_194, %c0_195] : memref<1x32xf32, #tpu.memory_space<vmem>>, vector<1x32xf32>
    %c0_196 = arith.constant 0 : index
    %c0_197 = arith.constant 0 : index
    %309 = vector.load %arg37[%c0_196, %c0_197] : memref<1x32xf32, #tpu.memory_space<vmem>>, vector<1x32xf32>
    %c0_198 = arith.constant 0 : index
    %c0_199 = arith.constant 0 : index
    %310 = vector.load %arg44[%c0_198, %c0_199] : memref<8x28xf32, #tpu.memory_space<vmem>>, vector<8x28xf32>
    %c0_200 = arith.constant 0 : index
    %c0_201 = arith.constant 0 : index
    %311 = vector.load %arg45[%c0_200, %c0_201] : memref<8x28xf32, #tpu.memory_space<vmem>>, vector<8x28xf32>
    %c0_202 = arith.constant 0 : index
    %c0_203 = arith.constant 0 : index
    %312 = vector.load %arg50[%c0_202, %c0_203] : memref<28x8xf32, #tpu.memory_space<vmem>>, vector<28x8xf32>
    %c0_204 = arith.constant 0 : index
    %c0_205 = arith.constant 0 : index
    %313 = vector.load %arg51[%c0_204, %c0_205] : memref<28x8xf32, #tpu.memory_space<vmem>>, vector<28x8xf32>
    %cst_206 = arith.constant dense<0.000000e+00> : vector<28x32xf32>
    %314 = tpu.matmul %141, %303, %cst_206 {dimension_numbers = #tpu.dot_dimension_numbers<[1], [0], [0], [1], [0, 0, 1, 1], [], []>} : vector<28x32xf32>, vector<32x32xf32>, vector<28x32xf32> -> vector<28x32xf32>
    %315 = vector.broadcast %304 : vector<1x32xf32> to vector<28x32xf32>
    %316 = arith.addf %314, %315 : vector<28x32xf32>
    %cst_207 = arith.constant 0.000000e+00 : f32
    %317 = vector.broadcast %cst_207 : f32 to vector<28x32xf32>
    %318 = arith.cmpf oge, %316, %317 : vector<28x32xf32>
    %cst_208 = arith.constant 0.00999999977 : f32
    %319 = vector.broadcast %cst_208 : f32 to vector<28x32xf32>
    %320 = arith.mulf %319, %316 : vector<28x32xf32>
    %321 = arith.select %318, %316, %320 : vector<28x32xi1>, vector<28x32xf32>
    %cst_209 = arith.constant 3.125000e-02 : f32
    %322 = vector.broadcast %cst_209 : f32 to vector<1x32xf32>
    %cst_210 = arith.constant dense<0.000000e+00> : vector<1x28xf32>
    %323 = tpu.matmul %322, %321, %cst_210 {dimension_numbers = #tpu.dot_dimension_numbers<[1], [1], [0], [0], [0, 0, 1, 0], [], []>} : vector<1x32xf32>, vector<28x32xf32>, vector<1x28xf32> -> vector<1x28xf32>
    %324 = vector.broadcast %323 : vector<1x28xf32> to vector<8x28xf32>
    %325 = arith.mulf %311, %324 : vector<8x28xf32>
    %cst_211 = arith.constant dense<0.000000e+00> : vector<8x8xf32>
    %326 = tpu.matmul %325, %310, %cst_211 {dimension_numbers = #tpu.dot_dimension_numbers<[1], [1], [0], [0], [0, 0, 1, 0], [], []>} : vector<8x28xf32>, vector<8x28xf32>, vector<8x8xf32> -> vector<8x8xf32>
    %327 = vector.broadcast %323 : vector<1x28xf32> to vector<8x28xf32>
    %328 = arith.mulf %310, %327 : vector<8x28xf32>
    %cst_212 = arith.constant dense<0.000000e+00> : vector<8x8xf32>
    %329 = tpu.matmul %328, %311, %cst_212 {dimension_numbers = #tpu.dot_dimension_numbers<[1], [1], [0], [0], [0, 0, 1, 0], [], []>} : vector<8x28xf32>, vector<8x28xf32>, vector<8x8xf32> -> vector<8x8xf32>
    %330 = tpu.iota {dimensions = array<i32: 0>} : vector<8x8xi32>
    %331 = tpu.iota {dimensions = array<i32: 1>} : vector<8x8xi32>
    %332 = arith.cmpi eq, %330, %331 : vector<8x8xi32>
    %333 = arith.extui %332 : vector<8x8xi1> to vector<8x8xi32>
    %334 = arith.sitofp %333 : vector<8x8xi32> to vector<8x8xf32>
    %335 = arith.addf %326, %329 : vector<8x8xf32>
    %336 = arith.addf %335, %334 : vector<8x8xf32>
    %cst_213 = arith.constant dense<0.000000e+00> : vector<8xf32>
    %337 = vector.multi_reduction <add>, %336, %cst_213 [1] : vector<8x8xf32> to vector<8xf32>
    %338 = vector.shape_cast %337 : vector<8xf32> to vector<8x1xf32>
    %cst_214 = arith.constant 0.000000e+00 : f32
    %339 = vector.broadcast %cst_214 : f32 to vector<8x1xf32>
    %340 = arith.cmpf ogt, %338, %339 : vector<8x1xf32>
    %341 = math.rsqrt %338 : vector<8x1xf32>
    %cst_215 = arith.constant 0.000000e+00 : f32
    %342 = vector.broadcast %cst_215 : f32 to vector<8x1xf32>
    %343 = arith.select %340, %341, %342 : vector<8x1xi1>, vector<8x1xf32>
    %cst_216 = arith.constant dense<0.000000e+00> : vector<8x32xf32>
    %344 = tpu.matmul %124, %305, %cst_216 {dimension_numbers = #tpu.dot_dimension_numbers<[1], [0], [0], [1], [0, 0, 1, 1], [], []>} : vector<8x32xf32>, vector<32x32xf32>, vector<8x32xf32> -> vector<8x32xf32>
    %cst_217 = arith.constant dense<0.000000e+00> : vector<8x32xf32>
    %345 = tpu.matmul %302, %306, %cst_217 {dimension_numbers = #tpu.dot_dimension_numbers<[1], [0], [0], [1], [0, 0, 1, 1], [], []>} : vector<8x8xf32>, vector<8x32xf32>, vector<8x32xf32> -> vector<8x32xf32>
    %346 = arith.addf %344, %345 : vector<8x32xf32>
    %347 = vector.broadcast %343 : vector<8x1xf32> to vector<8x32xf32>
    %348 = arith.mulf %347, %346 : vector<8x32xf32>
    %cst_218 = arith.constant dense<0.000000e+00> : vector<8x32xf32>
    %349 = tpu.matmul %336, %348, %cst_218 {dimension_numbers = #tpu.dot_dimension_numbers<[1], [0], [0], [1], [0, 0, 1, 1], [], []>} : vector<8x8xf32>, vector<8x32xf32>, vector<8x32xf32> -> vector<8x32xf32>
    %350 = vector.broadcast %343 : vector<8x1xf32> to vector<8x32xf32>
    %351 = arith.mulf %350, %349 : vector<8x32xf32>
    %352 = vector.broadcast %307 : vector<1x32xf32> to vector<8x32xf32>
    %353 = arith.addf %351, %352 : vector<8x32xf32>
    %cst_219 = arith.constant 0.000000e+00 : f32
    %354 = vector.broadcast %cst_219 : f32 to vector<8x32xf32>
    %355 = arith.cmpf oge, %353, %354 : vector<8x32xf32>
    %cst_220 = arith.constant 0.00999999977 : f32
    %356 = vector.broadcast %cst_220 : f32 to vector<8x32xf32>
    %357 = arith.mulf %356, %353 : vector<8x32xf32>
    %358 = arith.select %355, %353, %357 : vector<8x32xi1>, vector<8x32xf32>
    %cst_221 = arith.constant dense<0.000000e+00> : vector<8x8xf32>
    %359 = tpu.matmul %358, %358, %cst_221 {dimension_numbers = #tpu.dot_dimension_numbers<[1], [1], [0], [0], [0, 0, 1, 0], [], []>} : vector<8x32xf32>, vector<8x32xf32>, vector<8x8xf32> -> vector<8x8xf32>
    %360 = arith.negf %359 : vector<8x8xf32>
    %361 = math.exp %360 : vector<8x8xf32>
    %cst_222 = arith.constant 1.000000e+00 : f32
    %362 = vector.broadcast %cst_222 : f32 to vector<8x8xf32>
    %363 = arith.addf %362, %361 : vector<8x8xf32>
    %364 = arith.divf %362, %363 : vector<8x8xf32>
    %cst_223 = arith.constant dense<0.000000e+00> : vector<28x8xf32>
    %365 = tpu.matmul %312, %364, %cst_223 {dimension_numbers = #tpu.dot_dimension_numbers<[1], [0], [0], [1], [0, 0, 1, 1], [], []>} : vector<28x8xf32>, vector<8x8xf32>, vector<28x8xf32> -> vector<28x8xf32>
    %366 = arith.mulf %365, %313 : vector<28x8xf32>
    %cst_224 = arith.constant dense<0.000000e+00> : vector<28xf32>
    %367 = vector.multi_reduction <add>, %366, %cst_224 [1] : vector<28x8xf32> to vector<28xf32>
    %368 = vector.shape_cast %367 : vector<28xf32> to vector<28x1xf32>
    %369 = vector.broadcast %368 : vector<28x1xf32> to vector<28x32xf32>
    %370 = vector.broadcast %308 : vector<1x32xf32> to vector<28x32xf32>
    %371 = arith.mulf %369, %370 : vector<28x32xf32>
    %372 = vector.broadcast %309 : vector<1x32xf32> to vector<28x32xf32>
    %373 = arith.addf %371, %372 : vector<28x32xf32>
    %374 = arith.mulf %373, %321 : vector<28x32xf32>
    %375 = arith.addf %374, %321 : vector<28x32xf32>
    %c0_225 = arith.constant 0 : index
    %c0_226 = arith.constant 0 : index
    %376 = vector.load %arg2[%c0_225, %c0_226] : memref<8x8xf32, #tpu.memory_space<vmem>>, vector<8x8xf32>
    %c0_227 = arith.constant 0 : index
    %c0_228 = arith.constant 0 : index
    %377 = vector.load %arg31[%c0_227, %c0_228] : memref<32x32xf32, #tpu.memory_space<vmem>>, vector<32x32xf32>
    %c0_229 = arith.constant 0 : index
    %c0_230 = arith.constant 0 : index
    %378 = vector.load %arg32[%c0_229, %c0_230] : memref<1x32xf32, #tpu.memory_space<vmem>>, vector<1x32xf32>
    %c0_231 = arith.constant 0 : index
    %c0_232 = arith.constant 0 : index
    %379 = vector.load %arg33[%c0_231, %c0_232] : memref<32x32xf32, #tpu.memory_space<vmem>>, vector<32x32xf32>
    %c0_233 = arith.constant 0 : index
    %c0_234 = arith.constant 0 : index
    %380 = vector.load %arg34[%c0_233, %c0_234] : memref<8x32xf32, #tpu.memory_space<vmem>>, vector<8x32xf32>
    %c0_235 = arith.constant 0 : index
    %c0_236 = arith.constant 0 : index
    %381 = vector.load %arg35[%c0_235, %c0_236] : memref<1x32xf32, #tpu.memory_space<vmem>>, vector<1x32xf32>
    %c0_237 = arith.constant 0 : index
    %c0_238 = arith.constant 0 : index
    %382 = vector.load %arg36[%c0_237, %c0_238] : memref<1x32xf32, #tpu.memory_space<vmem>>, vector<1x32xf32>
    %c0_239 = arith.constant 0 : index
    %c0_240 = arith.constant 0 : index
    %383 = vector.load %arg37[%c0_239, %c0_240] : memref<1x32xf32, #tpu.memory_space<vmem>>, vector<1x32xf32>
    %c0_241 = arith.constant 0 : index
    %c0_242 = arith.constant 0 : index
    %384 = vector.load %arg44[%c0_241, %c0_242] : memref<8x28xf32, #tpu.memory_space<vmem>>, vector<8x28xf32>
    %c0_243 = arith.constant 0 : index
    %c0_244 = arith.constant 0 : index
    %385 = vector.load %arg45[%c0_243, %c0_244] : memref<8x28xf32, #tpu.memory_space<vmem>>, vector<8x28xf32>
    %c0_245 = arith.constant 0 : index
    %c0_246 = arith.constant 0 : index
    %386 = vector.load %arg50[%c0_245, %c0_246] : memref<28x8xf32, #tpu.memory_space<vmem>>, vector<28x8xf32>
    %c0_247 = arith.constant 0 : index
    %c0_248 = arith.constant 0 : index
    %387 = vector.load %arg51[%c0_247, %c0_248] : memref<28x8xf32, #tpu.memory_space<vmem>>, vector<28x8xf32>
    %cst_249 = arith.constant dense<0.000000e+00> : vector<28x32xf32>
    %388 = tpu.matmul %375, %377, %cst_249 {dimension_numbers = #tpu.dot_dimension_numbers<[1], [0], [0], [1], [0, 0, 1, 1], [], []>} : vector<28x32xf32>, vector<32x32xf32>, vector<28x32xf32> -> vector<28x32xf32>
    %389 = vector.broadcast %378 : vector<1x32xf32> to vector<28x32xf32>
    %390 = arith.addf %388, %389 : vector<28x32xf32>
    %cst_250 = arith.constant 0.000000e+00 : f32
    %391 = vector.broadcast %cst_250 : f32 to vector<28x32xf32>
    %392 = arith.cmpf oge, %390, %391 : vector<28x32xf32>
    %cst_251 = arith.constant 0.00999999977 : f32
    %393 = vector.broadcast %cst_251 : f32 to vector<28x32xf32>
    %394 = arith.mulf %393, %390 : vector<28x32xf32>
    %395 = arith.select %392, %390, %394 : vector<28x32xi1>, vector<28x32xf32>
    %cst_252 = arith.constant 3.125000e-02 : f32
    %396 = vector.broadcast %cst_252 : f32 to vector<1x32xf32>
    %cst_253 = arith.constant dense<0.000000e+00> : vector<1x28xf32>
    %397 = tpu.matmul %396, %395, %cst_253 {dimension_numbers = #tpu.dot_dimension_numbers<[1], [1], [0], [0], [0, 0, 1, 0], [], []>} : vector<1x32xf32>, vector<28x32xf32>, vector<1x28xf32> -> vector<1x28xf32>
    %398 = vector.broadcast %397 : vector<1x28xf32> to vector<8x28xf32>
    %399 = arith.mulf %385, %398 : vector<8x28xf32>
    %cst_254 = arith.constant dense<0.000000e+00> : vector<8x8xf32>
    %400 = tpu.matmul %399, %384, %cst_254 {dimension_numbers = #tpu.dot_dimension_numbers<[1], [1], [0], [0], [0, 0, 1, 0], [], []>} : vector<8x28xf32>, vector<8x28xf32>, vector<8x8xf32> -> vector<8x8xf32>
    %401 = vector.broadcast %397 : vector<1x28xf32> to vector<8x28xf32>
    %402 = arith.mulf %384, %401 : vector<8x28xf32>
    %cst_255 = arith.constant dense<0.000000e+00> : vector<8x8xf32>
    %403 = tpu.matmul %402, %385, %cst_255 {dimension_numbers = #tpu.dot_dimension_numbers<[1], [1], [0], [0], [0, 0, 1, 0], [], []>} : vector<8x28xf32>, vector<8x28xf32>, vector<8x8xf32> -> vector<8x8xf32>
    %404 = tpu.iota {dimensions = array<i32: 0>} : vector<8x8xi32>
    %405 = tpu.iota {dimensions = array<i32: 1>} : vector<8x8xi32>
    %406 = arith.cmpi eq, %404, %405 : vector<8x8xi32>
    %407 = arith.extui %406 : vector<8x8xi1> to vector<8x8xi32>
    %408 = arith.sitofp %407 : vector<8x8xi32> to vector<8x8xf32>
    %409 = arith.addf %400, %403 : vector<8x8xf32>
    %410 = arith.addf %409, %408 : vector<8x8xf32>
    %cst_256 = arith.constant dense<0.000000e+00> : vector<8xf32>
    %411 = vector.multi_reduction <add>, %410, %cst_256 [1] : vector<8x8xf32> to vector<8xf32>
    %412 = vector.shape_cast %411 : vector<8xf32> to vector<8x1xf32>
    %cst_257 = arith.constant 0.000000e+00 : f32
    %413 = vector.broadcast %cst_257 : f32 to vector<8x1xf32>
    %414 = arith.cmpf ogt, %412, %413 : vector<8x1xf32>
    %415 = math.rsqrt %412 : vector<8x1xf32>
    %cst_258 = arith.constant 0.000000e+00 : f32
    %416 = vector.broadcast %cst_258 : f32 to vector<8x1xf32>
    %417 = arith.select %414, %415, %416 : vector<8x1xi1>, vector<8x1xf32>
    %cst_259 = arith.constant dense<0.000000e+00> : vector<8x32xf32>
    %418 = tpu.matmul %124, %379, %cst_259 {dimension_numbers = #tpu.dot_dimension_numbers<[1], [0], [0], [1], [0, 0, 1, 1], [], []>} : vector<8x32xf32>, vector<32x32xf32>, vector<8x32xf32> -> vector<8x32xf32>
    %cst_260 = arith.constant dense<0.000000e+00> : vector<8x32xf32>
    %419 = tpu.matmul %376, %380, %cst_260 {dimension_numbers = #tpu.dot_dimension_numbers<[1], [0], [0], [1], [0, 0, 1, 1], [], []>} : vector<8x8xf32>, vector<8x32xf32>, vector<8x32xf32> -> vector<8x32xf32>
    %420 = arith.addf %418, %419 : vector<8x32xf32>
    %421 = vector.broadcast %417 : vector<8x1xf32> to vector<8x32xf32>
    %422 = arith.mulf %421, %420 : vector<8x32xf32>
    %cst_261 = arith.constant dense<0.000000e+00> : vector<8x32xf32>
    %423 = tpu.matmul %410, %422, %cst_261 {dimension_numbers = #tpu.dot_dimension_numbers<[1], [0], [0], [1], [0, 0, 1, 1], [], []>} : vector<8x8xf32>, vector<8x32xf32>, vector<8x32xf32> -> vector<8x32xf32>
    %424 = vector.broadcast %417 : vector<8x1xf32> to vector<8x32xf32>
    %425 = arith.mulf %424, %423 : vector<8x32xf32>
    %426 = vector.broadcast %381 : vector<1x32xf32> to vector<8x32xf32>
    %427 = arith.addf %425, %426 : vector<8x32xf32>
    %cst_262 = arith.constant 0.000000e+00 : f32
    %428 = vector.broadcast %cst_262 : f32 to vector<8x32xf32>
    %429 = arith.cmpf oge, %427, %428 : vector<8x32xf32>
    %cst_263 = arith.constant 0.00999999977 : f32
    %430 = vector.broadcast %cst_263 : f32 to vector<8x32xf32>
    %431 = arith.mulf %430, %427 : vector<8x32xf32>
    %432 = arith.select %429, %427, %431 : vector<8x32xi1>, vector<8x32xf32>
    %cst_264 = arith.constant dense<0.000000e+00> : vector<8x8xf32>
    %433 = tpu.matmul %432, %432, %cst_264 {dimension_numbers = #tpu.dot_dimension_numbers<[1], [1], [0], [0], [0, 0, 1, 0], [], []>} : vector<8x32xf32>, vector<8x32xf32>, vector<8x8xf32> -> vector<8x8xf32>
    %434 = arith.negf %433 : vector<8x8xf32>
    %435 = math.exp %434 : vector<8x8xf32>
    %cst_265 = arith.constant 1.000000e+00 : f32
    %436 = vector.broadcast %cst_265 : f32 to vector<8x8xf32>
    %437 = arith.addf %436, %435 : vector<8x8xf32>
    %438 = arith.divf %436, %437 : vector<8x8xf32>
    %cst_266 = arith.constant dense<0.000000e+00> : vector<28x8xf32>
    %439 = tpu.matmul %386, %438, %cst_266 {dimension_numbers = #tpu.dot_dimension_numbers<[1], [0], [0], [1], [0, 0, 1, 1], [], []>} : vector<28x8xf32>, vector<8x8xf32>, vector<28x8xf32> -> vector<28x8xf32>
    %440 = arith.mulf %439, %387 : vector<28x8xf32>
    %cst_267 = arith.constant dense<0.000000e+00> : vector<28xf32>
    %441 = vector.multi_reduction <add>, %440, %cst_267 [1] : vector<28x8xf32> to vector<28xf32>
    %442 = vector.shape_cast %441 : vector<28xf32> to vector<28x1xf32>
    %443 = vector.broadcast %442 : vector<28x1xf32> to vector<28x32xf32>
    %444 = vector.broadcast %382 : vector<1x32xf32> to vector<28x32xf32>
    %445 = arith.mulf %443, %444 : vector<28x32xf32>
    %446 = vector.broadcast %383 : vector<1x32xf32> to vector<28x32xf32>
    %447 = arith.addf %445, %446 : vector<28x32xf32>
    %448 = arith.mulf %447, %395 : vector<28x32xf32>
    %449 = arith.addf %448, %395 : vector<28x32xf32>
    %c0_268 = arith.constant 0 : index
    %c0_269 = arith.constant 0 : index
    %450 = vector.load %arg38[%c0_268, %c0_269] : memref<1x32xf32, #tpu.memory_space<vmem>>, vector<1x32xf32>
    %cst_270 = arith.constant dense<0.000000e+00> : vector<1x28xf32>
    %451 = tpu.matmul %450, %221, %cst_270 {dimension_numbers = #tpu.dot_dimension_numbers<[1], [1], [0], [0], [0, 0, 1, 0], [], []>} : vector<1x32xf32>, vector<28x32xf32>, vector<1x28xf32> -> vector<1x28xf32>
    %c0_271 = arith.constant 0 : index
    %c0_272 = arith.constant 0 : index
    %452 = vector.load %arg39[%c0_271, %c0_272] : memref<1x32xf32, #tpu.memory_space<vmem>>, vector<1x32xf32>
    %cst_273 = arith.constant dense<0.000000e+00> : vector<1x28xf32>
    %453 = tpu.matmul %452, %301, %cst_273 {dimension_numbers = #tpu.dot_dimension_numbers<[1], [1], [0], [0], [0, 0, 1, 0], [], []>} : vector<1x32xf32>, vector<28x32xf32>, vector<1x28xf32> -> vector<1x28xf32>
    %454 = arith.addf %451, %453 : vector<1x28xf32>
    %c0_274 = arith.constant 0 : index
    %c0_275 = arith.constant 0 : index
    %455 = vector.load %arg40[%c0_274, %c0_275] : memref<1x32xf32, #tpu.memory_space<vmem>>, vector<1x32xf32>
    %cst_276 = arith.constant dense<0.000000e+00> : vector<1x28xf32>
    %456 = tpu.matmul %455, %449, %cst_276 {dimension_numbers = #tpu.dot_dimension_numbers<[1], [1], [0], [0], [0, 0, 1, 0], [], []>} : vector<1x32xf32>, vector<28x32xf32>, vector<1x28xf32> -> vector<1x28xf32>
    %457 = arith.addf %454, %456 : vector<1x28xf32>
    %c0_277 = arith.constant 0 : index
    %c0_278 = arith.constant 0 : index
    %458 = vector.load %arg41[%c0_277, %c0_278] : memref<1x1xf32, #tpu.memory_space<vmem>>, vector<1x1xf32>
    %459 = vector.broadcast %458 : vector<1x1xf32> to vector<1x28xf32>
    %460 = arith.addf %457, %459 : vector<1x28xf32>
    %c0_279 = arith.constant 0 : index
    %c0_280 = arith.constant 0 : index
    %461 = vector.load %arg59[%c0_279, %c0_280] : memref<1x28xf32, #tpu.memory_space<vmem>>, vector<1x28xf32>
    tpu.vector_store %arg59[%c0_279, %c0_280], %460 {strides = array<i32>} : memref<1x28xf32, #tpu.memory_space<vmem>>, vector<1x28xf32>,
    return
  }
}

</mosaic_0001>

<bundles_post_ra>
// kernel: tpu_custom_call.1
= control target key start
LH: loop header
LB: loop body
LE: loop exit
PB: predicated region body
PF: predicated region fallthrough
CT: control target
= control target key end

     0   :  { %s4570_s6 = smov 1   ;;  %s4571_s10 = smov 2   ;;  %s5656_s0 = inlined_call_operand.smem [shape: u32[60], index: -1, kind: input, shape index: {}] }
   0x1   :  { %s4685_s5 = sld [smem:[%s5656_s0]]   ;;  %s4572_s14 = smov 3  }
   0x2   :  { %s4690_s9 = sld [smem:[%s5656_s0 + %s4570_s6]]   ;;  %s4573_s18 = smov 4  }
   0x3   :  { %s4695_s13 = sld [smem:[%s5656_s0 + %s4571_s10]]   ;;  %s4574_s22 = smov 5  }
   0x4   :  { %s4700_s17 = sld [smem:[%s5656_s0 + %s4572_s14]]   ;;  %s4575_s26 = smov 6  }
   0x5   :  { %s4705_s21 = sld [smem:[%s5656_s0 + %s4573_s18]]   ;;  %s4576_s30 = smov 7  }
   0x6   :  { %s4710_s25 = sld [smem:[%s5656_s0 + %s4574_s22]]   ;;  %s4577_s4 = smov 8  }
   0x7   :  { %5692 = sst [smem:[#allocation92_spill]] %s4685_s5  ;;  %s4578_s10 = smov 9  }
   0x8   :  { %5693 = sst [smem:[#allocation93_spill]] %s4690_s9  ;;  %s4579_s15 = smov 10  }
   0x9   :  { %s4715_s29 = sld [smem:[%s5656_s0 + %s4575_s26]]   ;;  %s4580_s20 = smov 11  }
   0xa   :  { %5694 = sst [smem:[#allocation94_spill]] %s4700_s17  ;;  %s4581_s26 = smov 12  }
   0xb   :  { %s4720_s3 = sld [smem:[%s5656_s0 + %s4576_s30]]   ;;  %s4582_s1 = smov 13  }
   0xc   :  { %5695 = sst [smem:[#allocation95_spill]] %s4710_s25  ;;  %s4583_s7 = smov 14  }
   0xd   :  { %s4725_s8 = sld [smem:[%s5656_s0 + %s4577_s4]]   ;;  %s4585_s22 = smov 16  }
   0xe   :  { %s4730_s14 = sld [smem:[%s5656_s0 + %s4578_s10]]   ;;  %s4586_s28 = smov 17  }
   0xf   :  { %5696 = sst [smem:[#allocation96_spill]] %s4715_s29  ;;  %s4611_s10 = smov 42  }
  0x10   :  { %s4735_s19 = sld [smem:[%s5656_s0 + %s4579_s15]]   ;;  %s4584_s15 = smov 15  }
  0x11   :  { %s4740_s24 = sld [smem:[%s5656_s0 + %s4580_s20]]   ;;  %s4612_s16 = smov 43  }
  0x12   :  { %s4745_s30 = sld [smem:[%s5656_s0 + %s4581_s26]]   ;;  %s4613_s23 = smov 44  }
  0x13   :  { %5697 = sst [smem:[#allocation97_spill]] %s4725_s8 }
  0x14   :  { %s4750_s6 = sld [smem:[%s5656_s0 + %s4582_s1]]   ;;  %s4614_s1 = smov 45  }
  0x15   :  { %s4755_s12 = sld [smem:[%s5656_s0 + %s4583_s7]]   ;;  %s4587_s7 = smov 18  }
  0x16   :  { %5698 = sst [smem:[#allocation98_spill]] %s4735_s19 }
  0x17   :  { %5699 = sst [smem:[#allocation99_spill]] %s4740_s24 }
  0x18   :  { %s4760_s20 = sld [smem:[%s5656_s0 + %s4584_s15]]   ;;  %s4588_s15 = smov 19  }
  0x19   :  { %s4765_s27 = sld [smem:[%s5656_s0 + %s4585_s22]]   ;;  %s4589_s22 = smov 20  }
  0x1a   :  { %5700 = sst [smem:[#allocation100_spill]] %s4750_s6 }
  0x1b   :  { %5701 = sst [smem:[#allocation101_spill]] %s4755_s12 }
  0x1c   :  { %s4770_s4 = sld [smem:[%s5656_s0 + %s4586_s28]]   ;;  %s4590_s28 = smov 21  }
  0x1d   :  { %s4775_s6 = sld [smem:[%s5656_s0 + %s4587_s7]]   ;;  %s4591_s7 = smov 22  }
  0x1e   :  { %s4780_s24 = sld [smem:[%s5656_s0 + %s4588_s15]]   ;;  %s4592_s15 = smov 23  }
  0x1f   :  { %5702 = sst [smem:[#allocation102_spill]] %s4765_s27 }
  0x20   :  { %s4785_s5 = sld [smem:[%s5656_s0 + %s4589_s22]]   ;;  %s4593_s22 = smov 24  }
  0x21   :  { %s4795_s25 = sld [smem:[%s5656_s0 + %s4591_s7]]   ;;  %s4595_s7 = smov 26  }
  0x22   :  { %5703 = sst [smem:[#allocation103_spill]] %s4770_s4 }
  0x23   :  { %s4790_s4 = sld [smem:[%s5656_s0 + %s4590_s28]]   ;;  %s4594_s28 = smov 25  }
  0x24   :  { %5704 = sst [smem:[#allocation104_spill]] %s4780_s24 }
  0x25   :  { %s4800_s24 = sld [smem:[%s5656_s0 + %s4592_s15]]   ;;  %s4596_s15 = smov 27  }
  0x26   :  { %5705 = sst [smem:[#allocation105_spill]] %s4785_s5 }
  0x27   :  { %s4805_s5 = sld [smem:[%s5656_s0 + %s4593_s22]]   ;;  %s4597_s22 = smov 28  }
  0x28   :  { %s4815_s27 = sld [smem:[%s5656_s0 + %s4595_s7]]   ;;  %s4599_s7 = smov 30  }
  0x29   :  { %5706 = sst [smem:[#allocation106_spill]] %s4790_s4 }
  0x2a   :  { %s4810_s4 = sld [smem:[%s5656_s0 + %s4594_s28]]   ;;  %s4598_s28 = smov 29  }
  0x2b   :  { %5707 = sst [smem:[#allocation107_spill]] %s4800_s24 }
  0x2c   :  { %s4820_s24 = sld [smem:[%s5656_s0 + %s4596_s15]]   ;;  %s4600_s15 = smov 31  }
  0x2d   :  { %s4825_s12 = sld [smem:[%s5656_s0 + %s4597_s22]]   ;;  %s4601_s22 = smov 32  }
  0x2e   :  { %s4835_s19 = sld [smem:[%s5656_s0 + %s4599_s7]]   ;;  %s4603_s7 = smov 34  }
  0x30   :  { %5708 = sst [smem:[#allocation108_spill]] %s4810_s4 }
  0x31   :  { %s4830_s4 = sld [smem:[%s5656_s0 + %s4598_s28]]   ;;  %s4602_s28 = smov 33  }
  0x32   :  { %5709 = sst [smem:[#allocation109_spill]] %s4820_s24 }
  0x33   :  { %5710 = sst [smem:[#allocation110_spill]] %s4825_s12 }
  0x34   :  { %5711 = sst [smem:[#allocation111_spill]] %s4835_s19 }
  0x35   :  { %s4840_s24 = sld [smem:[%s5656_s0 + %s4600_s15]]   ;;  %s4604_s15 = smov 35  }
  0x36   :  { %s4845_s12 = sld [smem:[%s5656_s0 + %s4601_s22]]   ;;  %s4605_s22 = smov 36  }
  0x37   :  { %s4850_s8 = sld [smem:[%s5656_s0 + %s4602_s28]]   ;;  %s4606_s28 = smov 37  }
  0x38   :  { %s4855_s19 = sld [smem:[%s5656_s0 + %s4603_s7]]   ;;  %s4607_s7 = smov 38  }
  0x39   :  { %s4860_s29 = sld [smem:[%s5656_s0 + %s4604_s15]]   ;;  %s4608_s15 = smov 39  }
  0x3a   :  { %s4870_s17 = sld [smem:[%s5656_s0 + %s4606_s28]]   ;;  %s4610_s28 = smov 41  }
  0x3c   :  { %5712 = sst [smem:[#allocation112_spill]] %s4845_s12 }
  0x3d   :  { %s4865_s12 = sld [smem:[%s5656_s0 + %s4605_s22]]   ;;  %s4609_s22 = smov 40  }
  0x3e   :  { %5713 = sst [smem:[#allocation113_spill]] %s4855_s19 }
  0x3f   :  { %5714 = sst [smem:[#allocation114_spill]] %s4860_s29 }
  0x40   :  { %5716 = sst [smem:[#allocation116_spill]] %s4870_s17 }
  0x41   :  { %s4875_s19 = sld [smem:[%s5656_s0 + %s4607_s7]]   ;;  %s4619_s7 = smov 50  }
  0x42   :  { %s4880_s29 = sld [smem:[%s5656_s0 + %s4608_s15]]  }
  0x43   :  { %5715 = sst [smem:[#allocation115_spill]] %s4865_s12 }
  0x44   :  { %s4885_s9 = sld [smem:[%s5656_s0 + %s4609_s22]]  }
  0x45   :  { %s3149_s17 = sld [smem:[%s5656_s0 + %s4610_s28]]  }
  0x46   :  { %s4908_s12 = sld [smem:[%s5656_s0 + %s4614_s1]]   ;;  %s4618_s1 = smov 49  }
  0x47   :  { %5717 = sst [smem:[#allocation117_spill]] %s4875_s19 }
  0x48   :  { %5718 = sst [smem:[#allocation118_spill]] %s4880_s29 }
  0x49   :  { %s4893_s19 = sld [smem:[%s5656_s0 + %s4611_s10]]   ;;  %s4615_s10 = smov 46  }
  0x4a   :  { %5719 = sst [smem:[#allocation119_spill]] %s4885_s9 }
  0x4b   :  { %s4898_s29 = sld [smem:[%s5656_s0 + %s4612_s16]]   ;;  %s4616_s16 = smov 47   ;;  %v124_v0 = vstv %s3149_s17 }
  0x4c   :  { %s4903_s9 = sld [smem:[%s5656_s0 + %s4613_s23]]   ;;  %s4617_s23 = smov 48   ;;  %125 = vst [vmem:[#allocation2] sm:$0x1] %v124_v0 }
  0x4d   :  { %5722 = sst [smem:[#allocation122_spill]] %s4908_s12  ;;  %s4620_s17 = smov 51  }
  0x4e   :  { %s4923_s28 = sld [smem:[%s5656_s0 + %s4617_s23]]   ;;  %s4621_s23 = smov 52  }
  0x4f   :  { %5720 = sst [smem:[#allocation120_spill]] %s4893_s19  ;;  %s4622_s12 = smov 53  }
  0x50   :  { %s4913_s19 = sld [smem:[%s5656_s0 + %s4615_s10]]  }
  0x51   :  { %5721 = sst [smem:[#allocation121_spill]] %s4898_s29 }
  0x52   :  { %s4918_s29 = sld [smem:[%s5656_s0 + %s4616_s16]]  }
  0x53   :  { %s4928_s10 = sld [smem:[%s5656_s0 + %s4618_s1]]  }
  0x54   :  { %5725 = sst [smem:[#allocation125_spill]] %s4923_s28 }
  0x55   :  { %s4933_s16 = sld [smem:[%s5656_s0 + %s4619_s7]]  }
  0x56   :  { %5723 = sst [smem:[#allocation123_spill]] %s4913_s19  ;;  %s4623_s19 = smov 54  }
  0x57   :  { %s4938_s22 = sld [smem:[%s5656_s0 + %s4620_s17]]   ;;  %s4624_s17 = smov 55  }
  0x58   :  { %5724 = sst [smem:[#allocation124_spill]] %s4918_s29  ;;  %s4625_s29 = smov 56  }
  0x59   :  { %5726 = sst [smem:[#allocation126_spill]] %s4928_s10 }
  0x5a   :  { %s4943_s28 = sld [smem:[%s5656_s0 + %s4621_s23]]  }
  0x5b   :  { %5727 = sst [smem:[#allocation127_spill]] %s4933_s16 }
  0x5c   :  { %s4948_s10 = sld [smem:[%s5656_s0 + %s4622_s12]]   ;;  %s4626_s12 = smov 57  }
  0x5d   :  { %5728 = sst [smem:[#allocation128_spill]] %s4938_s22 }
  0x5e   :  { %s4953_s16 = sld [smem:[%s5656_s0 + %s4623_s19]]   ;;  %s4627_s19 = smov 58  }
  0x5f   :  { %s4958_s22 = sld [smem:[%s5656_s0 + %s4624_s17]]   ;;  %s4628_s17 = smov 59  }
  0x60   :  { %5729 = sst [smem:[#allocation129_spill]] %s4943_s28 }
  0x61   :  { %s4963_s28 = sld [smem:[%s5656_s0 + %s4625_s29]]  }
  0x62   :  { %5730 = sst [smem:[#allocation130_spill]] %s4948_s10 }
  0x63   :  { %s4968_s10 = sld [smem:[%s5656_s0 + %s4626_s12]]  }
  0x64   :  { %5731 = sst [smem:[#allocation131_spill]] %s4953_s16 }
  0x65   :  { %5732 = sst [smem:[#allocation132_spill]] %s4958_s22 }
  0x66   :  { %s4973_s16 = sld [smem:[%s5656_s0 + %s4627_s19]]  }
  0x67   :  { %s4978_s22 = sld [smem:[%s5656_s0 + %s4628_s17]]  }
  0x68   :  { %126 = vsyncpa [#allocation4], 0 }
  0x69   :  { %127 = vsyncpa [#allocation7], 0 }
  0x6a   :  { %128 = vsyncpa [#allocation10], 0 }
  0x6b   :  { %129 = vsyncpa [#allocation13], 0 }
  0x6c   :  { %130 = vsyncpa [#allocation16], 0 }
  0x6d   :  { %131 = vsyncpa [#allocation19], 0 }
  0x6e   :  { %132 = vsyncpa [#allocation22], 0 }
  0x6f   :  { %133 = vsyncpa [#allocation25], 0 }
  0x70   :  { %134 = vsyncpa [#allocation28], 0 }
  0x71   :  { %135 = vsyncpa [#allocation31], 0 }
  0x72   :  { %136 = vsyncpa [#allocation34], 0 }
  0x73   :  { %137 = vsyncpa [#allocation37], 0 }
  0x74   :  { %138 = vsyncpa [#allocation40], 0 }
  0x75   :  { %139 = vsyncpa [#allocation43], 0 }
  0x76   :  { %140 = vsyncpa [#allocation46], 0 }
  0x77   :  { %141 = vsyncpa [#allocation49], 0 }
  0x78   :  { %142 = vsyncpa [#allocation52], 0 }
  0x79   :  { %143 = vsyncpa [#allocation55], 0 }
  0x7a   :  { %144 = vsyncpa [#allocation58], 0 }
  0x7b   :  { %145 = vsyncpa [#allocation61], 0 }
  0x7c   :  { %146 = vsyncpa [#allocation64], 0 }
  0x7d   :  { %147 = vsyncpa [#allocation67], 0  ;;  %s167_s0 = sshll.u32 %s4695_s13, 4  ;;  %s168_s0 = int_to_ptr.hbm [resolvable:$true] %s167_s0 }
  0x7e   :  { %148 = vsyncpa [#allocation5], 0  ;;  %s4629_s29 = smov [#allocation6]   ;;  %s189_s26 = sshll.u32 %s4705_s21, 4  ;;  %s190_s26 = int_to_ptr.hbm [resolvable:$true] %s189_s26 }
  0x7f   :  { %s169_s23 = sshll.u32 %s4629_s29, 4  ;;  %s3492_s12 = sshra.s32 %s168_s0, 4  ;;  %s170_s23 = int_to_ptr.vmem [resolvable:$true] %s169_s23  ;;  %s3493_s12 = int_to_ptr.hbm [resolvable:$true] %s3492_s12 }
  0x80   :  { %s3494_s1 = scalar_lea.hbm %s3493_s12, 8  ;;  %s3496_s2 = scalar_lea.hbm %s4695_s13, 8 }
  0x81   :  { %p3495_p0 = scmp.ne.s32.totalorder %s3493_s12, %s3494_s1  ;;  %p3497_p1 = scmp.lt.s32.totalorder %s3493_s12, %s4695_s13 }
  0x82   :  { %p3498_p2 = scmp.lt.s32.totalorder %s3496_s2, %s3494_s1 }
  0x84   :  { %p3499_p3 = por %p3498_p2, %p3497_p1 }
  0x86   :  { %p3500_p4 = pnand %p3499_p3, %p3495_p0 }
  0x88   :  { %3503 = shalt.err (!%p3500_p4)
}
  0x89   :  { %172 = dma.hbm_to_vmem [thread:$0]  %s168_s0, 128, %s170_s23, [#allocation7]  }
  0x8a   :  { %s4630_s19 = smov [#allocation9]   ;;  %s212_s11 = sshll.u32 %s4720_s3, 4  ;;  %s4985_s11 = int_to_ptr.hbm [resolvable:$true] %s212_s11 }
  0x8b   :  { %s191_s7 = sshll.u32 %s4630_s19, 4  ;;  %s3516_s17 = sshra.s32 %s190_s26, 4  ;;  %s192_s7 = int_to_ptr.vmem [resolvable:$true] %s191_s7  ;;  %s3517_s17 = int_to_ptr.hbm [resolvable:$true] %s3516_s17 }
  0x8c   :  { %s3518_s15 = scalar_lea.hbm %s3517_s17, 4  ;;  %s3520_s13 = scalar_lea.hbm %s4705_s21, 4 }
  0x8d   :  { %p3519_p5 = scmp.ne.s32.totalorder %s3517_s17, %s3518_s15  ;;  %p3521_p6 = scmp.lt.s32.totalorder %s3517_s17, %s4705_s21 }
  0x8e   :  { %p3522_p7 = scmp.lt.s32.totalorder %s3520_s13, %s3518_s15 }
  0x90   :  { %p3523_p8 = por %p3522_p7, %p3521_p6 }
  0x92   :  { %p3524_p9 = pnand %p3523_p8, %p3519_p5 }
  0x94   :  { %3527 = shalt.err (!%p3524_p9)
}
  0x95   :  { %194 = dma.hbm_to_vmem [thread:$0]  %s190_s26, 64, %s192_s7, [#allocation10]  }
  0x96   :  { %s4631_s18 = smov [#allocation12]   ;;  %s237_s29 = sshll.u32 %s4730_s14, 4  ;;  %s238_s29 = int_to_ptr.hbm [resolvable:$true] %s237_s29 }
  0x97   :  { %s214_s0 = sshll.u32 %s4631_s18, 4  ;;  %s3540_s23 = sshra.s32 %s4985_s11, 4  ;;  %s215_s0 = int_to_ptr.vmem [resolvable:$true] %s214_s0  ;;  %s3541_s23 = int_to_ptr.hbm [resolvable:$true] %s3540_s23 }
  0x98   :  { %s3542_s12 = scalar_lea.hbm %s3541_s23, 16  ;;  %s3544_s1 = scalar_lea.hbm %s4720_s3, 16 }
  0x99   :  { %p3543_p10 = scmp.ne.s32.totalorder %s3541_s23, %s3542_s12  ;;  %p3545_p11 = scmp.lt.s32.totalorder %s3541_s23, %s4720_s3 }
  0x9a   :  { %p3546_p12 = scmp.lt.s32.totalorder %s3544_s1, %s3542_s12 }
  0x9c   :  { %p3547_p13 = por %p3546_p12, %p3545_p11 }
  0x9e   :  { %p3548_p0 = pnand %p3547_p13, %p3543_p10 }
  0xa0   :  { %3551 = shalt.err (!%p3548_p0)
}
  0xa1   :  { %s4632_s21 = smov 128   ;;  %s4633_s26 = smov 8  }
  0xa2   :  { %220 = dma.hbm_to_vmem [thread:$0]  %s4985_s11, 256, %s215_s0, [#allocation13], %s4632_s21, %s4632_s21, %s4633_s26  }
  0xa3   :  { %s4634_s2 = smov [#allocation15]   ;;  %s261_s7 = sshll.u32 %s4745_s30, 4  ;;  %s262_s7 = int_to_ptr.hbm [resolvable:$true] %s261_s7 }
  0xa4   :  { %s239_s19 = sshll.u32 %s4634_s2, 4  ;;  %s3564_s3 = sshra.s32 %s238_s29, 4  ;;  %s240_s19 = int_to_ptr.vmem [resolvable:$true] %s239_s19  ;;  %s3565_s3 = int_to_ptr.hbm [resolvable:$true] %s3564_s3 }
  0xa5   :  { %s3566_s17 = scalar_lea.hbm %s3565_s3, 1  ;;  %s3568_s15 = scalar_lea.hbm %s4730_s14, 1 }
  0xa6   :  { %p3567_p1 = scmp.ne.s32.totalorder %s3565_s3, %s3566_s17  ;;  %p3569_p2 = scmp.lt.s32.totalorder %s3565_s3, %s4730_s14 }
  0xa7   :  { %p3570_p3 = scmp.lt.s32.totalorder %s3568_s15, %s3566_s17 }
  0xa9   :  { %p3571_p4 = por %p3570_p3, %p3569_p2 }
  0xab   :  { %p3572_p5 = pnand %p3571_p4, %p3567_p1 }
  0xad   :  { %3575 = shalt.err (!%p3572_p5)
}
  0xae   :  { %242 = dma.hbm_to_vmem [thread:$0]  %s238_s29, 16, %s240_s19, [#allocation16]  }
  0xaf   :  { %s285_s11 = sshll.u32 %s4760_s20, 4  ;;  %s4635_s13 = smov [#allocation18]   ;;  %s286_s11 = int_to_ptr.hbm [resolvable:$true] %s285_s11 }
  0xb0   :  { %s263_s18 = sshll.u32 %s4635_s13, 4  ;;  %s3588_s0 = sshra.s32 %s262_s7, 4  ;;  %s264_s18 = int_to_ptr.vmem [resolvable:$true] %s263_s18  ;;  %s3589_s0 = int_to_ptr.hbm [resolvable:$true] %s3588_s0 }
  0xb1   :  { %s3590_s23 = scalar_lea.hbm %s3589_s0, 1  ;;  %s3592_s12 = scalar_lea.hbm %s4745_s30, 1 }
  0xb2   :  { %p3591_p6 = scmp.ne.s32.totalorder %s3589_s0, %s3590_s23  ;;  %p3593_p7 = scmp.lt.s32.totalorder %s3589_s0, %s4745_s30 }
  0xb3   :  { %p3594_p8 = scmp.lt.s32.totalorder %s3592_s12, %s3590_s23 }
  0xb5   :  { %p3595_p9 = por %p3594_p8, %p3593_p7 }
  0xb7   :  { %p3596_p10 = pnand %p3595_p9, %p3591_p6 }
  0xb9   :  { %3599 = shalt.err (!%p3596_p10)
}
  0xba   :  { %266 = dma.hbm_to_vmem [thread:$0]  %s262_s7, 16, %s264_s18, [#allocation19]  }
  0xbb   :  { %s4636_s14 = smov [#allocation21]   ;;  %s309_s1 = sshll.u32 %s4775_s6, 4  ;;  %s310_s1 = int_to_ptr.hbm [resolvable:$true] %s309_s1 }
  0xbc   :  { %s287_s29 = sshll.u32 %s4636_s14, 4  ;;  %s3612_s2 = sshra.s32 %s286_s11, 4  ;;  %s288_s29 = int_to_ptr.vmem [resolvable:$true] %s287_s29  ;;  %s3613_s2 = int_to_ptr.hbm [resolvable:$true] %s3612_s2 }
  0xbd   :  { %s3614_s19 = scalar_lea.hbm %s3613_s2, 1  ;;  %s3616_s3 = scalar_lea.hbm %s4760_s20, 1 }
  0xbe   :  { %p3615_p11 = scmp.ne.s32.totalorder %s3613_s2, %s3614_s19  ;;  %p3617_p12 = scmp.lt.s32.totalorder %s3613_s2, %s4760_s20 }
  0xbf   :  { %p3618_p13 = scmp.lt.s32.totalorder %s3616_s3, %s3614_s19 }
  0xc1   :  { %p3619_p0 = por %p3618_p13, %p3617_p12 }
  0xc3   :  { %p3620_p1 = pnand %p3619_p0, %p3615_p11 }
  0xc5   :  { %3623 = shalt.err (!%p3620_p1)
}
  0xc6   :  { %290 = dma.hbm_to_vmem [thread:$0]  %s286_s11, 16, %s288_s29, [#allocation22]  }
  0xc7   :  { %s335_s30 = sshll.u32 %s4795_s25, 4  ;;  %s4637_s7 = smov [#allocation24]   ;;  %s336_s30 = int_to_ptr.hbm [resolvable:$true] %s335_s30 }
  0xc8   :  { %s311_s17 = sshll.u32 %s4637_s7, 4  ;;  %s3636_s15 = sshra.s32 %s310_s1, 4  ;;  %s312_s17 = int_to_ptr.vmem [resolvable:$true] %s311_s17  ;;  %s3637_s15 = int_to_ptr.hbm [resolvable:$true] %s3636_s15 }
  0xc9   :  { %s3638_s13 = scalar_lea.hbm %s3637_s15, 1  ;;  %s3640_s18 = scalar_lea.hbm %s4775_s6, 1 }
  0xca   :  { %p3639_p2 = scmp.ne.s32.totalorder %s3637_s15, %s3638_s13  ;;  %p3641_p3 = scmp.lt.s32.totalorder %s3637_s15, %s4775_s6 }
  0xcb   :  { %p3642_p4 = scmp.lt.s32.totalorder %s3640_s18, %s3638_s13 }
  0xcd   :  { %p3643_p5 = por %p3642_p4, %p3641_p3 }
  0xcf   :  { %p3644_p6 = pnand %p3643_p5, %p3639_p2 }
  0xd1   :  { %3647 = shalt.err (!%p3644_p6)
}
  0xd2   :  { %314 = dma.hbm_to_vmem [thread:$0]  %s310_s1, 16, %s312_s17, [#allocation25]  }
  0xd3   :  { %s4638_s20 = smov [#allocation27]   ;;  %s356_s0 = sshll.u32 %s4805_s5, 4  ;;  %s5010_s0 = int_to_ptr.hbm [resolvable:$true] %s356_s0 }
  0xd4   :  { %s337_s11 = sshll.u32 %s4638_s20, 4  ;;  %s3660_s23 = sshra.s32 %s336_s30, 4  ;;  %s338_s11 = int_to_ptr.vmem [resolvable:$true] %s337_s11  ;;  %s3661_s23 = int_to_ptr.hbm [resolvable:$true] %s3660_s23 }
  0xd5   :  { %s3662_s12 = scalar_lea.hbm %s3661_s23, 1  ;;  %s3664_s14 = scalar_lea.hbm %s4795_s25, 1 }
  0xd6   :  { %p3663_p7 = scmp.ne.s32.totalorder %s3661_s23, %s3662_s12  ;;  %p3665_p8 = scmp.lt.s32.totalorder %s3661_s23, %s4795_s25 }
  0xd7   :  { %p3666_p9 = scmp.lt.s32.totalorder %s3664_s14, %s3662_s12 }
  0xd9   :  { %p3667_p10 = por %p3666_p9, %p3665_p8 }
  0xdb   :  { %p3668_p11 = pnand %p3667_p10, %p3663_p7 }
  0xdd   :  { %3671 = shalt.err (!%p3668_p11)
}
  0xde   :  { %340 = dma.hbm_to_vmem [thread:$0]  %s336_s30, 16, %s338_s11, [#allocation28]  }
  0xdf   :  { %s380_s6 = sshll.u32 %s4815_s27, 4  ;;  %s4639_s29 = smov [#allocation30]   ;;  %s5015_s6 = int_to_ptr.hbm [resolvable:$true] %s380_s6 }
  0xe0   :  { %s358_s1 = sshll.u32 %s4639_s29, 4  ;;  %s3684_s2 = sshra.s32 %s5010_s0, 4  ;;  %s359_s1 = int_to_ptr.vmem [resolvable:$true] %s358_s1  ;;  %s3685_s2 = int_to_ptr.hbm [resolvable:$true] %s3684_s2 }
  0xe1   :  { %s3686_s19 = scalar_lea.hbm %s3685_s2, 32  ;;  %s3688_s25 = scalar_lea.hbm %s4805_s5, 32 }
  0xe2   :  { %p3687_p12 = scmp.ne.s32.totalorder %s3685_s2, %s3686_s19  ;;  %p3689_p13 = scmp.lt.s32.totalorder %s3685_s2, %s4805_s5 }
  0xe3   :  { %p3690_p0 = scmp.lt.s32.totalorder %s3688_s25, %s3686_s19 }
  0xe5   :  { %p3691_p1 = por %p3690_p0, %p3689_p13 }
  0xe7   :  { %p3692_p2 = pnand %p3691_p1, %p3687_p12 }
  0xe9   :  { %3695 = shalt.err (!%p3692_p2)
}
  0xea   :  { %364 = dma.hbm_to_vmem [thread:$0]  %s5010_s0, 512, %s359_s1, [#allocation31], %s4632_s21, %s4632_s21, %s4633_s26  }
  0xeb   :  { %s4640_s3 = smov [#allocation33]   ;;  %s407_s7 = sshll.u32 %s4830_s4, 4  ;;  %s408_s7 = int_to_ptr.hbm [resolvable:$true] %s407_s7 }
  0xec   :  { %s382_s30 = sshll.u32 %s4640_s3, 4  ;;  %s3708_s17 = sshra.s32 %s5015_s6, 4  ;;  %s383_s30 = int_to_ptr.vmem [resolvable:$true] %s382_s30  ;;  %s3709_s17 = int_to_ptr.hbm [resolvable:$true] %s3708_s17 }
  0xed   :  { %s3710_s5 = scalar_lea.hbm %s3709_s17, 32  ;;  %s3712_s15 = scalar_lea.hbm %s4815_s27, 32 }
  0xee   :  { %p3711_p3 = scmp.ne.s32.totalorder %s3709_s17, %s3710_s5  ;;  %p3713_p4 = scmp.lt.s32.totalorder %s3709_s17, %s4815_s27 }
  0xef   :  { %p3714_p5 = scmp.lt.s32.totalorder %s3712_s15, %s3710_s5 }
  0xf1   :  { %p3715_p6 = por %p3714_p5, %p3713_p4 }
  0xf3   :  { %p3716_p7 = pnand %p3715_p6, %p3711_p3 }
  0xf5   :  { %3719 = shalt.err (!%p3716_p7)
}
  0xf6   :  { %388 = dma.hbm_to_vmem [thread:$0]  %s5015_s6, 512, %s383_s30, [#allocation34], %s4632_s21, %s4632_s21, %s4633_s26  }
  0xf7   :  { %s428_s13 = sshll.u32 %s4840_s24, 4  ;;  %s4641_s18 = smov [#allocation36]   ;;  %s5033_s13 = int_to_ptr.hbm [resolvable:$true] %s428_s13 }
  0xf8   :  { %s409_s20 = sshll.u32 %s4641_s18, 4  ;;  %s3732_s11 = sshra.s32 %s408_s7, 4  ;;  %s410_s20 = int_to_ptr.vmem [resolvable:$true] %s409_s20  ;;  %s3733_s11 = int_to_ptr.hbm [resolvable:$true] %s3732_s11 }
  0xf9   :  { %s3734_s27 = scalar_lea.hbm %s3733_s11, 1  ;;  %s3736_s0 = scalar_lea.hbm %s4830_s4, 1 }
  0xfa   :  { %p3735_p8 = scmp.ne.s32.totalorder %s3733_s11, %s3734_s27  ;;  %p3737_p9 = scmp.lt.s32.totalorder %s3733_s11, %s4830_s4 }
  0xfb   :  { %p3738_p10 = scmp.lt.s32.totalorder %s3736_s0, %s3734_s27 }
  0xfd   :  { %p3739_p11 = por %p3738_p10, %p3737_p9 }
  0xff   :  { %p3740_p12 = pnand %p3739_p11, %p3735_p8 }
 0x101   :  { %3743 = shalt.err (!%p3740_p12)
}
 0x102   :  { %412 = dma.hbm_to_vmem [thread:$0]  %s408_s7, 16, %s410_s20, [#allocation37]  }
 0x103   :  { %s4642_s23 = smov [#allocation39]   ;;  %s452_s14 = sshll.u32 %s4850_s8, 4  ;;  %s5038_s14 = int_to_ptr.hbm [resolvable:$true] %s452_s14 }
 0x104   :  { %s430_s12 = sshll.u32 %s4642_s23, 4  ;;  %s3756_s6 = sshra.s32 %s5033_s13, 4  ;;  %s431_s12 = int_to_ptr.vmem [resolvable:$true] %s430_s12  ;;  %s3757_s6 = int_to_ptr.hbm [resolvable:$true] %s3756_s6 }
 0x105   :  { %s3758_s29 = scalar_lea.hbm %s3757_s6, 32  ;;  %s3760_s4 = scalar_lea.hbm %s4840_s24, 32 }
 0x106   :  { %p3759_p13 = scmp.ne.s32.totalorder %s3757_s6, %s3758_s29  ;;  %p3761_p0 = scmp.lt.s32.totalorder %s3757_s6, %s4840_s24 }
 0x107   :  { %p3762_p1 = scmp.lt.s32.totalorder %s3760_s4, %s3758_s29 }
 0x109   :  { %p3763_p2 = por %p3762_p1, %p3761_p0 }
 0x10b   :  { %p3764_p3 = pnand %p3763_p2, %p3759_p13 }
 0x10d   :  { %3767 = shalt.err (!%p3764_p3)
}
 0x10e   :  { %s5733_s1 = sld [smem:[#allocation115_spill]]  ;;  %s4643_s19 = smov [#allocation42]  }
 0x10f   :  { %436 = dma.hbm_to_vmem [thread:$0]  %s5033_s13, 512, %s431_s12, [#allocation40], %s4632_s21, %s4632_s21, %s4633_s26  }
 0x110   :  { %s454_s25 = sshll.u32 %s4643_s19, 4  ;;  %s3780_s3 = sshra.s32 %s5038_s14, 4  ;;  %s455_s25 = int_to_ptr.vmem [resolvable:$true] %s454_s25  ;;  %s3781_s3 = int_to_ptr.hbm [resolvable:$true] %s3780_s3 }
 0x111   :  { %s3782_s24 = scalar_lea.hbm %s3781_s3, 32  ;;  %s3784_s30 = scalar_lea.hbm %s4850_s8, 32 }
 0x112   :  { %p3783_p4 = scmp.ne.s32.totalorder %s3781_s3, %s3782_s24  ;;  %p3785_p5 = scmp.lt.s32.totalorder %s3781_s3, %s4850_s8 }
 0x113   :  { %p3786_p6 = scmp.lt.s32.totalorder %s3784_s30, %s3782_s24 }
 0x114   :  { %s479_s2 = sshll.u32 %s5733_s1, 4  ;;  %s480_s2 = int_to_ptr.hbm [resolvable:$true] %s479_s2 }
 0x115   :  { %p3787_p7 = por %p3786_p6, %p3785_p5 }
 0x117   :  { %p3788_p8 = pnand %p3787_p7, %p3783_p4 }
 0x119   :  { %3791 = shalt.err (!%p3788_p8)
}
 0x11a   :  { %s5734_s7 = sld [smem:[#allocation117_spill]]  ;;  %s4644_s17 = smov [#allocation45]  }
 0x11b   :  { %460 = dma.hbm_to_vmem [thread:$0]  %s5038_s14, 512, %s455_s25, [#allocation43], %s4632_s21, %s4632_s21, %s4633_s26  }
 0x11c   :  { %s481_s5 = sshll.u32 %s4644_s17, 4  ;;  %s3804_s13 = sshra.s32 %s480_s2, 4  ;;  %s482_s5 = int_to_ptr.vmem [resolvable:$true] %s481_s5  ;;  %s3805_s13 = int_to_ptr.hbm [resolvable:$true] %s3804_s13 }
 0x11d   :  { %s3806_s8 = scalar_lea.hbm %s3805_s13, 1  ;;  %s3808_s18 = scalar_lea.hbm %s5733_s1, 1 }
 0x11e   :  { %p3807_p9 = scmp.ne.s32.totalorder %s3805_s13, %s3806_s8  ;;  %p3809_p10 = scmp.lt.s32.totalorder %s3805_s13, %s5733_s1 }
 0x11f   :  { %p3810_p11 = scmp.lt.s32.totalorder %s3808_s18, %s3806_s8 }
 0x120   :  { %s501_s15 = sshll.u32 %s5734_s7, 4  ;;  %s502_s15 = int_to_ptr.hbm [resolvable:$true] %s501_s15 }
 0x121   :  { %p3811_p12 = por %p3810_p11, %p3809_p10 }
 0x123   :  { %p3812_p13 = pnand %p3811_p12, %p3807_p9 }
 0x125   :  { %3815 = shalt.err (!%p3812_p13)
}
 0x126   :  { %484 = dma.hbm_to_vmem [thread:$0]  %s480_s2, 16, %s482_s5, [#allocation46]  }
 0x127   :  { %s5735_s20 = sld [smem:[#allocation119_spill]]  ;;  %s4645_s26 = smov [#allocation48]  }
 0x128   :  { %s503_s11 = sshll.u32 %s4645_s26, 4  ;;  %s3828_s27 = sshra.s32 %s502_s15, 4  ;;  %s504_s11 = int_to_ptr.vmem [resolvable:$true] %s503_s11  ;;  %s3829_s27 = int_to_ptr.hbm [resolvable:$true] %s3828_s27 }
 0x129   :  { %s3830_s0 = scalar_lea.hbm %s3829_s27, 1  ;;  %s3832_s23 = scalar_lea.hbm %s5734_s7, 1 }
 0x12a   :  { %p3831_p0 = scmp.ne.s32.totalorder %s3829_s27, %s3830_s0  ;;  %p3833_p1 = scmp.lt.s32.totalorder %s3829_s27, %s5734_s7 }
 0x12b   :  { %p3834_p2 = scmp.lt.s32.totalorder %s3832_s23, %s3830_s0 }
 0x12d   :  { %s523_s21 = sshll.u32 %s5735_s20, 4  ;;  %p3835_p3 = por %p3834_p2, %p3833_p1  ;;  %s524_s21 = int_to_ptr.hbm [resolvable:$true] %s523_s21 }
 0x12f   :  { %p3836_p4 = pnand %p3835_p3, %p3831_p0 }
 0x131   :  { %3839 = shalt.err (!%p3836_p4)
}
 0x132   :  { %506 = dma.hbm_to_vmem [thread:$0]  %s502_s15, 16, %s504_s11, [#allocation49]  }
 0x133   :  { %s4646_s12 = smov [#allocation51]   ;;  %s549_s6 = sshll.u32 %s4903_s9, 4  ;;  %s550_s6 = int_to_ptr.hbm [resolvable:$true] %s549_s6 }
 0x134   :  { %s525_s14 = sshll.u32 %s4646_s12, 4  ;;  %s3852_s29 = sshra.s32 %s524_s21, 4  ;;  %s526_s14 = int_to_ptr.vmem [resolvable:$true] %s525_s14  ;;  %s3853_s29 = int_to_ptr.hbm [resolvable:$true] %s3852_s29 }
 0x135   :  { %s3854_s4 = scalar_lea.hbm %s3853_s29, 1  ;;  %s3856_s1 = scalar_lea.hbm %s5735_s20, 1 }
 0x136   :  { %p3855_p5 = scmp.ne.s32.totalorder %s3853_s29, %s3854_s4  ;;  %p3857_p6 = scmp.lt.s32.totalorder %s3853_s29, %s5735_s20 }
 0x137   :  { %p3858_p7 = scmp.lt.s32.totalorder %s3856_s1, %s3854_s4 }
 0x139   :  { %p3859_p8 = por %p3858_p7, %p3857_p6 }
 0x13b   :  { %p3860_p9 = pnand %p3859_p8, %p3855_p5 }
 0x13d   :  { %3863 = shalt.err (!%p3860_p9)
}
 0x13e   :  { %528 = dma.hbm_to_vmem [thread:$0]  %s524_s21, 16, %s526_s14, [#allocation52]  }
 0x13f   :  { %s5736_s2 = sld [smem:[#allocation123_spill]]  ;;  %s4647_s25 = smov [#allocation54]  }
 0x140   :  { %s551_s3 = sshll.u32 %s4647_s25, 4  ;;  %s3876_s24 = sshra.s32 %s550_s6, 4  ;;  %s552_s3 = int_to_ptr.vmem [resolvable:$true] %s551_s3  ;;  %s3877_s24 = int_to_ptr.hbm [resolvable:$true] %s3876_s24 }
 0x141   :  { %s3878_s30 = scalar_lea.hbm %s3877_s24, 8  ;;  %s3880_s7 = scalar_lea.hbm %s4903_s9, 8 }
 0x142   :  { %p3879_p10 = scmp.ne.s32.totalorder %s3877_s24, %s3878_s30  ;;  %p3881_p11 = scmp.lt.s32.totalorder %s3877_s24, %s4903_s9 }
 0x143   :  { %p3882_p12 = scmp.lt.s32.totalorder %s3880_s7, %s3878_s30 }
 0x145   :  { %s571_s19 = sshll.u32 %s5736_s2, 4  ;;  %p3883_p13 = por %p3882_p12, %p3881_p11  ;;  %s572_s19 = int_to_ptr.hbm [resolvable:$true] %s571_s19 }
 0x147   :  { %p3884_p0 = pnand %p3883_p13, %p3879_p10 }
 0x149   :  { %3887 = shalt.err (!%p3884_p0)
}
 0x14a   :  { %554 = dma.hbm_to_vmem [thread:$0]  %s550_s6, 128, %s552_s3, [#allocation55]  }
 0x14b   :  { %s5737_s17 = sld [smem:[#allocation125_spill]]  ;;  %s4648_s5 = smov [#allocation57]  }
 0x14c   :  { %s573_s15 = sshll.u32 %s4648_s5, 4  ;;  %s3900_s8 = sshra.s32 %s572_s19, 4  ;;  %s574_s15 = int_to_ptr.vmem [resolvable:$true] %s573_s15  ;;  %s3901_s8 = int_to_ptr.hbm [resolvable:$true] %s3900_s8 }
 0x14d   :  { %s3902_s18 = scalar_lea.hbm %s3901_s8, 4  ;;  %s3904_s20 = scalar_lea.hbm %s5736_s2, 4 }
 0x14e   :  { %p3903_p1 = scmp.ne.s32.totalorder %s3901_s8, %s3902_s18  ;;  %p3905_p2 = scmp.lt.s32.totalorder %s3901_s8, %s5736_s2 }
 0x14f   :  { %p3906_p3 = scmp.lt.s32.totalorder %s3904_s20, %s3902_s18 }
 0x151   :  { %s593_s13 = sshll.u32 %s5737_s17, 4  ;;  %p3907_p4 = por %p3906_p3, %p3905_p2  ;;  %s594_s13 = int_to_ptr.hbm [resolvable:$true] %s593_s13 }
 0x153   :  { %p3908_p5 = pnand %p3907_p4, %p3903_p1 }
 0x155   :  { %3911 = shalt.err (!%p3908_p5)
}
 0x156   :  { %576 = dma.hbm_to_vmem [thread:$0]  %s572_s19, 64, %s574_s15, [#allocation58]  }
 0x157   :  { %s5738_s9 = sld [smem:[#allocation131_spill]]  ;;  %s4649_s26 = smov [#allocation60]  }
 0x158   :  { %s595_s11 = sshll.u32 %s4649_s26, 4  ;;  %s3924_s27 = sshra.s32 %s594_s13, 4  ;;  %s596_s11 = int_to_ptr.vmem [resolvable:$true] %s595_s11  ;;  %s3925_s27 = int_to_ptr.hbm [resolvable:$true] %s3924_s27 }
 0x159   :  { %s3926_s0 = scalar_lea.hbm %s3925_s27, 4  ;;  %s3928_s23 = scalar_lea.hbm %s5737_s17, 4 }
 0x15a   :  { %p3927_p6 = scmp.ne.s32.totalorder %s3925_s27, %s3926_s0  ;;  %p3929_p7 = scmp.lt.s32.totalorder %s3925_s27, %s5737_s17 }
 0x15b   :  { %p3930_p8 = scmp.lt.s32.totalorder %s3928_s23, %s3926_s0 }
 0x15d   :  { %s623_s21 = sshll.u32 %s5738_s9, 4  ;;  %p3931_p9 = por %p3930_p8, %p3929_p7  ;;  %s624_s21 = int_to_ptr.hbm [resolvable:$true] %s623_s21 }
 0x15f   :  { %p3932_p10 = pnand %p3931_p9, %p3927_p6 }
 0x161   :  { %3935 = shalt.err (!%p3932_p10)
}
 0x162   :  { %598 = dma.hbm_to_vmem [thread:$0]  %s594_s13, 64, %s596_s11, [#allocation61]  }
 0x163   :  { %s5739_s12 = sld [smem:[#allocation93_spill]]  ;;  %s4650_s14 = smov [#allocation63]  }
 0x164   :  { %s625_s6 = sshll.u32 %s4650_s14, 4  ;;  %s3948_s4 = sshra.s32 %s624_s21, 4  ;;  %s626_s6 = int_to_ptr.vmem [resolvable:$true] %s625_s6  ;;  %s3949_s4 = int_to_ptr.hbm [resolvable:$true] %s3948_s4 }
 0x165   :  { %s3950_s1 = scalar_lea.hbm %s3949_s4, 4  ;;  %s3952_s2 = scalar_lea.hbm %s5738_s9, 4 }
 0x166   :  { %p3951_p11 = scmp.ne.s32.totalorder %s3949_s4, %s3950_s1  ;;  %p3953_p12 = scmp.lt.s32.totalorder %s3949_s4, %s5738_s9 }
 0x167   :  { %p3954_p13 = scmp.lt.s32.totalorder %s3952_s2, %s3950_s1 }
 0x169   :  { %s156_s29 = sshll.u32 %s5739_s12, 4  ;;  %p3955_p0 = por %p3954_p13, %p3953_p12  ;;  %s157_s29 = int_to_ptr.hbm [resolvable:$true] %s156_s29 }
 0x16b   :  { %p3956_p1 = pnand %p3955_p0, %p3951_p11 }
 0x16d   :  { %3959 = shalt.err (!%p3956_p1)
}
 0x16e   :  { %628 = dma.hbm_to_vmem [thread:$0]  %s624_s21, 64, %s626_s6, [#allocation64]  }
 0x16f   :  { %s5740_s19 = sld [smem:[#allocation94_spill]]  ;;  %s4651_s3 = smov [#allocation3]  }
 0x170   :  { %s158_s24 = sshll.u32 %s4651_s3, 4  ;;  %s3972_s30 = sshra.s32 %s157_s29, 4  ;;  %s159_s24 = int_to_ptr.vmem [resolvable:$true] %s158_s24  ;;  %s3973_s30 = int_to_ptr.hbm [resolvable:$true] %s3972_s30 }
 0x171   :  { %s3974_s7 = scalar_lea.hbm %s3973_s30, 8  ;;  %s3976_s17 = scalar_lea.hbm %s5739_s12, 8 }
 0x172   :  { %p3975_p2 = scmp.ne.s32.totalorder %s3973_s30, %s3974_s7  ;;  %p3977_p3 = scmp.lt.s32.totalorder %s3973_s30, %s5739_s12 }
 0x173   :  { %p3978_p4 = scmp.lt.s32.totalorder %s3976_s17, %s3974_s7 }
 0x175   :  { %s178_s25 = sshll.u32 %s5740_s19, 4  ;;  %p3979_p5 = por %p3978_p4, %p3977_p3  ;;  %s179_s25 = int_to_ptr.hbm [resolvable:$true] %s178_s25 }
 0x177   :  { %p3980_p6 = pnand %p3979_p5, %p3975_p2 }
 0x179   :  { %3983 = shalt.err (!%p3980_p6)
}
 0x17a   :  { %161 = dma.hbm_to_vmem [thread:$0]  %s157_s29, 128, %s159_s24, [#allocation4]  }
 0x17b   :  { %s5741_s5 = sld [smem:[#allocation96_spill]]  ;;  %s4652_s15 = smov [#allocation8]  }
 0x17c   :  { %s180_s13 = sshll.u32 %s4652_s15, 4  ;;  %s3996_s18 = sshra.s32 %s179_s25, 4  ;;  %s181_s13 = int_to_ptr.vmem [resolvable:$true] %s180_s13  ;;  %s3997_s18 = int_to_ptr.hbm [resolvable:$true] %s3996_s18 }
 0x17d   :  { %s3998_s20 = scalar_lea.hbm %s3997_s18, 4  ;;  %s4000_s9 = scalar_lea.hbm %s5740_s19, 4 }
 0x17e   :  { %p3999_p7 = scmp.ne.s32.totalorder %s3997_s18, %s3998_s20  ;;  %p4001_p8 = scmp.lt.s32.totalorder %s3997_s18, %s5740_s19 }
 0x17f   :  { %p4002_p9 = scmp.lt.s32.totalorder %s4000_s9, %s3998_s20 }
 0x181   :  { %s202_s8 = sshll.u32 %s5741_s5, 4  ;;  %p4003_p10 = por %p4002_p9, %p4001_p8  ;;  %s203_s8 = int_to_ptr.hbm [resolvable:$true] %s202_s8 }
 0x183   :  { %p4004_p11 = pnand %p4003_p10, %p3999_p7 }
 0x185   :  { %4007 = shalt.err (!%p4004_p11)
}
 0x186   :  { %183 = dma.hbm_to_vmem [thread:$0]  %s179_s25, 64, %s181_s13, [#allocation7]  }
 0x187   :  { %s5742_s21 = sld [smem:[#allocation97_spill]]  ;;  %s4653_s11 = smov [#allocation11]  }
 0x188   :  { %s204_s27 = sshll.u32 %s4653_s11, 4  ;;  %s4020_s0 = sshra.s32 %s203_s8, 4  ;;  %s205_s27 = int_to_ptr.vmem [resolvable:$true] %s204_s27  ;;  %s4021_s0 = int_to_ptr.hbm [resolvable:$true] %s4020_s0 }
 0x189   :  { %s4022_s23 = scalar_lea.hbm %s4021_s0, 1  ;;  %s4024_s12 = scalar_lea.hbm %s5741_s5, 1 }
 0x18a   :  { %p4023_p12 = scmp.ne.s32.totalorder %s4021_s0, %s4022_s23  ;;  %p4025_p13 = scmp.lt.s32.totalorder %s4021_s0, %s5741_s5 }
 0x18b   :  { %p4026_p0 = scmp.lt.s32.totalorder %s4024_s12, %s4022_s23 }
 0x18d   :  { %s226_s26 = sshll.u32 %s5742_s21, 4  ;;  %p4027_p1 = por %p4026_p0, %p4025_p13  ;;  %s227_s26 = int_to_ptr.hbm [resolvable:$true] %s226_s26 }
 0x18f   :  { %p4028_p2 = pnand %p4027_p1, %p4023_p12 }
 0x191   :  { %4031 = shalt.err (!%p4028_p2)
}
 0x192   :  { %207 = dma.hbm_to_vmem [thread:$0]  %s203_s8, 16, %s205_s27, [#allocation10]  }
 0x193   :  { %s5743_s14 = sld [smem:[#allocation98_spill]]  ;;  %s4654_s6 = smov [#allocation14]  }
 0x194   :  { %s228_s29 = sshll.u32 %s4654_s6, 4  ;;  %s4044_s1 = sshra.s32 %s227_s26, 4  ;;  %s229_s29 = int_to_ptr.vmem [resolvable:$true] %s228_s29  ;;  %s4045_s1 = int_to_ptr.hbm [resolvable:$true] %s4044_s1 }
 0x195   :  { %s4046_s2 = scalar_lea.hbm %s4045_s1, 1  ;;  %s4048_s19 = scalar_lea.hbm %s5742_s21, 1 }
 0x196   :  { %p4047_p3 = scmp.ne.s32.totalorder %s4045_s1, %s4046_s2  ;;  %p4049_p4 = scmp.lt.s32.totalorder %s4045_s1, %s5742_s21 }
 0x197   :  { %p4050_p5 = scmp.lt.s32.totalorder %s4048_s19, %s4046_s2 }
 0x199   :  { %s248_s4 = sshll.u32 %s5743_s14, 4  ;;  %p4051_p6 = por %p4050_p5, %p4049_p4  ;;  %s249_s4 = int_to_ptr.hbm [resolvable:$true] %s248_s4 }
 0x19b   :  { %p4052_p7 = pnand %p4051_p6, %p4047_p3 }
 0x19d   :  { %4055 = shalt.err (!%p4052_p7)
}
 0x19e   :  { %231 = dma.hbm_to_vmem [thread:$0]  %s227_s26, 16, %s229_s29, [#allocation13]  }
 0x19f   :  { %s5744_s25 = sld [smem:[#allocation101_spill]]  ;;  %s4655_s24 = smov [#allocation17]  }
 0x1a0   :  { %s250_s30 = sshll.u32 %s4655_s24, 4  ;;  %s4068_s7 = sshra.s32 %s249_s4, 4  ;;  %s251_s30 = int_to_ptr.vmem [resolvable:$true] %s250_s30  ;;  %s4069_s7 = int_to_ptr.hbm [resolvable:$true] %s4068_s7 }
 0x1a1   :  { %s4070_s17 = scalar_lea.hbm %s4069_s7, 1  ;;  %s4072_s5 = scalar_lea.hbm %s5743_s14, 1 }
 0x1a2   :  { %p4071_p8 = scmp.ne.s32.totalorder %s4069_s7, %s4070_s17  ;;  %p4073_p9 = scmp.lt.s32.totalorder %s4069_s7, %s5743_s14 }
 0x1a3   :  { %p4074_p10 = scmp.lt.s32.totalorder %s4072_s5, %s4070_s17 }
 0x1a5   :  { %s274_s3 = sshll.u32 %s5744_s25, 4  ;;  %p4075_p11 = por %p4074_p10, %p4073_p9  ;;  %s275_s3 = int_to_ptr.hbm [resolvable:$true] %s274_s3 }
 0x1a7   :  { %p4076_p12 = pnand %p4075_p11, %p4071_p8 }
 0x1a9   :  { %4079 = shalt.err (!%p4076_p12)
}
 0x1aa   :  { %253 = dma.hbm_to_vmem [thread:$0]  %s249_s4, 16, %s251_s30, [#allocation16]  }
 0x1ab   :  { %s5745_s15 = sld [smem:[#allocation102_spill]]  ;;  %s4656_s13 = smov [#allocation20]  }
 0x1ac   :  { %s276_s8 = sshll.u32 %s4656_s13, 4  ;;  %s4092_s20 = sshra.s32 %s275_s3, 4  ;;  %s277_s8 = int_to_ptr.vmem [resolvable:$true] %s276_s8  ;;  %s4093_s20 = int_to_ptr.hbm [resolvable:$true] %s4092_s20 }
 0x1ad   :  { %s4094_s9 = scalar_lea.hbm %s4093_s20, 1  ;;  %s4096_s21 = scalar_lea.hbm %s5744_s25, 1 }
 0x1ae   :  { %p4095_p13 = scmp.ne.s32.totalorder %s4093_s20, %s4094_s9  ;;  %p4097_p0 = scmp.lt.s32.totalorder %s4093_s20, %s5744_s25 }
 0x1af   :  { %p4098_p1 = scmp.lt.s32.totalorder %s4096_s21, %s4094_s9 }
 0x1b1   :  { %s296_s18 = sshll.u32 %s5745_s15, 4  ;;  %p4099_p2 = por %p4098_p1, %p4097_p0  ;;  %s297_s18 = int_to_ptr.hbm [resolvable:$true] %s296_s18 }
 0x1b3   :  { %p4100_p3 = pnand %p4099_p2, %p4095_p13 }
 0x1b5   :  { %4103 = shalt.err (!%p4100_p3)
}
 0x1b6   :  { %279 = dma.hbm_to_vmem [thread:$0]  %s275_s3, 16, %s277_s8, [#allocation19]  }
 0x1b7   :  { %s5746_s26 = sld [smem:[#allocation106_spill]]  ;;  %s4657_s27 = smov [#allocation23]  }
 0x1b8   :  { %s298_s0 = sshll.u32 %s4657_s27, 4  ;;  %s4116_s23 = sshra.s32 %s297_s18, 4  ;;  %s299_s0 = int_to_ptr.vmem [resolvable:$true] %s298_s0  ;;  %s4117_s23 = int_to_ptr.hbm [resolvable:$true] %s4116_s23 }
 0x1b9   :  { %s4118_s12 = scalar_lea.hbm %s4117_s23, 1  ;;  %s4120_s14 = scalar_lea.hbm %s5745_s15, 1 }
 0x1ba   :  { %p4119_p4 = scmp.ne.s32.totalorder %s4117_s23, %s4118_s12  ;;  %p4121_p5 = scmp.lt.s32.totalorder %s4117_s23, %s5745_s15 }
 0x1bb   :  { %p4122_p6 = scmp.lt.s32.totalorder %s4120_s14, %s4118_s12 }
 0x1bd   :  { %s324_s11 = sshll.u32 %s5746_s26, 4  ;;  %p4123_p7 = por %p4122_p6, %p4121_p5  ;;  %s325_s11 = int_to_ptr.hbm [resolvable:$true] %s324_s11 }
 0x1bf   :  { %p4124_p8 = pnand %p4123_p7, %p4119_p4 }
 0x1c1   :  { %4127 = shalt.err (!%p4124_p8)
}
 0x1c2   :  { %301 = dma.hbm_to_vmem [thread:$0]  %s297_s18, 16, %s299_s0, [#allocation22]  }
 0x1c3   :  { %s5747_s6 = sld [smem:[#allocation107_spill]]  ;;  %s4658_s29 = smov [#allocation26]  }
 0x1c4   :  { %s326_s4 = sshll.u32 %s4658_s29, 4  ;;  %s4140_s2 = sshra.s32 %s325_s11, 4  ;;  %s327_s4 = int_to_ptr.vmem [resolvable:$true] %s326_s4  ;;  %s4141_s2 = int_to_ptr.hbm [resolvable:$true] %s4140_s2 }
 0x1c5   :  { %s4142_s19 = scalar_lea.hbm %s4141_s2, 1  ;;  %s4144_s25 = scalar_lea.hbm %s5746_s26, 1 }
 0x1c6   :  { %p4143_p9 = scmp.ne.s32.totalorder %s4141_s2, %s4142_s19  ;;  %p4145_p10 = scmp.lt.s32.totalorder %s4141_s2, %s5746_s26 }
 0x1c7   :  { %p4146_p11 = scmp.lt.s32.totalorder %s4144_s25, %s4142_s19 }
 0x1c9   :  { %s346_s1 = sshll.u32 %s5747_s6, 4  ;;  %p4147_p12 = por %p4146_p11, %p4145_p10  ;;  %s347_s1 = int_to_ptr.hbm [resolvable:$true] %s346_s1 }
 0x1cb   :  { %p4148_p13 = pnand %p4147_p12, %p4143_p9 }
 0x1cd   :  { %4151 = shalt.err (!%p4148_p13)
}
 0x1ce   :  { %329 = dma.hbm_to_vmem [thread:$0]  %s325_s11, 16, %s327_s4, [#allocation25]  }
 0x1cf   :  { %s5748_s3 = sld [smem:[#allocation108_spill]]  ;;  %s4659_s30 = smov [#allocation29]  }
 0x1d0   :  { %s348_s7 = sshll.u32 %s4659_s30, 4  ;;  %s4164_s17 = sshra.s32 %s347_s1, 4  ;;  %s349_s7 = int_to_ptr.vmem [resolvable:$true] %s348_s7  ;;  %s4165_s17 = int_to_ptr.hbm [resolvable:$true] %s4164_s17 }
 0x1d1   :  { %s4166_s5 = scalar_lea.hbm %s4165_s17, 1  ;;  %s4168_s15 = scalar_lea.hbm %s5747_s6, 1 }
 0x1d2   :  { %p4167_p0 = scmp.ne.s32.totalorder %s4165_s17, %s4166_s5  ;;  %p4169_p1 = scmp.lt.s32.totalorder %s4165_s17, %s5747_s6 }
 0x1d3   :  { %p4170_p2 = scmp.lt.s32.totalorder %s4168_s15, %s4166_s5 }
 0x1d5   :  { %s370_s24 = sshll.u32 %s5748_s3, 4  ;;  %p4171_p3 = por %p4170_p2, %p4169_p1  ;;  %s371_s24 = int_to_ptr.hbm [resolvable:$true] %s370_s24 }
 0x1d7   :  { %p4172_p4 = pnand %p4171_p3, %p4167_p0 }
 0x1d9   :  { %4175 = shalt.err (!%p4172_p4)
}
 0x1da   :  { %351 = dma.hbm_to_vmem [thread:$0]  %s347_s1, 16, %s349_s7, [#allocation28]  }
 0x1db   :  { %s5749_s13 = sld [smem:[#allocation110_spill]]  ;;  %s4660_s8 = smov [#allocation32]  }
 0x1dc   :  { %s372_s18 = sshll.u32 %s4660_s8, 4  ;;  %s4188_s9 = sshra.s32 %s371_s24, 4  ;;  %s373_s18 = int_to_ptr.vmem [resolvable:$true] %s372_s18  ;;  %s4189_s9 = int_to_ptr.hbm [resolvable:$true] %s4188_s9 }
 0x1dd   :  { %s4190_s21 = scalar_lea.hbm %s4189_s9, 1  ;;  %s4192_s26 = scalar_lea.hbm %s5748_s3, 1 }
 0x1de   :  { %p4191_p5 = scmp.ne.s32.totalorder %s4189_s9, %s4190_s21  ;;  %p4193_p6 = scmp.lt.s32.totalorder %s4189_s9, %s5748_s3 }
 0x1df   :  { %p4194_p7 = scmp.lt.s32.totalorder %s4192_s26, %s4190_s21 }
 0x1e1   :  { %s396_s20 = sshll.u32 %s5749_s13, 4  ;;  %p4195_p8 = por %p4194_p7, %p4193_p6  ;;  %s397_s20 = int_to_ptr.hbm [resolvable:$true] %s396_s20 }
 0x1e3   :  { %p4196_p9 = pnand %p4195_p8, %p4191_p5 }
 0x1e5   :  { %4199 = shalt.err (!%p4196_p9)
}
 0x1e6   :  { %375 = dma.hbm_to_vmem [thread:$0]  %s371_s24, 16, %s373_s18, [#allocation31]  }
 0x1e7   :  { %s5750_s11 = sld [smem:[#allocation111_spill]]  ;;  %s4661_s0 = smov [#allocation35]  }
 0x1e8   :  { %s398_s23 = sshll.u32 %s4661_s0, 4  ;;  %s4212_s12 = sshra.s32 %s397_s20, 4  ;;  %s399_s23 = int_to_ptr.vmem [resolvable:$true] %s398_s23  ;;  %s4213_s12 = int_to_ptr.hbm [resolvable:$true] %s4212_s12 }
 0x1e9   :  { %s4214_s14 = scalar_lea.hbm %s4213_s12, 1  ;;  %s4216_s6 = scalar_lea.hbm %s5749_s13, 1 }
 0x1ea   :  { %p4215_p10 = scmp.ne.s32.totalorder %s4213_s12, %s4214_s14  ;;  %p4217_p11 = scmp.lt.s32.totalorder %s4213_s12, %s5749_s13 }
 0x1eb   :  { %p4218_p12 = scmp.lt.s32.totalorder %s4216_s6, %s4214_s14 }
 0x1ed   :  { %s418_s27 = sshll.u32 %s5750_s11, 4  ;;  %p4219_p13 = por %p4218_p12, %p4217_p11  ;;  %s419_s27 = int_to_ptr.hbm [resolvable:$true] %s418_s27 }
 0x1ef   :  { %p4220_p0 = pnand %p4219_p13, %p4215_p10 }
 0x1f1   :  { %4223 = shalt.err (!%p4220_p0)
}
 0x1f2   :  { %401 = dma.hbm_to_vmem [thread:$0]  %s397_s20, 16, %s399_s23, [#allocation34]  }
 0x1f3   :  { %s5751_s29 = sld [smem:[#allocation112_spill]]  ;;  %s4662_s4 = smov [#allocation38]  }
 0x1f4   :  { %s420_s1 = sshll.u32 %s4662_s4, 4  ;;  %s4236_s19 = sshra.s32 %s419_s27, 4  ;;  %s421_s1 = int_to_ptr.vmem [resolvable:$true] %s420_s1  ;;  %s4237_s19 = int_to_ptr.hbm [resolvable:$true] %s4236_s19 }
 0x1f5   :  { %s4238_s25 = scalar_lea.hbm %s4237_s19, 1  ;;  %s4240_s3 = scalar_lea.hbm %s5750_s11, 1 }
 0x1f6   :  { %p4239_p1 = scmp.ne.s32.totalorder %s4237_s19, %s4238_s25  ;;  %p4241_p2 = scmp.lt.s32.totalorder %s4237_s19, %s5750_s11 }
 0x1f7   :  { %p4242_p3 = scmp.lt.s32.totalorder %s4240_s3, %s4238_s25 }
 0x1f9   :  { %s442_s2 = sshll.u32 %s5751_s29, 4  ;;  %p4243_p4 = por %p4242_p3, %p4241_p2  ;;  %s443_s2 = int_to_ptr.hbm [resolvable:$true] %s442_s2 }
 0x1fb   :  { %p4244_p5 = pnand %p4243_p4, %p4239_p1 }
 0x1fd   :  { %4247 = shalt.err (!%p4244_p5)
}
 0x1fe   :  { %423 = dma.hbm_to_vmem [thread:$0]  %s419_s27, 16, %s421_s1, [#allocation37]  }
 0x1ff   :  { %s5752_s24 = sld [smem:[#allocation114_spill]]  ;;  %s4663_s7 = smov [#allocation41]  }
 0x200   :  { %s444_s17 = sshll.u32 %s4663_s7, 4  ;;  %s4260_s5 = sshra.s32 %s443_s2, 4  ;;  %s445_s17 = int_to_ptr.vmem [resolvable:$true] %s444_s17  ;;  %s4261_s5 = int_to_ptr.hbm [resolvable:$true] %s4260_s5 }
 0x201   :  { %s4262_s15 = scalar_lea.hbm %s4261_s5, 1  ;;  %s4264_s13 = scalar_lea.hbm %s5751_s29, 1 }
 0x202   :  { %p4263_p6 = scmp.ne.s32.totalorder %s4261_s5, %s4262_s15  ;;  %p4265_p7 = scmp.lt.s32.totalorder %s4261_s5, %s5751_s29 }
 0x203   :  { %p4266_p8 = scmp.lt.s32.totalorder %s4264_s13, %s4262_s15 }
 0x205   :  { %s468_s30 = sshll.u32 %s5752_s24, 4  ;;  %p4267_p9 = por %p4266_p8, %p4265_p7  ;;  %s469_s30 = int_to_ptr.hbm [resolvable:$true] %s468_s30 }
 0x207   :  { %p4268_p10 = pnand %p4267_p9, %p4263_p6 }
 0x209   :  { %4271 = shalt.err (!%p4268_p10)
}
 0x20a   :  { %447 = dma.hbm_to_vmem [thread:$0]  %s443_s2, 16, %s445_s17, [#allocation40]  }
 0x20b   :  { %s5753_s8 = sld [smem:[#allocation116_spill]]  ;;  %s4664_s18 = smov [#allocation44]  }
 0x20c   :  { %s470_s20 = sshll.u32 %s4664_s18, 4  ;;  %s4284_s21 = sshra.s32 %s469_s30, 4  ;;  %s471_s20 = int_to_ptr.vmem [resolvable:$true] %s470_s20  ;;  %s4285_s21 = int_to_ptr.hbm [resolvable:$true] %s4284_s21 }
 0x20d   :  { %s4286_s26 = scalar_lea.hbm %s4285_s21, 1  ;;  %s4288_s11 = scalar_lea.hbm %s5752_s24, 1 }
 0x20e   :  { %p4287_p11 = scmp.ne.s32.totalorder %s4285_s21, %s4286_s26  ;;  %p4289_p12 = scmp.lt.s32.totalorder %s4285_s21, %s5752_s24 }
 0x20f   :  { %p4290_p13 = scmp.lt.s32.totalorder %s4288_s11, %s4286_s26 }
 0x211   :  { %s490_s9 = sshll.u32 %s5753_s8, 4  ;;  %p4291_p0 = por %p4290_p13, %p4289_p12  ;;  %s491_s9 = int_to_ptr.hbm [resolvable:$true] %s490_s9 }
 0x213   :  { %p4292_p1 = pnand %p4291_p0, %p4287_p11 }
 0x215   :  { %4295 = shalt.err (!%p4292_p1)
}
 0x216   :  { %473 = dma.hbm_to_vmem [thread:$0]  %s469_s30, 16, %s471_s20, [#allocation43]  }
 0x217   :  { %s5754_s27 = sld [smem:[#allocation118_spill]]  ;;  %s4665_s23 = smov [#allocation47]  }
 0x218   :  { %s492_s12 = sshll.u32 %s4665_s23, 4  ;;  %s4308_s14 = sshra.s32 %s491_s9, 4  ;;  %s493_s12 = int_to_ptr.vmem [resolvable:$true] %s492_s12  ;;  %s4309_s14 = int_to_ptr.hbm [resolvable:$true] %s4308_s14 }
 0x219   :  { %s4310_s6 = scalar_lea.hbm %s4309_s14, 1  ;;  %s4312_s29 = scalar_lea.hbm %s5753_s8, 1 }
 0x21a   :  { %p4311_p2 = scmp.ne.s32.totalorder %s4309_s14, %s4310_s6  ;;  %p4313_p3 = scmp.lt.s32.totalorder %s4309_s14, %s5753_s8 }
 0x21b   :  { %p4314_p4 = scmp.lt.s32.totalorder %s4312_s29, %s4310_s6 }
 0x21d   :  { %s512_s0 = sshll.u32 %s5754_s27, 4  ;;  %p4315_p5 = por %p4314_p4, %p4313_p3  ;;  %s513_s0 = int_to_ptr.hbm [resolvable:$true] %s512_s0 }
 0x21f   :  { %p4316_p6 = pnand %p4315_p5, %p4311_p2 }
 0x221   :  { %4319 = shalt.err (!%p4316_p6)
}
 0x222   :  { %495 = dma.hbm_to_vmem [thread:$0]  %s491_s9, 16, %s493_s12, [#allocation46]  }
 0x223   :  { %s5755_s4 = sld [smem:[#allocation121_spill]]  ;;  %s4666_s1 = smov [#allocation50]  }
 0x224   :  { %s514_s2 = sshll.u32 %s4666_s1, 4  ;;  %s4332_s25 = sshra.s32 %s513_s0, 4  ;;  %s515_s2 = int_to_ptr.vmem [resolvable:$true] %s514_s2  ;;  %s4333_s25 = int_to_ptr.hbm [resolvable:$true] %s4332_s25 }
 0x225   :  { %s4334_s3 = scalar_lea.hbm %s4333_s25, 1  ;;  %s4336_s24 = scalar_lea.hbm %s5754_s27, 1 }
 0x226   :  { %p4335_p7 = scmp.ne.s32.totalorder %s4333_s25, %s4334_s3  ;;  %p4337_p8 = scmp.lt.s32.totalorder %s4333_s25, %s5754_s27 }
 0x227   :  { %p4338_p9 = scmp.lt.s32.totalorder %s4336_s24, %s4334_s3 }
 0x229   :  { %s538_s19 = sshll.u32 %s5755_s4, 4  ;;  %p4339_p10 = por %p4338_p9, %p4337_p8  ;;  %s539_s19 = int_to_ptr.hbm [resolvable:$true] %s538_s19 }
 0x22b   :  { %p4340_p11 = pnand %p4339_p10, %p4335_p7 }
 0x22d   :  { %4343 = shalt.err (!%p4340_p11)
}
 0x22e   :  { %517 = dma.hbm_to_vmem [thread:$0]  %s513_s0, 16, %s515_s2, [#allocation49]  }
 0x22f   :  { %s5756_s30 = sld [smem:[#allocation122_spill]]  ;;  %s4667_s17 = smov [#allocation53]  }
 0x230   :  { %s540_s5 = sshll.u32 %s4667_s17, 4  ;;  %s4356_s15 = sshra.s32 %s539_s19, 4  ;;  %s541_s5 = int_to_ptr.vmem [resolvable:$true] %s540_s5  ;;  %s4357_s15 = int_to_ptr.hbm [resolvable:$true] %s4356_s15 }
 0x231   :  { %s4358_s13 = scalar_lea.hbm %s4357_s15, 8  ;;  %s4360_s8 = scalar_lea.hbm %s5755_s4, 8 }
 0x232   :  { %p4359_p12 = scmp.ne.s32.totalorder %s4357_s15, %s4358_s13  ;;  %p4361_p13 = scmp.lt.s32.totalorder %s4357_s15, %s5755_s4 }
 0x233   :  { %p4362_p0 = scmp.lt.s32.totalorder %s4360_s8, %s4358_s13 }
 0x235   :  { %s560_s7 = sshll.u32 %s5756_s30, 4  ;;  %p4363_p1 = por %p4362_p0, %p4361_p13  ;;  %s561_s7 = int_to_ptr.hbm [resolvable:$true] %s560_s7 }
 0x237   :  { %p4364_p2 = pnand %p4363_p1, %p4359_p12 }
 0x239   :  { %4367 = shalt.err (!%p4364_p2)
}
 0x23a   :  { %543 = dma.hbm_to_vmem [thread:$0]  %s539_s19, 128, %s541_s5, [#allocation52]  }
 0x23b   :  { %s5757_s18 = sld [smem:[#allocation124_spill]]  ;;  %s4668_s20 = smov [#allocation56]  }
 0x23c   :  { %s562_s9 = sshll.u32 %s4668_s20, 4  ;;  %s4380_s26 = sshra.s32 %s561_s7, 4  ;;  %s563_s9 = int_to_ptr.vmem [resolvable:$true] %s562_s9  ;;  %s4381_s26 = int_to_ptr.hbm [resolvable:$true] %s4380_s26 }
 0x23d   :  { %s4382_s11 = scalar_lea.hbm %s4381_s26, 8  ;;  %s4384_s27 = scalar_lea.hbm %s5756_s30, 8 }
 0x23e   :  { %p4383_p3 = scmp.ne.s32.totalorder %s4381_s26, %s4382_s11  ;;  %p4385_p4 = scmp.lt.s32.totalorder %s4381_s26, %s5756_s30 }
 0x23f   :  { %p4386_p5 = scmp.lt.s32.totalorder %s4384_s27, %s4382_s11 }
 0x241   :  { %s582_s21 = sshll.u32 %s5757_s18, 4  ;;  %p4387_p6 = por %p4386_p5, %p4385_p4  ;;  %s583_s21 = int_to_ptr.hbm [resolvable:$true] %s582_s21 }
 0x243   :  { %p4388_p7 = pnand %p4387_p6, %p4383_p3 }
 0x245   :  { %4391 = shalt.err (!%p4388_p7)
}
 0x246   :  { %565 = dma.hbm_to_vmem [thread:$0]  %s561_s7, 128, %s563_s9, [#allocation55]  }
 0x247   :  { %s5758_s0 = sld [smem:[#allocation126_spill]]  ;;  %s4669_s12 = smov [#allocation59]  }
 0x248   :  { %s584_s14 = sshll.u32 %s4669_s12, 4  ;;  %s4404_s6 = sshra.s32 %s583_s21, 4  ;;  %s585_s14 = int_to_ptr.vmem [resolvable:$true] %s584_s14  ;;  %s4405_s6 = int_to_ptr.hbm [resolvable:$true] %s4404_s6 }
 0x249   :  { %s4406_s29 = scalar_lea.hbm %s4405_s6, 4  ;;  %s4408_s4 = scalar_lea.hbm %s5757_s18, 4 }
 0x24a   :  { %p4407_p8 = scmp.ne.s32.totalorder %s4405_s6, %s4406_s29  ;;  %p4409_p9 = scmp.lt.s32.totalorder %s4405_s6, %s5757_s18 }
 0x24b   :  { %p4410_p10 = scmp.lt.s32.totalorder %s4408_s4, %s4406_s29 }
 0x24d   :  { %s604_s23 = sshll.u32 %s5758_s0, 4  ;;  %p4411_p11 = por %p4410_p10, %p4409_p9  ;;  %s605_s23 = int_to_ptr.hbm [resolvable:$true] %s604_s23 }
 0x24f   :  { %p4412_p12 = pnand %p4411_p11, %p4407_p8 }
 0x251   :  { %4415 = shalt.err (!%p4412_p12)
}
 0x252   :  { %587 = dma.hbm_to_vmem [thread:$0]  %s583_s21, 64, %s585_s14, [#allocation58]  }
 0x253   :  { %s5759_s1 = sld [smem:[#allocation132_spill]]  ;;  %s4670_s2 = smov [#allocation62]  }
 0x254   :  { %s606_s19 = sshll.u32 %s4670_s2, 4  ;;  %s4428_s3 = sshra.s32 %s605_s23, 4  ;;  %s607_s19 = int_to_ptr.vmem [resolvable:$true] %s606_s19  ;;  %s4429_s3 = int_to_ptr.hbm [resolvable:$true] %s4428_s3 }
 0x255   :  { %s4430_s24 = scalar_lea.hbm %s4429_s3, 4  ;;  %s4432_s30 = scalar_lea.hbm %s5758_s0, 4 }
 0x256   :  { %p4431_p13 = scmp.ne.s32.totalorder %s4429_s3, %s4430_s24  ;;  %p4433_p0 = scmp.lt.s32.totalorder %s4429_s3, %s5758_s0 }
 0x257   :  { %p4434_p1 = scmp.lt.s32.totalorder %s4432_s30, %s4430_s24 }
 0x259   :  { %s634_s25 = sshll.u32 %s5759_s1, 4  ;;  %p4435_p2 = por %p4434_p1, %p4433_p0  ;;  %s635_s25 = int_to_ptr.hbm [resolvable:$true] %s634_s25 }
 0x25b   :  { %p4436_p3 = pnand %p4435_p2, %p4431_p13 }
 0x25d   :  { %4439 = shalt.err (!%p4436_p3)
}
 0x25e   :  { %609 = dma.hbm_to_vmem [thread:$0]  %s605_s23, 64, %s607_s19, [#allocation61]  }
 0x25f   :  { %s647_s7 = sshll.u32 %s4968_s10, 4  ;;  %s4671_s17 = smov [#allocation65]   ;;  %s648_s7 = int_to_ptr.hbm [resolvable:$true] %s647_s7 }
 0x260   :  { %s636_s5 = sshll.u32 %s4671_s17, 4  ;;  %s4452_s15 = sshra.s32 %s635_s25, 4  ;;  %s637_s5 = int_to_ptr.vmem [resolvable:$true] %s636_s5  ;;  %s4453_s15 = int_to_ptr.hbm [resolvable:$true] %s4452_s15 }
 0x261   :  { %s4454_s13 = scalar_lea.hbm %s4453_s15, 4  ;;  %s4456_s8 = scalar_lea.hbm %s5759_s1, 4 }
 0x262   :  { %p4455_p4 = scmp.ne.s32.totalorder %s4453_s15, %s4454_s13  ;;  %p4457_p5 = scmp.lt.s32.totalorder %s4453_s15, %s5759_s1 }
 0x263   :  { %p4458_p6 = scmp.lt.s32.totalorder %s4456_s8, %s4454_s13 }
 0x265   :  { %p4459_p7 = por %p4458_p6, %p4457_p5 }
 0x267   :  { %p4460_p8 = pnand %p4459_p7, %p4455_p4 }
 0x269   :  { %4463 = shalt.err (!%p4460_p8)
}
 0x26a   :  { %639 = dma.hbm_to_vmem [thread:$0]  %s635_s25, 64, %s637_s5, [#allocation64]  }
 0x26b   :  { %s4672_s18 = smov [#allocation66]   ;;  %s4476_s9 = sshra.s32 %s648_s7, 4  ;;  %s4477_s9 = int_to_ptr.hbm [resolvable:$true] %s4476_s9 }
 0x26c   :  { %s649_s20 = sshll.u32 %s4672_s18, 4  ;;  %s4478_s21 = scalar_lea.hbm %s4477_s9, 8  ;;  %s650_s20 = int_to_ptr.vmem [resolvable:$true] %s649_s20 }
 0x26d   :  { %p4479_p9 = scmp.ne.s32.totalorder %s4477_s9, %s4478_s21  ;;  %s4480_s26 = scalar_lea.hbm %s4968_s10, 8 }
 0x26e   :  { %p4481_p10 = scmp.lt.s32.totalorder %s4477_s9, %s4968_s10  ;;  %p4482_p11 = scmp.lt.s32.totalorder %s4480_s26, %s4478_s21 }
 0x270   :  { %p4483_p12 = por %p4482_p11, %p4481_p10 }
 0x272   :  { %p4484_p13 = pnand %p4483_p12, %p4479_p9 }
 0x274   :  { %4487 = shalt.err (!%p4484_p13)
}
 0x275   :  { %652 = dma.hbm_to_vmem [thread:$0]  %s648_s7, 128, %s650_s20, [#allocation67]  }
 0x276   :  { %4524 = dma.done.wait [#allocation4], 128  }
 0x277   :  { %4525 = vsyncadd [#allocation4], 4294967168 }
 0x278   :  { %4526 = dma.done.wait [#allocation7], 192  }
 0x279   :  { %4527 = vsyncadd [#allocation7], 4294967104 }
 0x27a   :  { %4528 = dma.done.wait [#allocation10], 80  }
 0x27b   :  { %4529 = vsyncadd [#allocation10], 4294967216 }
 0x27c   :  { %4530 = dma.done.wait [#allocation13], 272  }
 0x27d   :  { %4531 = vsyncadd [#allocation13], 4294967024 }
 0x27e   :  { %4532 = dma.done.wait [#allocation16], 32  }
 0x27f   :  { %4533 = vsyncadd [#allocation16], 4294967264 }
 0x280   :  { %4534 = dma.done.wait [#allocation19], 32  }
 0x281   :  { %4535 = vsyncadd [#allocation19], 4294967264 }
 0x282   :  { %4536 = dma.done.wait [#allocation22], 32  }
 0x283   :  { %4537 = vsyncadd [#allocation22], 4294967264 }
 0x284   :  { %4538 = dma.done.wait [#allocation25], 32  }
 0x285   :  { %4539 = vsyncadd [#allocation25], 4294967264 }
 0x286   :  { %4540 = dma.done.wait [#allocation28], 32  }
 0x287   :  { %4541 = vsyncadd [#allocation28], 4294967264 }
 0x288   :  { %4542 = dma.done.wait [#allocation31], 528  }
 0x289   :  { %4543 = vsyncadd [#allocation31], 4294966768 }
 0x28a   :  { %4544 = dma.done.wait [#allocation34], 528  }
 0x28b   :  { %4545 = vsyncadd [#allocation34], 4294966768 }
 0x28c   :  { %4546 = dma.done.wait [#allocation37], 32  }
 0x28d   :  { %4547 = vsyncadd [#allocation37], 4294967264 }
 0x28e   :  { %4548 = dma.done.wait [#allocation40], 528  }
 0x28f   :  { %4549 = vsyncadd [#allocation40], 4294966768 }
 0x290   :  { %4550 = dma.done.wait [#allocation43], 528  }
 0x291   :  { %4551 = vsyncadd [#allocation43], 4294966768 }
 0x292   :  { %4552 = dma.done.wait [#allocation46], 32  }
 0x293   :  { %4553 = vsyncadd [#allocation46], 4294967264 }
 0x294   :  { %4554 = dma.done.wait [#allocation49], 32  }
 0x295   :  { %4555 = vsyncadd [#allocation49], 4294967264 }
 0x296   :  { %4556 = dma.done.wait [#allocation52], 144  }
 0x297   :  { %4557 = vsyncadd [#allocation52], 4294967152 }
 0x298   :  { %4558 = dma.done.wait [#allocation55], 256  }
 0x299   :  { %4559 = vsyncadd [#allocation55], 4294967040 }
 0x29a   :  { %4560 = dma.done.wait [#allocation58], 128  }
 0x29b   :  { %4561 = vsyncadd [#allocation58], 4294967168 }
 0x29c   :  { %4562 = dma.done.wait [#allocation61], 128  }
 0x29d   :  { %4563 = vsyncadd [#allocation61], 4294967168 }
 0x29e   :  { %4564 = dma.done.wait [#allocation64], 128  }
 0x29f   :  { %4565 = vsyncadd [#allocation64], 4294967168 }
 0x2a0   :  { %4566 = dma.done.wait [#allocation67], 128  }
 0x2a1   :  { %4567 = vsyncadd [#allocation67], 4294967168  ;;  %s5760_s10 = sld [smem:[#allocation95_spill]]  ;;  %vm850_vm0 = vcmask 195584   ;;  %v3428_v11 = vld [vmem:[#allocation11] ss:$0 sm:$0xff]  ;;  %v970_v35 = vlaneseq }
 0x2a2   :  { %s5761_s11 = sld [smem:[#allocation92_spill]]  ;;  %vm904_vm2 = vcmask 261120   ;;  %v4673_v25 = vmov 0.03125   ;;  %v5169_v27 = vld [vmem:[#allocation53] sm:$0xff]  ;;  %vm943_vm6 = vcmask 228352   ;;  %v833_v32 = vld [vmem:[#allocation12 + $0x8] sm:$0xff] }
 0x2a3   :  { %s5762_s27 = sld [smem:[#allocation120_spill]]  ;;  %3177 = vmatpush.xpose.msk.msra.mxu2 %vm943_vm6, %v5169_v27  ;;  %v832_v33 = vld [vmem:[#allocation12] sm:$0xff]  ;;  %vm1020_vm7 = vcmask 130048   ;;  %v971_v36 = vshrl.u32 %v970_v35, 7  ;;  %v973_v37 = vand.u32 127, %v970_v35  ;;  %v4674_v40 = vmov 0.0  }
 0x2a4   :  { %v827_v34 = vld [vmem:[#allocation3] sm:$0xff]  ;;  %vm1004_vm9 = vcmask 64512   ;;  %v3429_v56 = vld [vmem:[#allocation14] ss:$0 sm:$0xff]  ;;  %s5763_s0 = sld [smem:[#allocation127_spill]]  ;;  %s4676_s19 = smov [#allocation68]  }
 0x2a5   :  { %vm974_vm8 = vcmp.eq.s32.totalorder %v971_v36, %v973_v37  ;;  %s5764_s23 = sld [smem:[#allocation128_spill]]  ;;  %s3076_s25 = sshll.u32 %s4676_s19, 4  ;;  %s3077_s25 = int_to_ptr.vmem [resolvable:$true] %s3076_s25 }
 0x2a6   :  { %v5181_v41 = vsel %vm974_vm8, 1.0, %v4674_v40  ;;  %s5765_s12 = sld [smem:[#allocation99_spill]]  ;;  %s3078_s3 = sshll.u32 %s4978_s22, 4  ;;  %s3079_s3 = int_to_ptr.hbm [resolvable:$true] %s3078_s3 }
 0x2a7   :  { %v830_v1 = vld [vmem:[%s5760_s10 + $0x10] sm:$0xff]  ;;  %v829_v2 = vld [vmem:[%s5760_s10 + $0x8] sm:$0xff]  ;;  %v828_v3 = vld [vmem:[%s5760_s10] sm:$0xff]  ;;  %1038 = vmatpush.msrb.mxu2 %v833_v32  ;;  %s5766_s14 = sld [smem:[#allocation100_spill]]  ;;  %s4512_s24 = sshra.s32 %s3079_s3, 4  ;;  %s4513_s24 = int_to_ptr.hbm [resolvable:$true] %s4512_s24 }
 0x2a8   :  { %876 = vmatpush.msra.mxu0 %v830_v1  ;;  %v823_v4 = vld [vmem:[%s5761_s11] sm:$0xff]  ;;  %v824_v5 = vld [vmem:[%s5761_s11 + $0x8] sm:$0xff]  ;;  %v825_v6 = vld [vmem:[%s5761_s11 + $0x10] sm:$0xff]  ;;  %s5767_s6 = sld [smem:[#allocation103_spill]]  ;;  %s4514_s30 = scalar_lea.hbm %s4513_s24, 1 }
 0x2a9   :  { %v826_v7 = vld [vmem:[%s5761_s11 + $0x18] sm:$0xf]  ;;  %v5167_v26 = vld [vmem:[%s5762_s27] sm:$0xff]  ;;  %1039 = vmatpush.msrb.mxu2 %v832_v33  ;;  %s5768_s29 = sld [smem:[#allocation104_spill]]  ;;  %p4515_p0 = scmp.ne.s32.totalorder %s4513_s24, %s4514_s30 }
 0x2aa   :  { %877 = vmatpush.msra.mxu0 %v829_v2  ;;  %3180 = vmatpush.xpose.msk.msra.mxu3 %vm943_vm6, %v5167_v26  ;;  %s5770_s4 = sld [smem:[#allocation129_spill]]  ;;  %s4516_s7 = scalar_lea.hbm %s4978_s22, 1 }
 0x2ab   :  { %v5228_v35 = vld [vmem:[%s5764_s23 + $0x18] sm:$0xf]  ;;  %s5771_s1 = sld [smem:[#allocation130_spill]]  ;;  %p4517_p1 = scmp.lt.s32.totalorder %s4513_s24, %s4978_s22 }
 0x2ac   :  { %878 = vmatpush.msra.mxu0 %v828_v3  ;;  %v1200_v40 = vld [vmem:[%s5765_s12 + $0x10] sm:$0xff]  ;;  %s5772_s2 = sld [smem:[#allocation109_spill]]  ;;  %p4518_p2 = scmp.lt.s32.totalorder %s4516_s7, %s4514_s30 }
 0x2ad   :  { %3168 = vmatmul.msk.f32.vlgmr.msra.gmra.mxu0 %vm850_vm0, %v823_v4 }
 0x2ae   :  { %3200 = vmatpush.xpose.msk.msrb.mxu0 %vm943_vm6, %v5169_v27  ;;  %p4519_p3 = por %p4518_p2, %p4517_p1 }
 0x2b0   :  { %p4520_p4 = pnand %p4519_p3, %p4515_p0 }
 0x2b5   :  { %3169 = vmatmul.msk.f32.gmra.mxu0 %vm850_vm0, %v824_v5 }
 0x2bd   :  { %3170 = vmatmul.msk.f32.gmra.mxu0 %vm850_vm0, %v825_v6 }
 0x2c5   :  { %3171 = vmatmul.msk.f32.gmra.mxu0 %vm850_vm0, %v826_v7 }
 0x32a   :  { %v880_v8 = vpop.f32.mrf.mxu0 }
 0x32b   :  { %v881_v19 = vadd.f32 %v3428_v11, %v880_v8 }
 0x32d   :  { %v896_v22 = vmul.f32 0.01, %v881_v19  ;;  %vm892_vm5 = vcmp.ge.f32.partialorder %v881_v19, 0.0 }
 0x32f   :  { %v5160_v24 = vsel %vm892_vm5, %v881_v19, %v896_v22  ;;  %v5218_v22 = vld [vmem:[%s5764_s23 + $0x8] sm:$0xff] }
 0x332   :  { %v883_v9 = vpop.f32.mrf.mxu0 }
 0x333   :  { %v884_v16 = vadd.f32 %v3428_v11, %v883_v9 }
 0x335   :  { %v897_v20 = vmul.f32 0.01, %v884_v16  ;;  %vm893_vm4 = vcmp.ge.f32.partialorder %v884_v16, 0.0 }
 0x337   :  { %v5156_v23 = vsel %vm893_vm4, %v884_v16, %v897_v20  ;;  %v5213_v16 = vld [vmem:[%s5764_s23] sm:$0xff]  ;;  %vm1172_vm4 = vcmask 60416  }
 0x33a   :  { %v886_v10 = vpop.f32.mrf.mxu0 }
 0x33b   :  { %v887_v13 = vadd.f32 %v3428_v11, %v886_v10 }
 0x33d   :  { %v898_v17 = vmul.f32 0.01, %v887_v13  ;;  %vm894_vm3 = vcmp.ge.f32.partialorder %v887_v13, 0.0 }
 0x33f   :  { %v5152_v21 = vsel %vm894_vm3, %v887_v13, %v898_v17  ;;  %v5198_v13 = vld [vmem:[%s5763_s0 + $0x8] sm:$0xff] }
 0x342   :  { %v889_v12 = vpop.f32.mrf.mxu0 }
 0x343   :  { %v890_v14 = vadd.f32 %v3428_v11, %v889_v12  ;;  %v5193_v11 = vld [vmem:[%s5763_s0] sm:$0xff] }
 0x345   :  { %v899_v15 = vmul.f32 0.01, %v890_v14  ;;  %vm895_vm1 = vcmp.ge.f32.partialorder %v890_v14, 0.0 }
 0x347   :  { %v5148_v18 = vsel %vm895_vm1, %v890_v14, %v899_v15  ;;  %v5203_v14 = vld [vmem:[%s5763_s0 + $0x10] sm:$0xff]  ;;  %v5208_v15 = vld [vmem:[%s5763_s0 + $0x18] sm:$0xf] }
 0x348   :  { %3172 = vmatpush.xpose.msk.msra.mxu1 %vm904_vm2, %v5148_v18 }
 0x34c   :  { %3173 = vmatpush.xpose.msk.msra.mxu1 %vm904_vm2, %v5152_v21 }
 0x350   :  { %3174 = vmatpush.xpose.msk.msra.mxu1 %vm904_vm2, %v5156_v23 }
 0x354   :  { %3175 = vmatpush.xpose.msk.msra.mxu1 %vm904_vm2, %v5160_v24 }
 0x357   :  { %3176 = vmatmul.msk.f32.vlgmr.msra.gmra.mxu1 %vm904_vm2, %v4673_v25 }
 0x3d4   :  { %v937_v28 = vpop.f32.mrf.mxu1 }
 0x3d5   :  { %v940_v29 = vperm.slane %v937_v28, 0 }
 0x3d7   :  { %v941_v30 = vmul.f32 %v940_v29, %v5169_v27  ;;  %v942_v31 = vmul.f32 %v940_v29, %v5167_v26 }
 0x3d9   :  { %3178 = vmatmul.msk.f32.vlgmr.msra.gmra.mxu2 %vm943_vm6, %v942_v31  ;;  %3181 = vmatmul.msk.f32.vlgmr.msra.gmra.mxu3 %vm943_vm6, %v941_v30  ;;  %v5223_v31 = vld [vmem:[%s5764_s23 + $0x10] sm:$0xff] }
 0x3e1   :  { %3182 = vmatmul.msk.f32.vlgmr.msrb.gmra.mxu2 %vm1020_vm7, %v827_v34 }
 0x45c   :  { %v967_v38 = vpop.f32.mrf.mxu2  ;;  %v1000_v39 = vpop.f32.mrf.mxu3 }
 0x45d   :  { %v1001_v42 = vadd.f32 %v1000_v39, %v967_v38  ;;  %v1201_v39 = vld [vmem:[%s5765_s12 + $0x18] sm:$0xff] }
 0x45e   :  { %1237 = vmatpush.msrb.mxu1 %v1201_v39 }
 0x45f   :  { %v1003_v43 = vadd.f32 %v5181_v41, %v1001_v42  ;;  %v1199_v42 = vld [vmem:[%s5765_s12 + $0x8] sm:$0xff] }
 0x460   :  { %1238 = vmatpush.msrb.mxu1 %v1200_v40 }
 0x461   :  { %v1005_v44 = vsel %vm1004_vm9, %v1003_v43, 0.0 }
 0x462   :  { %1006 = vadd.xlane.f32.xlu0 %v1005_v44  ;;  %1239 = vmatpush.msrb.mxu1 %v1199_v42  ;;  %v3430_v44 = vld [vmem:[#allocation15] ss:$0 sm:$0xff] }
 0x464   :  { %v1041_v52 = vpop.f32.mrf.mxu2 }
 0x4d5   :  { %v1007_v45 = vpop.xlane.xlu0 %1006 }
 0x4d6   :  { %3448 = vrsqrt.f32 %v1007_v45  ;;  %vm1015_vm11 = vweird.f32 %v1007_v45  ;;  %vm1008_vm13 = vcmp.gt.f32.partialorder %v1007_v45, 0.0 }
 0x4dc   :  { %v3449_v46 = vpop.eup %3448 }
 0x4dd   :  { %v1010_v47 = vmul.f32 %v3449_v46, %v1007_v45  ;;  %vm1016_vm10 = vweird.f32 %v3449_v46  ;;  %v3431_v45 = vld [vmem:[#allocation17] ss:$0 sm:$0xff] }
 0x4de   :  { %vm1017_vm12 = vmor %vm1015_vm11, %vm1016_vm10 }
 0x4df   :  { %v1011_v48 = vmul.f32 %v3449_v46, %v1010_v47 }
 0x4e1   :  { %v1012_v49 = vmul.f32 0.5, %v1011_v48 }
 0x4e3   :  { %v1013_v50 = vsub.f32 1.5, %v1012_v49 }
 0x4e5   :  { %v1014_v51 = vmul.f32 %v3449_v46, %v1013_v50 }
 0x4e7   :  { %v1018_v53 = vsel %vm1017_vm12, %v3449_v46, %v1014_v51 }
 0x4e8   :  { %v1019_v54 = vsel %vm1008_vm13, %v1018_v53, 0.0 }
 0x4e9   :  { %v1044_v55 = vmul.f32 %v1041_v52, %v1019_v54 }
 0x4eb   :  { %1063 = vmatpush.msrb.mxu3 %v1044_v55 }
 0x4ec   :  { %3183 = vmatmul.msk.f32.vlgmr.msrb.gmra.mxu3 %vm1004_vm9, %v1003_v43  ;;  %v1198_v43 = vld [vmem:[%s5765_s12] sm:$0xff] }
 0x4ed   :  { %1240 = vmatpush.msrb.mxu1 %v1198_v43 }
 0x56f   :  { %v1065_v57 = vpop.f32.mrf.mxu3 }
 0x570   :  { %v1068_v58 = vmul.f32 %v1065_v57, %v1019_v54 }
 0x572   :  { %v1072_v59 = vadd.f32 %v3429_v56, %v1068_v58 }
 0x574   :  { %vm1073_vm14 = vcmp.ge.f32.partialorder %v1072_v59, 0.0  ;;  %v1074_v60 = vmul.f32 0.01, %v1072_v59 }
 0x576   :  { %v5186_v61 = vsel %vm1073_vm14, %v1072_v59, %v1074_v60 }
 0x577   :  { %3184 = vmatpush.xpose.msk.msra.mxu2 %vm904_vm2, %v5186_v61 }
 0x57a   :  { %3185 = vmatmul.msk.f32.vlgmr.msra.gmra.mxu2 %vm904_vm2, %v5186_v61 }
 0x5fd   :  { %v1096_v62 = vpop.f32.mrf.mxu2 }
 0x5fe   :  { %v3186_v63 = vmul.f32 -1.442695, %v1096_v62 }
 0x600   :  { %3450 = vpow2.f32 %v3186_v63 }
 0x606   :  { %v3451_v0 = vpop.eup %3450 }
 0x607   :  { %v1102_v1 = vadd.f32 1.0, %v3451_v0 }
 0x609   :  { %3452 = vrcp.f32 %v1102_v1  ;;  %v1114_v5 = vand.u32 2147483648, %v1102_v1  ;;  %v1112_v7 = vand.u32 2147483647, %v1102_v1  ;;  %vm1108_vm0 = vweird.f32 %v1102_v1 }
 0x60b   :  { %v1115_v9 = vor.u32 1.1754944e-38, %v1114_v5  ;;  %vm1113_vm3 = vcmp.eq.f32.partialorder %v1112_v7, 8.507059e+37 }
 0x60f   :  { %v3453_v2 = vpop.eup %3452 }
 0x610   :  { %v1104_v3 = vmul.f32 %v3453_v2, %v1102_v1  ;;  %vm1109_vm15 = vweird.f32 %v3453_v2 }
 0x611   :  { %vm1110_vm1 = vmor %vm1108_vm0, %vm1109_vm15 }
 0x612   :  { %v1105_v4 = vsub.f32 1.0, %v1104_v3 }
 0x614   :  { %v1106_v6 = vmul.f32 %v3453_v2, %v1105_v4  ;;  %v3432_v4 = vld [vmem:[#allocation18] ss:$0 sm:$0xff] }
 0x616   :  { %v1107_v8 = vadd.f32 %v3453_v2, %v1106_v6 }
 0x618   :  { %v1111_v10 = vsel %vm1110_vm1, %v3453_v2, %v1107_v8 }
 0x619   :  { %v1116_v12 = vsel %vm1113_vm3, %v1115_v9, %v1111_v10 }
 0x61a   :  { %1145 = vmatpush.msra.mxu3 %v1116_v12 }
 0x61b   :  { %3187 = vmatmul.msk.f32.vlgmr.msra.gmra.mxu3 %vm1004_vm9, %v5193_v11 }
 0x623   :  { %3188 = vmatmul.msk.f32.gmra.mxu3 %vm1004_vm9, %v5198_v13 }
 0x62b   :  { %3189 = vmatmul.msk.f32.gmra.mxu3 %vm1004_vm9, %v5203_v14 }
 0x633   :  { %3190 = vmatmul.msk.f32.gmra.mxu3 %vm1004_vm9, %v5208_v15 }
 0x69e   :  { %v1147_v17 = vpop.f32.mrf.mxu3 }
 0x69f   :  { %v1159_v19 = vmul.f32 %v1147_v17, %v5213_v16 }
 0x6a1   :  { %v1163_v20 = vsel %vm1004_vm9, %v1159_v19, 0.0 }
 0x6a2   :  { %1164 = vadd.xlane.f32.xlu0 %v1163_v20 }
 0x6a6   :  { %v1150_v28 = vpop.f32.mrf.mxu3 }
 0x6a7   :  { %v1160_v29 = vmul.f32 %v1150_v28, %v5218_v22 }
 0x6a9   :  { %v1166_v30 = vsel %vm1004_vm9, %v1160_v29, 0.0  ;;  %v1206_v29 = vld [vmem:[%s5766_s14 + $0x18] sm:$0xff] }
 0x6aa   :  { %1167 = vadd.xlane.f32.xlu1 %v1166_v30  ;;  %v1205_v30 = vld [vmem:[%s5766_s14 + $0x10] sm:$0xff]  ;;  %1375 = vmatpush.msra.mxu0 %v1206_v29 }
 0x6ac   :  { %1376 = vmatpush.msra.mxu0 %v1205_v30  ;;  %v1580_v30 = vld [vmem:[%s5767_s6 + $0x18] sm:$0xff] }
 0x6ae   :  { %v1153_v32 = vpop.f32.mrf.mxu3 }
 0x6af   :  { %v1161_v33 = vmul.f32 %v1153_v32, %v5223_v31  ;;  %v1204_v32 = vld [vmem:[%s5766_s14 + $0x8] sm:$0xff] }
 0x6b0   :  { %1377 = vmatpush.msra.mxu0 %v1204_v32  ;;  %v1579_v32 = vld [vmem:[%s5767_s6 + $0x10] sm:$0xff] }
 0x6b1   :  { %v1169_v34 = vsel %vm1004_vm9, %v1161_v33, 0.0  ;;  %v1203_v33 = vld [vmem:[%s5766_s14] sm:$0xff] }
 0x6b2   :  { %1170 = vadd.xlane.f32.xlu1 %v1169_v34  ;;  %1378 = vmatpush.msra.mxu0 %v1203_v33  ;;  %v1578_v33 = vld [vmem:[%s5767_s6 + $0x8] sm:$0xff] }
 0x6b6   :  { %v1156_v36 = vpop.f32.mrf.mxu3 }
 0x6b7   :  { %v1162_v37 = vmul.f32 %v1156_v36, %v5228_v35 }
 0x6b9   :  { %v1173_v38 = vsel %vm1172_vm4, %v1162_v37, 0.0 }
 0x6ba   :  { %1174 = vadd.xlane.f32.xlu2 %v1173_v38 }
 0x715   :  { %v1165_v46 = vpop.xlane.xlu0 %1164 }
 0x716   :  { %v1179_v47 = vmul.f32 %v3430_v44, %v1165_v46 }
 0x718   :  { %v1186_v48 = vadd.f32 %v3431_v45, %v1179_v47 }
 0x71a   :  { %v1190_v49 = vmul.f32 %v1186_v48, %v5160_v24 }
 0x71c   :  { %v1194_v50 = vadd.f32 %v1190_v49, %v5160_v24 }
 0x71d   :  { %v1168_v51 = vpop.xlane.xlu1 %1167 }
 0x71e   :  { %v1180_v52 = vmul.f32 %v3430_v44, %v1168_v51  ;;  %3191 = vmatmul.msk.f32.vlgmr.msrb.gmra.mxu1 %vm904_vm2, %v1194_v50 }
 0x720   :  { %v1187_v53 = vadd.f32 %v3431_v45, %v1180_v52 }
 0x722   :  { %v1191_v54 = vmul.f32 %v1187_v53, %v5156_v23  ;;  %v3433_v53 = vld [vmem:[#allocation20] ss:$0 sm:$0xff] }
 0x724   :  { %v1195_v55 = vadd.f32 %v1191_v54, %v5156_v23 }
 0x725   :  { %v1171_v56 = vpop.xlane.xlu1 %1170 }
 0x726   :  { %v1181_v57 = vmul.f32 %v3430_v44, %v1171_v56  ;;  %3192 = vmatmul.msk.f32.gmra.mxu1 %vm904_vm2, %v1195_v55 }
 0x728   :  { %v1188_v58 = vadd.f32 %v3431_v45, %v1181_v57 }
 0x72a   :  { %v1192_v59 = vmul.f32 %v1188_v58, %v5152_v21 }
 0x72c   :  { %v1196_v60 = vadd.f32 %v1192_v59, %v5152_v21 }
 0x72d   :  { %v1175_v62 = vpop.xlane.xlu2 %1174 }
 0x72e   :  { %v1182_v24 = vmul.f32 %v3430_v44, %v1175_v62  ;;  %3193 = vmatmul.msk.f32.gmra.mxu1 %vm904_vm2, %v1196_v60 }
 0x730   :  { %v1189_v63 = vadd.f32 %v3431_v45, %v1182_v24 }
 0x732   :  { %v1193_v0 = vmul.f32 %v1189_v63, %v5148_v18 }
 0x734   :  { %v1197_v1 = vadd.f32 %v1193_v0, %v5148_v18 }
 0x736   :  { %3194 = vmatmul.msk.f32.gmra.mxu1 %vm904_vm2, %v1197_v1 }
 0x79b   :  { %v1242_v23 = vpop.f32.mrf.mxu1 }
 0x79c   :  { %v1243_v18 = vadd.f32 %v3432_v4, %v1242_v23 }
 0x79e   :  { %v1258_v19 = vmul.f32 0.01, %v1243_v18  ;;  %vm1254_vm10 = vcmp.ge.f32.partialorder %v1243_v18, 0.0 }
 0x7a0   :  { %v5260_v28 = vsel %vm1254_vm10, %v1243_v18, %v1258_v19  ;;  %vm1649_vm10 = vcmask 48128  }
 0x7a3   :  { %v1245_v2 = vpop.f32.mrf.mxu1 }
 0x7a4   :  { %v1246_v8 = vadd.f32 %v3432_v4, %v1245_v2 }
 0x7a6   :  { %v1259_v12 = vmul.f32 0.01, %v1246_v8  ;;  %vm1255_vm8 = vcmp.ge.f32.partialorder %v1246_v8, 0.0 }
 0x7a8   :  { %v5256_v20 = vsel %vm1255_vm8, %v1246_v8, %v1259_v12 }
 0x7ab   :  { %v1248_v3 = vpop.f32.mrf.mxu1 }
 0x7ac   :  { %v1249_v6 = vadd.f32 %v3432_v4, %v1248_v3 }
 0x7ae   :  { %v1260_v9 = vmul.f32 0.01, %v1249_v6  ;;  %vm1256_vm7 = vcmp.ge.f32.partialorder %v1249_v6, 0.0 }
 0x7b0   :  { %v5252_v17 = vsel %vm1256_vm7, %v1249_v6, %v1260_v9  ;;  %vm1552_vm7 = vcmask 1043456  }
 0x7b3   :  { %v1251_v5 = vpop.f32.mrf.mxu1 }
 0x7b4   :  { %v1252_v7 = vadd.f32 %v3432_v4, %v1251_v5 }
 0x7b6   :  { %vm1257_vm5 = vcmp.ge.f32.partialorder %v1252_v7, 0.0  ;;  %v1261_v21 = vmul.f32 0.01, %v1252_v7 }
 0x7b8   :  { %v5248_v10 = vsel %vm1257_vm5, %v1252_v7, %v1261_v21 }
 0x7b9   :  { %3195 = vmatpush.xpose.msk.msrb.mxu2 %vm904_vm2, %v5248_v10 }
 0x7bd   :  { %3196 = vmatpush.xpose.msk.msrb.mxu2 %vm904_vm2, %v5252_v17 }
 0x7c1   :  { %3197 = vmatpush.xpose.msk.msrb.mxu2 %vm904_vm2, %v5256_v20 }
 0x7c5   :  { %3198 = vmatpush.xpose.msk.msrb.mxu2 %vm904_vm2, %v5260_v28 }
 0x7c8   :  { %3199 = vmatmul.msk.f32.vlgmr.msrb.gmra.mxu2 %vm904_vm2, %v4673_v25 }
 0x7c9   :  { %3202 = vmatpush.xpose.msk.msra.mxu2 %vm943_vm6, %v5167_v26 }
 0x84b   :  { %v1295_v34 = vpop.f32.mrf.mxu2 }
 0x84c   :  { %v1298_v36 = vperm.slane %v1295_v34, 0  ;;  %v3434_v34 = vld [vmem:[#allocation21] ss:$0 sm:$0xff] }
 0x84e   :  { %v1299_v37 = vmul.f32 %v1298_v36, %v5169_v27  ;;  %v1300_v38 = vmul.f32 %v1298_v36, %v5167_v26 }
 0x850   :  { %3201 = vmatmul.msk.f32.vlgmr.msrb.gmra.mxu0 %vm943_vm6, %v1300_v38  ;;  %3203 = vmatmul.msk.f32.vlgmr.msra.gmra.mxu2 %vm943_vm6, %v1299_v37  ;;  %v3435_v38 = vld [vmem:[#allocation23] ss:$0 sm:$0xff] }
 0x858   :  { %3204 = vmatmul.msk.f32.vlgmr.msra.gmra.mxu0 %vm904_vm2, %v5186_v61 }
 0x8cd   :  { %v1321_v39 = vpop.f32.mrf.mxu0 }
 0x8d3   :  { %v1344_v40 = vpop.f32.mrf.mxu2 }
 0x8d4   :  { %v1345_v42 = vadd.f32 %v1344_v40, %v1321_v39 }
 0x8d5   :  { %v1380_v50 = vpop.f32.mrf.mxu0 }
 0x8d6   :  { %v1347_v43 = vadd.f32 %v5181_v41, %v1345_v42 }
 0x8d8   :  { %v1348_v44 = vsel %vm1004_vm9, %v1347_v43, 0.0 }
 0x8d9   :  { %1349 = vadd.xlane.f32.xlu2 %v1348_v44 }
 0x94c   :  { %v1350_v45 = vpop.xlane.xlu2 %1349 }
 0x94d   :  { %3454 = vrsqrt.f32 %v1350_v45  ;;  %vm1358_vm12 = vweird.f32 %v1350_v45  ;;  %vm1351_vm14 = vcmp.gt.f32.partialorder %v1350_v45, 0.0 }
 0x953   :  { %v3455_v27 = vpop.eup %3454 }
 0x954   :  { %v1353_v46 = vmul.f32 %v3455_v27, %v1350_v45  ;;  %vm1359_vm11 = vweird.f32 %v3455_v27 }
 0x955   :  { %vm1360_vm13 = vmor %vm1358_vm12, %vm1359_vm11  ;;  %vm1703_vm11 = vcmask 27648  }
 0x956   :  { %v1354_v26 = vmul.f32 %v3455_v27, %v1353_v46 }
 0x958   :  { %v1355_v47 = vmul.f32 0.5, %v1354_v26 }
 0x95a   :  { %v1356_v48 = vsub.f32 1.5, %v1355_v47 }
 0x95c   :  { %v1357_v49 = vmul.f32 %v3455_v27, %v1356_v48 }
 0x95e   :  { %v1361_v61 = vsel %vm1360_vm13, %v3455_v27, %v1357_v49 }
 0x95f   :  { %v1362_v51 = vsel %vm1351_vm14, %v1361_v61, 0.0 }
 0x960   :  { %v1383_v52 = vmul.f32 %v1380_v50, %v1362_v51 }
 0x962   :  { %1402 = vmatpush.msrb.mxu2 %v1383_v52 }
 0x963   :  { %3205 = vmatmul.msk.f32.vlgmr.msrb.gmra.mxu2 %vm1004_vm9, %v1347_v43 }
 0x9e6   :  { %v1404_v54 = vpop.f32.mrf.mxu2 }
 0x9e7   :  { %v1407_v55 = vmul.f32 %v1404_v54, %v1362_v51  ;;  %v1548_v51 = vld [vmem:[%s4963_s28] sm:$0x3f]  ;;  %s5769_s28 = sld [smem:[#allocation105_spill]] }
 0x9e9   :  { %v1411_v56 = vadd.f32 %v3433_v53, %v1407_v55  ;;  %v3436_v53 = vld [vmem:[#allocation24] ss:$0 sm:$0xff] }
 0x9eb   :  { %vm1412_vm15 = vcmp.ge.f32.partialorder %v1411_v56, 0.0  ;;  %v1413_v57 = vmul.f32 0.01, %v1411_v56 }
 0x9ed   :  { %v5281_v58 = vsel %vm1412_vm15, %v1411_v56, %v1413_v57  ;;  %v1590_v57 = vld [vmem:[#allocation57] sm:$0xf] }
 0x9ee   :  { %3206 = vmatpush.xpose.msk.msrb.mxu3 %vm904_vm2, %v5281_v58  ;;  %1543 = vmatpush.msra.mxu1 %v5281_v58 }
 0x9f1   :  { %3207 = vmatmul.msk.f32.vlgmr.msrb.gmra.mxu3 %vm904_vm2, %v5281_v58 }
 0x9f2   :  { %1612 = vmatpush.msra.mxu3 %v1580_v30 }
 0x9f4   :  { %1613 = vmatpush.msra.mxu3 %v1579_v32 }
 0x9f6   :  { %1614 = vmatpush.msra.mxu3 %v1578_v33 }
 0xa74   :  { %v1435_v59 = vpop.f32.mrf.mxu3 }
 0xa75   :  { %v3208_v60 = vmul.f32 -1.442695, %v1435_v59  ;;  %v1591_v59 = vld [vmem:[#allocation59] sm:$0xf] }
 0xa77   :  { %3456 = vpow2.f32 %v3208_v60  ;;  %v1585_v60 = vld [vmem:[%s5768_s29 + $0x18] sm:$0xff] }
 0xa7d   :  { %v3457_v62 = vpop.eup %3456 }
 0xa7e   :  { %v1441_v24 = vadd.f32 1.0, %v3457_v62  ;;  %v1584_v62 = vld [vmem:[%s5768_s29 + $0x10] sm:$0xff] }
 0xa80   :  { %3458 = vrcp.f32 %v1441_v24  ;;  %v1453_v23 = vand.u32 2147483648, %v1441_v24  ;;  %v1451_v3 = vand.u32 2147483647, %v1441_v24  ;;  %vm1447_vm1 = vweird.f32 %v1441_v24 }
 0xa82   :  { %v1454_v5 = vor.u32 1.1754944e-38, %v1453_v23  ;;  %vm1452_vm5 = vcmp.eq.f32.partialorder %v1451_v3, 8.507059e+37 }
 0xa86   :  { %v3459_v63 = vpop.eup %3458 }
 0xa87   :  { %v1443_v0 = vmul.f32 %v3459_v63, %v1441_v24  ;;  %vm1448_vm0 = vweird.f32 %v3459_v63  ;;  %v1583_v24 = vld [vmem:[%s5768_s29 + $0x8] sm:$0xff] }
 0xa88   :  { %vm1449_vm3 = vmor %vm1447_vm1, %vm1448_vm0  ;;  %vm1766_vm0 = vcmask 31744  }
 0xa89   :  { %v1444_v1 = vsub.f32 1.0, %v1443_v0  ;;  %v1586_v0 = vld [vmem:[%s5769_s28] sm:$0xff] }
 0xa8b   :  { %v1445_v2 = vmul.f32 %v3459_v63, %v1444_v1  ;;  %v1576_v1 = vld [vmem:[#allocation9] sm:$0xf] }
 0xa8d   :  { %v1446_v4 = vadd.f32 %v3459_v63, %v1445_v2 }
 0xa8f   :  { %v1450_v6 = vsel %vm1449_vm3, %v3459_v63, %v1446_v4  ;;  %v1582_v63 = vld [vmem:[%s5768_s29] sm:$0xff] }
 0xa90   :  { %v1455_v7 = vsel %vm1452_vm5, %v1454_v5, %v1450_v6 }
 0xa91   :  { %1472 = vmatpush.msrb.mxu0 %v1455_v7 }
 0xa92   :  { %3209 = vmatmul.msk.f32.vlgmr.msrb.gmra.mxu0 %vm1004_vm9, %v5193_v11 }
 0xa93   :  { %1952 = vmatpush.msra.mxu0 %v5281_v58 }
 0xa9a   :  { %3210 = vmatmul.msk.f32.gmra.mxu0 %vm1004_vm9, %v5198_v13 }
 0xaa2   :  { %3211 = vmatmul.msk.f32.gmra.mxu0 %vm1004_vm9, %v5203_v14 }
 0xaaa   :  { %3212 = vmatmul.msk.f32.gmra.mxu0 %vm1004_vm9, %v5208_v15 }
 0xb0f   :  { %v1474_v21 = vpop.f32.mrf.mxu0 }
 0xb10   :  { %v1486_v29 = vmul.f32 %v1474_v21, %v5213_v16 }
 0xb17   :  { %v1477_v8 = vpop.f32.mrf.mxu0 }
 0xb18   :  { %v1487_v9 = vmul.f32 %v1477_v8, %v5218_v22  ;;  %v1490_v22 = vsel %vm1004_vm9, %v1486_v29, 0.0 }
 0xb1a   :  { %v1493_v18 = vsel %vm1004_vm9, %v1487_v9, 0.0 }
 0xb1b   :  { %1494 = vadd.xlane.f32.xlu2 %v1493_v18 }
 0xb1f   :  { %v1480_v11 = vpop.f32.mrf.mxu0 }
 0xb20   :  { %v1488_v12 = vmul.f32 %v1480_v11, %v5223_v31 }
 0xb22   :  { %v1496_v13 = vsel %vm1004_vm9, %v1488_v12, 0.0 }
 0xb23   :  { %1497 = vadd.xlane.f32.xlu1 %v1496_v13 }
 0xb27   :  { %v1483_v14 = vpop.f32.mrf.mxu0 }
 0xb28   :  { %v1489_v19 = vmul.f32 %v1483_v14, %v5228_v35 }
 0xb2a   :  { %v1499_v15 = vsel %vm1172_vm4, %v1489_v19, 0.0 }
 0xb2b   :  { %1500 = vadd.xlane.f32.xlu0 %v1499_v15 }
 0xb33   :  { %1491 = vadd.xlane.f32.xlu0 %v1490_v22 }
 0xb8e   :  { %v1495_v36 = vpop.xlane.xlu2 %1494 }
 0xb8f   :  { %v1506_v35 = vmul.f32 %v3434_v34, %v1495_v36 }
 0xb91   :  { %v1513_v43 = vadd.f32 %v3435_v38, %v1506_v35 }
 0xb93   :  { %v1517_v27 = vmul.f32 %v1513_v43, %v5256_v20 }
 0xb95   :  { %v5321_v61 = vadd.f32 %v1517_v27, %v5256_v20  ;;  %v1524_v20 = vld [vmem:[#allocation63] sm:$0xf] }
 0xb96   :  { %v1498_v31 = vpop.xlane.xlu1 %1497  ;;  %3213 = vmatmul.msk.f32.vlgmr.msra.gmra.mxu1 %vm1004_vm9, %v1524_v20  ;;  %v5364_v20 = vld [vmem:[%s5770_s4] sm:$0x3f] }
 0xb97   :  { %v1507_v37 = vmul.f32 %v3434_v34, %v1498_v31 }
 0xb99   :  { %v1514_v40 = vadd.f32 %v3435_v38, %v1507_v37 }
 0xb9b   :  { %v1518_v44 = vmul.f32 %v1514_v40, %v5252_v17  ;;  %v1957_v40 = vld [vmem:[#allocation66] sm:$0x3f] }
 0xb9d   :  { %v5317_v48 = vadd.f32 %v1518_v44, %v5252_v17  ;;  %v1577_v17 = vld [vmem:[%s5767_s6] sm:$0xff] }
 0xb9e   :  { %v1501_v39 = vpop.xlane.xlu0 %1500  ;;  %1615 = vmatpush.msra.mxu3 %v1577_v17 }
 0xb9f   :  { %v1508_v42 = vmul.f32 %v3434_v34, %v1501_v39 }
 0xba0   :  { %3221 = vmatpush.xpose.msk.msrb.mxu3 %vm1649_vm10, %v1590_v57 }
 0xba1   :  { %v1515_v16 = vadd.f32 %v3435_v38, %v1508_v42 }
 0xba3   :  { %v1519_v45 = vmul.f32 %v1515_v16, %v5248_v10 }
 0xba5   :  { %v5312_v46 = vadd.f32 %v1519_v45, %v5248_v10 }
 0xba6   :  { %v1492_v26 = vpop.xlane.xlu0 %1491 }
 0xba7   :  { %v1505_v47 = vmul.f32 %v3434_v34, %v1492_v26  ;;  %3214 = vmatpush.msk.msra.mxu2 %vm1552_vm7, %v5312_v46  ;;  %v3437_v34 = vld [vmem:[#allocation26] ss:$0 sm:$0xff] }
 0xba9   :  { %v1512_v49 = vadd.f32 %v3435_v38, %v1505_v47  ;;  %1569 = vmatpush.msra.mxu2 %v5317_v48 }
 0xbab   :  { %v1516_v50 = vmul.f32 %v1512_v49, %v5260_v28  ;;  %1570 = vmatpush.msra.mxu2 %v5321_v61 }
 0xbad   :  { %v5326_v10 = vadd.f32 %v1516_v50, %v5260_v28 }
 0xbaf   :  { %1571 = vmatpush.msra.mxu2 %v5326_v10 }
 0xbb0   :  { %3215 = vmatmul.msk.f32.vlgmr.msra.gmra.mxu2 %vm943_vm6, %v1548_v51 }
 0xbb1   :  { %3219 = vmatpush.xpose.msk.msrb.mxu2 %vm1649_vm10, %v1591_v59 }
 0xbb5   :  { %1757 = vmatpush.msra.mxu2 %v1585_v60  ;;  %v1933_v60 = vld [vmem:[#allocation65] sm:$0xf] }
 0xbb6   :  { %3237 = vmatmul.msk.f32.vlgmr.msra.gmra.mxu0 %vm1004_vm9, %v1933_v60  ;;  %v3442_v60 = vld [vmem:[#allocation35] ss:$0 sm:$0xff] }
 0xbb7   :  { %1758 = vmatpush.msra.mxu2 %v1584_v62  ;;  %v5372_v62 = vld [vmem:[%s5771_s1] sm:$0x3f] }
 0xbb9   :  { %1759 = vmatpush.msra.mxu2 %v1583_v24 }
 0xbbb   :  { %1760 = vmatpush.msra.mxu2 %v1582_v63 }
 0xc13   :  { %v1545_v23 = vpop.f32.mrf.mxu1 }
 0xc33   :  { %v1573_v52 = vpop.f32.mrf.mxu2 }
 0xc34   :  { %3216 = vmatmul.msk.f32.vlgmr.msra.gmra.mxu3 %vm904_vm2, %v1573_v52 }
 0xcb7   :  { %v1617_v54 = vpop.f32.mrf.mxu3 }
 0xcb8   :  { %v1618_v28 = vadd.f32 %v3436_v53, %v1617_v54  ;;  %v1985_v54 = vld [vmem:[#allocation30 + $0x18] sm:$0xff] }
 0xcba   :  { %vm1620_vm8 = vcmp.ge.f32.partialorder %v1618_v28, 0.0  ;;  %v1621_v55 = vmul.f32 0.01, %v1618_v28 }
 0xcbc   :  { %v5334_v56 = vsel %vm1620_vm8, %v1618_v28, %v1621_v55  ;;  %v1984_v28 = vld [vmem:[#allocation30 + $0x10] sm:$0xff]  ;;  %v1983_v55 = vld [vmem:[#allocation30 + $0x8] sm:$0xff] }
 0xcbd   :  { %3217 = vmatpush.xpose.msk.msrb.mxu1 %vm904_vm2, %v5334_v56 }
 0xcc0   :  { %3218 = vmatmul.msk.f32.vlgmr.msrb.gmra.mxu1 %vm904_vm2, %v4673_v25 }
 0xcc1   :  { %1737 = vmatpush.msra.mxu1 %v1586_v0 }
 0xcc8   :  { %3223 = vmatmul.msk.f32.vlgmr.msra.gmra.mxu1 %vm1004_vm9, %v1576_v1  ;;  %v3438_v1 = vld [vmem:[#allocation32] ss:$0 sm:$0xff] }
 0xd3d   :  { %v1643_v2 = vpop.f32.mrf.mxu1 }
 0xd3e   :  { %v1646_v3 = vperm.slane %v1643_v2, 0 }
 0xd40   :  { %v1647_v4 = vmul.f32 %v1646_v3, %v1591_v59  ;;  %v1648_v5 = vmul.f32 %v1646_v3, %v1590_v57  ;;  %v1982_v57 = vld [vmem:[#allocation30] sm:$0xff] }
 0xd42   :  { %3220 = vmatmul.msk.f32.vlgmr.msrb.gmra.mxu2 %vm1649_vm10, %v1648_v5  ;;  %3222 = vmatmul.msk.f32.vlgmr.msrb.gmra.mxu3 %vm1649_vm10, %v1647_v4  ;;  %v1995_v5 = vld [vmem:[#allocation60] sm:$0xf] }
 0xd45   :  { %v1739_v15 = vpop.f32.mrf.mxu1 }
 0xd4a   :  { %3224 = vmatmul.msk.f32.vlgmr.msra.gmra.mxu2 %vm904_vm2, %v1545_v23 }
 0xdc5   :  { %v1673_v6 = vpop.f32.mrf.mxu2  ;;  %v1699_v7 = vpop.f32.mrf.mxu3 }
 0xdc6   :  { %v1700_v21 = vadd.f32 %v1699_v7, %v1673_v6  ;;  %v1996_v6 = vld [vmem:[#allocation62] sm:$0xf] }
 0xdc7   :  { %v1990_v7 = vld [vmem:[#allocation33 + $0x18] sm:$0xff] }
 0xdc8   :  { %v1702_v8 = vadd.f32 %v5181_v41, %v1700_v21  ;;  %v1989_v21 = vld [vmem:[#allocation33 + $0x10] sm:$0xff] }
 0xdca   :  { %v1704_v9 = vsel %vm1703_vm11, %v1702_v8, 0.0 }
 0xdcb   :  { %1705 = vadd.xlane.f32.xlu1 %v1704_v9  ;;  %v3440_v9 = vld [vmem:[#allocation29] ss:$0 sm:$0xff] }
 0xdcd   :  { %v1762_v29 = vpop.f32.mrf.mxu2 }
 0xdce   :  { %v1763_v30 = vadd.f32 %v1762_v29, %v1739_v15  ;;  %v1981_v15 = vld [vmem:[#allocation8] sm:$0xf] }
 0xe3e   :  { %v1706_v18 = vpop.xlane.xlu1 %1705 }
 0xe3f   :  { %3460 = vrsqrt.f32 %v1706_v18  ;;  %vm1714_vm13 = vweird.f32 %v1706_v18  ;;  %vm1707_vm15 = vcmp.gt.f32.partialorder %v1706_v18, 0.0 }
 0xe45   :  { %v3461_v11 = vpop.eup %3460 }
 0xe46   :  { %v1709_v12 = vmul.f32 %v3461_v11, %v1706_v18  ;;  %vm1715_vm12 = vweird.f32 %v3461_v11 }
 0xe47   :  { %vm1716_vm14 = vmor %vm1714_vm13, %vm1715_vm12  ;;  %vm1870_vm13 = vcmask 29696  }
 0xe48   :  { %v1710_v13 = vmul.f32 %v3461_v11, %v1709_v12  ;;  %v1988_v12 = vld [vmem:[#allocation33 + $0x8] sm:$0xff] }
 0xe4a   :  { %v1711_v14 = vmul.f32 0.5, %v1710_v13  ;;  %v1991_v13 = vld [vmem:[%s5772_s2] sm:$0xff] }
 0xe4c   :  { %v1712_v19 = vsub.f32 1.5, %v1711_v14  ;;  %v1987_v14 = vld [vmem:[#allocation33] sm:$0xff] }
 0xe4e   :  { %v1713_v22 = vmul.f32 %v3461_v11, %v1712_v19 }
 0xe50   :  { %v1717_v32 = vsel %vm1716_vm14, %v3461_v11, %v1713_v22 }
 0xe51   :  { %v1718_v33 = vsel %vm1707_vm15, %v1717_v32, 0.0  ;;  %vm1900_vm15 = vcmask 1045504   ;;  %v2316_v32 = vld [vmem:[#allocation39 + $0x18] sm:$0xff] }
 0xe52   :  { %v1765_v31 = vmul.f32 %v1763_v30, %v1718_v33  ;;  %v5389_v30 = vld [vmem:[%s4973_s16] sm:$0xff] }
 0xe54   :  { %3225 = vmatpush.msk.msra.mxu3 %vm1552_vm7, %v1765_v31  ;;  %v2314_v31 = vld [vmem:[#allocation39 + $0x8] sm:$0xff] }
 0xe55   :  { %3226 = vmatmul.msk.f32.vlgmr.msra.gmra.mxu3 %vm1766_vm0, %v1702_v8  ;;  %v3439_v8 = vld [vmem:[#allocation27] ss:$0 sm:$0xff] }
 0xed8   :  { %v1790_v36 = vpop.f32.mrf.mxu3 }
 0xed9   :  { %v1793_v37 = vmul.f32 %v1790_v36, %v1718_v33  ;;  %v2315_v33 = vld [vmem:[#allocation39 + $0x10] sm:$0xff]  ;;  %v2313_v36 = vld [vmem:[#allocation39] sm:$0xff] }
 0xedb   :  { %v1797_v38 = vadd.f32 %v3437_v34, %v1793_v37  ;;  %v1954_v34 = vpop.f32.mrf.mxu0  ;;  %v5395_v37 = vld [vmem:[%s4973_s16 + $0x8] sm:$0xff] }
 0xedd   :  { %vm1798_vm1 = vcmp.ge.f32.partialorder %v1797_v38, 0.0  ;;  %v1799_v35 = vmul.f32 0.01, %v1797_v38 }
 0xedf   :  { %v1800_v39 = vsel %vm1798_vm1, %v1797_v38, %v1799_v35  ;;  %v5400_v38 = vld [vmem:[%s4973_s16 + $0x10] sm:$0xff] }
 0xee0   :  { %3227 = vmatpush.xpose.msk.msrb.mxu1 %vm904_vm2, %v1800_v39 }
 0xee3   :  { %3228 = vmatmul.msk.f32.vlgmr.msrb.gmra.mxu1 %vm904_vm2, %v1800_v39 }
 0xee4   :  { %3238 = vmatpush.msk.msra.mxu1 %vm1552_vm7, %v5312_v46 }
 0xee6   :  { %1974 = vmatpush.msra.mxu1 %v5317_v48 }
 0xee8   :  { %1975 = vmatpush.msra.mxu1 %v5321_v61 }
 0xeea   :  { %1976 = vmatpush.msra.mxu1 %v5326_v10 }
 0xeeb   :  { %3239 = vmatmul.msk.f32.vlgmr.msra.gmra.mxu1 %vm943_vm6, %v1957_v40 }
 0xeec   :  { %3243 = vmatpush.xpose.msk.msrb.mxu1 %vm1649_vm10, %v1996_v6 }
 0xef0   :  { %2158 = vmatpush.msra.mxu1 %v1990_v7 }
 0xef2   :  { %2159 = vmatpush.msra.mxu1 %v1989_v21 }
 0xef4   :  { %2160 = vmatpush.msra.mxu1 %v1988_v12 }
 0xef6   :  { %2161 = vmatpush.msra.mxu1 %v1987_v14 }
 0xf60   :  { %v1821_v42 = vpop.f32.mrf.mxu1 }
 0xf61   :  { %v3229_v43 = vmul.f32 -1.442695, %v1821_v42  ;;  %v5407_v42 = vld [vmem:[%s4973_s16 + $0x18] sm:$0xf]  ;;  %s5773_s16 = sld [smem:[#allocation113_spill]] }
 0xf63   :  { %3462 = vpow2.f32 %v3229_v43 }
 0xf68   :  { %v1978_v59 = vpop.f32.mrf.mxu1 }
 0xf69   :  { %v3463_v16 = vpop.eup %3462 }
 0xf6a   :  { %v1827_v44 = vadd.f32 1.0, %v3463_v16 }
 0xf6c   :  { %3464 = vrcp.f32 %v1827_v44  ;;  %v1839_v47 = vand.u32 2147483648, %v1827_v44  ;;  %v1837_v50 = vand.u32 2147483647, %v1827_v44  ;;  %vm1833_vm5 = vweird.f32 %v1827_v44 }
 0xf6e   :  { %v1840_v17 = vor.u32 1.1754944e-38, %v1839_v47  ;;  %vm1838_vm12 = vcmp.eq.f32.partialorder %v1837_v50, 8.507059e+37 }
 0xf72   :  { %v3465_v45 = vpop.eup %3464 }
 0xf73   :  { %v1829_v27 = vmul.f32 %v3465_v45, %v1827_v44  ;;  %vm1834_vm3 = vweird.f32 %v3465_v45 }
 0xf74   :  { %vm1835_vm8 = vmor %vm1833_vm5, %vm1834_vm3 }
 0xf75   :  { %v1830_v26 = vsub.f32 1.0, %v1829_v27 }
 0xf77   :  { %v1831_v49 = vmul.f32 %v3465_v45, %v1830_v26 }
 0xf79   :  { %v1832_v51 = vadd.f32 %v3465_v45, %v1831_v49 }
 0xf7b   :  { %v1836_v52 = vsel %vm1835_vm8, %v3465_v45, %v1832_v51 }
 0xf7c   :  { %v1841_v53 = vsel %vm1838_vm12, %v1840_v17, %v1836_v52 }
 0xf7d   :  { %3230 = vmatpush.msk.msrb.mxu2 %vm1552_vm7, %v1841_v53 }
 0xf7e   :  { %3231 = vmatmul.msk.f32.vlgmr.msrb.gmra.mxu2 %vm1766_vm0, %v5364_v20 }
 0xf7f   :  { %2015 = vmatpush.msra.mxu2 %v1985_v54 }
 0xf81   :  { %2016 = vmatpush.msra.mxu2 %v1984_v28 }
 0xf83   :  { %2017 = vmatpush.msra.mxu2 %v1983_v55 }
 0xf85   :  { %2018 = vmatpush.msra.mxu2 %v1982_v57 }
 0xf86   :  { %3240 = vmatmul.msk.f32.vlgmr.msra.gmra.mxu2 %vm904_vm2, %v1978_v59 }
 0xf87   :  { %3245 = vmatpush.xpose.msk.msrb.mxu2 %vm1649_vm10, %v1995_v5 }
0x1001   :  { %v1866_v24 = vpop.f32.mrf.mxu2 }
0x1002   :  { %v1869_v63 = vmul.f32 %v1866_v24, %v5372_v62 }
0x1004   :  { %v1871_v0 = vsel %vm1870_vm13, %v1869_v63, 0.0 }
0x1005   :  { %1872 = vadd.xlane.f32.xlu0 %v1871_v0 }
0x1009   :  { %v2020_v23 = vpop.f32.mrf.mxu2 }
0x100a   :  { %v2021_v2 = vadd.f32 %v3438_v1, %v2020_v23 }
0x100c   :  { %vm2023_vm14 = vcmp.ge.f32.partialorder %v2021_v2, 0.0  ;;  %v2024_v3 = vmul.f32 0.01, %v2021_v2 }
0x100e   :  { %v5376_v4 = vsel %vm2023_vm14, %v2021_v2, %v2024_v3 }
0x100f   :  { %3241 = vmatpush.xpose.msk.msrb.mxu0 %vm904_vm2, %v5376_v4 }
0x1012   :  { %3242 = vmatmul.msk.f32.vlgmr.msrb.gmra.mxu0 %vm904_vm2, %v4673_v25 }
0x1013   :  { %2138 = vmatpush.msra.mxu0 %v1991_v13 }
0x101a   :  { %3247 = vmatmul.msk.f32.vlgmr.msra.gmra.mxu0 %vm1004_vm9, %v1981_v15 }
0x1078   :  { %v1873_v18 = vpop.xlane.xlu0 %1872 }
0x1079   :  { %v1877_v11 = vmul.f32 %v3439_v8, %v1873_v18 }
0x107b   :  { %v1881_v19 = vadd.f32 %v3440_v9, %v1877_v11 }
0x107d   :  { %v1882_v29 = vmul.f32 %v1881_v19, %v5334_v56 }
0x107f   :  { %v1883_v22 = vadd.f32 %v1882_v29, %v5334_v56 }
0x1081   :  { %3232 = vmatpush.msk.msrb.mxu3 %vm1900_vm15, %v1883_v22 }
0x1082   :  { %3233 = vmatmul.msk.f32.vlgmr.msrb.gmra.mxu3 %vm1649_vm10, %v5389_v30 }
0x1083   :  { %2354 = vmatpush.msra.mxu3 %v2316_v32 }
0x1085   :  { %2355 = vmatpush.msra.mxu3 %v2315_v33 }
0x1087   :  { %2356 = vmatpush.msra.mxu3 %v2314_v31 }
0x1089   :  { %2357 = vmatpush.msra.mxu3 %v2313_v36 }
0x108a   :  { %3234 = vmatmul.msk.f32.gmra.mxu3 %vm1649_vm10, %v5395_v37 }
0x108b   :  { %2694 = vmatpush.msrb.mxu3 %v2316_v32 }
0x108d   :  { %2695 = vmatpush.msrb.mxu3 %v2315_v33 }
0x108f   :  { %v2046_v56 = vpop.f32.mrf.mxu0  ;;  %2696 = vmatpush.msrb.mxu3 %v2314_v31 }
0x1090   :  { %v2049_v35 = vperm.slane %v2046_v56, 0  ;;  %v3444_v56 = vld [vmem:[#allocation38] ss:$0 sm:$0xff] }
0x1091   :  { %2697 = vmatpush.msrb.mxu3 %v2313_v36 }
0x1092   :  { %v2050_v39 = vmul.f32 %v2049_v35, %v1996_v6  ;;  %v2051_v40 = vmul.f32 %v2049_v35, %v1995_v5  ;;  %3235 = vmatmul.msk.f32.gmra.mxu3 %vm1649_vm10, %v5400_v38  ;;  %v5435_v35 = vld [vmem:[#allocation41] ss:$0 sm:$0xff] }
0x1094   :  { %3246 = vmatmul.msk.f32.vlgmr.msrb.gmra.mxu2 %vm1649_vm10, %v2050_v39  ;;  %3244 = vmatmul.msk.f32.vlgmr.msrb.gmra.mxu1 %vm1649_vm10, %v2051_v40 }
0x1097   :  { %v2140_v52 = vpop.f32.mrf.mxu0 }
0x109a   :  { %3236 = vmatmul.msk.f32.gmra.mxu3 %vm1649_vm10, %v5407_v42 }
0x109c   :  { %3248 = vmatmul.msk.f32.vlgmr.msra.gmra.mxu1 %vm904_vm2, %v1954_v34  ;;  %v3443_v34 = vld [vmem:[#allocation36] ss:$0 sm:$0xff] }
0x10a2   :  { %3261 = vmatmul.msk.f32.vlgmr.msra.gmra.mxu3 %vm904_vm2, %v5326_v10 }
0x10aa   :  { %3262 = vmatmul.msk.f32.gmra.mxu3 %vm904_vm2, %v5321_v61 }
0x10b2   :  { %3263 = vmatmul.msk.f32.gmra.mxu3 %vm904_vm2, %v5317_v48 }
0x10ba   :  { %3264 = vmatmul.msk.f32.gmra.mxu3 %vm904_vm2, %v5312_v46 }
0x1105   :  { %v1921_v43 = vpop.f32.mrf.mxu3 }
0x110d   :  { %v1924_v16 = vpop.f32.mrf.mxu3 }
0x1111   :  { %v2075_v45 = vpop.f32.mrf.mxu1 }
0x1115   :  { %v1927_v44 = vpop.f32.mrf.mxu3 }
0x1117   :  { %v2101_v27 = vpop.f32.mrf.mxu2 }
0x1118   :  { %v2102_v26 = vadd.f32 %v2101_v27, %v2075_v45 }
0x1119   :  { %v2163_v53 = vpop.f32.mrf.mxu1 }
0x111a   :  { %v2104_v47 = vadd.f32 %v5181_v41, %v2102_v26  ;;  %v2164_v28 = vadd.f32 %v2163_v53, %v2140_v52 }
0x111c   :  { %v2105_v49 = vsel %vm1703_vm11, %v2104_v47, 0.0 }
0x111d   :  { %2106 = vadd.xlane.f32.xlu2 %v2105_v49  ;;  %v1930_v10 = vpop.f32.mrf.mxu3 }
0x111e   :  { %3310 = vmatpush.xpose.msk.msra.mxu3 %vm904_vm2, %v1930_v10 }
0x1122   :  { %3311 = vmatpush.xpose.msk.msra.mxu3 %vm904_vm2, %v1927_v44 }
0x1125   :  { %v2359_v32 = vpop.f32.mrf.mxu3 }
0x1126   :  { %3312 = vmatpush.xpose.msk.msra.mxu3 %vm904_vm2, %v1924_v16  ;;  %v2360_v49 = vadd.f32 %v5435_v35, %v2359_v32 }
0x112a   :  { %3313 = vmatpush.xpose.msk.msra.mxu3 %vm904_vm2, %v1921_v43 }
0x112d   :  { %v2362_v33 = vpop.f32.mrf.mxu3 }
0x112e   :  { %v2363_v27 = vadd.f32 %v5435_v35, %v2362_v33 }
0x1130   :  { %v2376_v10 = vmul.f32 0.01, %v2363_v27 }
0x1135   :  { %v2365_v31 = vpop.f32.mrf.mxu3 }
0x113d   :  { %v2368_v36 = vpop.f32.mrf.mxu3 }
0x113e   :  { %v2369_v43 = vadd.f32 %v5435_v35, %v2368_v36 }
0x1140   :  { %v2378_v44 = vmul.f32 0.01, %v2369_v43 }
0x1190   :  { %v2107_v46 = vpop.xlane.xlu2 %2106 }
0x1191   :  { %3466 = vrsqrt.f32 %v2107_v46  ;;  %vm2115_vm11 = vweird.f32 %v2107_v46  ;;  %vm2108_vm5 = vcmp.gt.f32.partialorder %v2107_v46, 0.0 }
0x1197   :  { %v3467_v48 = vpop.eup %3466 }
0x1198   :  { %v2110_v61 = vmul.f32 %v3467_v48, %v2107_v46  ;;  %vm2116_vm1 = vweird.f32 %v3467_v48 }
0x1199   :  { %vm2117_vm3 = vmor %vm2115_vm11, %vm2116_vm1 }
0x119a   :  { %v2111_v50 = vmul.f32 %v3467_v48, %v2110_v61  ;;  %v5472_v61 = vld [vmem:[#allocation54] sm:$0xff] }
0x119c   :  { %v2112_v51 = vmul.f32 0.5, %v2111_v50 }
0x119e   :  { %v2113_v17 = vsub.f32 1.5, %v2112_v51 }
0x11a0   :  { %v2114_v54 = vmul.f32 %v3467_v48, %v2113_v17  ;;  %v2312_v17 = vld [vmem:[#allocation6] sm:$0xff] }
0x11a2   :  { %v2118_v55 = vsel %vm2117_vm3, %v3467_v48, %v2114_v54 }
0x11a3   :  { %v2119_v57 = vsel %vm2108_vm5, %v2118_v55, 0.0  ;;  %v2321_v55 = vld [vmem:[#allocation42 + $0x18] sm:$0xff] }
0x11a4   :  { %v2166_v59 = vmul.f32 %v2164_v28, %v2119_v57 }
0x11a6   :  { %3249 = vmatpush.msk.msra.mxu2 %vm1552_vm7, %v2166_v59  ;;  %v2319_v59 = vld [vmem:[#allocation42 + $0x8] sm:$0xff] }
0x11a7   :  { %3250 = vmatmul.msk.f32.vlgmr.msra.gmra.mxu2 %vm1766_vm0, %v2104_v47 }
0x122a   :  { %v2190_v24 = vpop.f32.mrf.mxu2 }
0x122b   :  { %v2193_v63 = vmul.f32 %v2190_v24, %v2119_v57  ;;  %v2320_v57 = vld [vmem:[#allocation42 + $0x10] sm:$0xff] }
0x122d   :  { %v2197_v0 = vadd.f32 %v3442_v60, %v2193_v63  ;;  %v2318_v60 = vld [vmem:[#allocation42] sm:$0xff] }
0x122f   :  { %vm2198_vm8 = vcmp.ge.f32.partialorder %v2197_v0, 0.0  ;;  %v2199_v1 = vmul.f32 0.01, %v2197_v0 }
0x1231   :  { %v2200_v23 = vsel %vm2198_vm8, %v2197_v0, %v2199_v1 }
0x1232   :  { %3251 = vmatpush.xpose.msk.msrb.mxu0 %vm904_vm2, %v2200_v23 }
0x1235   :  { %3252 = vmatmul.msk.f32.vlgmr.msrb.gmra.mxu0 %vm904_vm2, %v2200_v23 }
0x12b2   :  { %v2221_v2 = vpop.f32.mrf.mxu0 }
0x12b3   :  { %v3253_v3 = vmul.f32 -1.442695, %v2221_v2 }
0x12b5   :  { %3468 = vpow2.f32 %v3253_v3 }
0x12bb   :  { %v3469_v5 = vpop.eup %3468 }
0x12bc   :  { %v2227_v6 = vadd.f32 1.0, %v3469_v5 }
0x12be   :  { %3470 = vrcp.f32 %v2227_v6  ;;  %v2239_v9 = vand.u32 2147483648, %v2227_v6  ;;  %v2237_v11 = vand.u32 2147483647, %v2227_v6  ;;  %vm2233_vm14 = vweird.f32 %v2227_v6 }
0x12c0   :  { %v2240_v13 = vor.u32 1.1754944e-38, %v2239_v9  ;;  %vm2238_vm11 = vcmp.eq.f32.partialorder %v2237_v11, 8.507059e+37 }
0x12c4   :  { %v3471_v7 = vpop.eup %3470 }
0x12c5   :  { %v2229_v21 = vmul.f32 %v3471_v7, %v2227_v6  ;;  %vm2234_vm12 = vweird.f32 %v3471_v7 }
0x12c6   :  { %vm2235_vm1 = vmor %vm2233_vm14, %vm2234_vm12 }
0x12c7   :  { %v2230_v8 = vsub.f32 1.0, %v2229_v21 }
0x12c9   :  { %v2231_v18 = vmul.f32 %v3471_v7, %v2230_v8 }
0x12cb   :  { %v2232_v12 = vadd.f32 %v3471_v7, %v2231_v18 }
0x12cd   :  { %v2236_v14 = vsel %vm2235_vm1, %v3471_v7, %v2232_v12 }
0x12ce   :  { %v2241_v19 = vsel %vm2238_vm11, %v2240_v13, %v2236_v14 }
0x12cf   :  { %3254 = vmatpush.msk.msrb.mxu1 %vm1552_vm7, %v2241_v19  ;;  %vm2374_vm7 = vcmp.ge.f32.partialorder %v2369_v43, 0.0  ;;  %v5500_v19 = vld [vmem:[#allocation44] ss:$0 sm:$0xff] }
0x12d0   :  { %3255 = vmatmul.msk.f32.vlgmr.msrb.gmra.mxu1 %vm1766_vm0, %v5364_v20  ;;  %v5443_v47 = vsel %vm2374_vm7, %v2369_v43, %v2378_v44 }
0x134d   :  { %v2263_v15 = vpop.f32.mrf.mxu1 }
0x134e   :  { %v2266_v29 = vmul.f32 %v2263_v15, %v5372_v62  ;;  %v2366_v62 = vadd.f32 %v5435_v35, %v2365_v31 }
0x1350   :  { %v2267_v22 = vsel %vm1870_vm13, %v2266_v29, 0.0  ;;  %v2377_v26 = vmul.f32 0.01, %v2366_v62  ;;  %vm2373_vm0 = vcmp.ge.f32.partialorder %v2366_v62, 0.0  ;;  %vm2372_vm13 = vcmp.ge.f32.partialorder %v2363_v27, 0.0 }
0x1351   :  { %2268 = vadd.xlane.f32.xlu1 %v2267_v22  ;;  %v5456_v48 = vsel %vm2372_vm13, %v2363_v27, %v2376_v10  ;;  %v5519_v10 = vld [vmem:[%s5763_s0 + $0x8] sm:$0xff] }
0x1352   :  { %v5450_v46 = vsel %vm2373_vm0, %v2366_v62, %v2377_v26 }
0x13c4   :  { %v2269_v39 = vpop.xlane.xlu1 %2268 }
0x13c5   :  { %v2273_v40 = vmul.f32 %v3443_v34, %v2269_v39 }
0x13c7   :  { %v2277_v16 = vadd.f32 %v3444_v56, %v2273_v40 }
0x13c9   :  { %v2278_v20 = vmul.f32 %v2277_v16, %v5376_v4 }
0x13cb   :  { %v2279_v45 = vadd.f32 %v2278_v20, %v5376_v4  ;;  %v2375_v4 = vmul.f32 0.01, %v2360_v49 }
0x13cd   :  { %3256 = vmatpush.msk.msrb.mxu2 %vm1900_vm15, %v2279_v45  ;;  %vm2371_vm15 = vcmp.ge.f32.partialorder %v2360_v49, 0.0 }
0x13ce   :  { %3257 = vmatmul.msk.f32.vlgmr.msrb.gmra.mxu2 %vm1649_vm10, %v5389_v30  ;;  %v5460_v30 = vsel %vm2371_vm15, %v2360_v49, %v2375_v4  ;;  %v5510_v49 = vld [vmem:[%s5763_s0] sm:$0xff]  ;;  %v5528_v4 = vld [vmem:[%s5763_s0 + $0x10] sm:$0xff] }
0x13cf   :  { %3265 = vmatpush.xpose.msk.msra.mxu2 %vm904_vm2, %v5443_v47 }
0x13d3   :  { %3266 = vmatpush.xpose.msk.msra.mxu2 %vm904_vm2, %v5450_v46 }
0x13d6   :  { %3258 = vmatmul.msk.f32.gmra.mxu2 %vm1649_vm10, %v5395_v37  ;;  %v5470_v37 = vld [vmem:[#allocation56] sm:$0xff] }
0x13d7   :  { %3267 = vmatpush.xpose.msk.msra.mxu2 %vm904_vm2, %v5456_v48  ;;  %3270 = vmatpush.xpose.msk.msra.mxu1 %vm943_vm6, %v5470_v37 }
0x13db   :  { %3268 = vmatpush.xpose.msk.msra.mxu2 %vm904_vm2, %v5460_v30  ;;  %3272 = vmatpush.xpose.msk.msrb.mxu1 %vm943_vm6, %v5472_v61 }
0x13de   :  { %3259 = vmatmul.msk.f32.gmra.mxu2 %vm1649_vm10, %v5400_v38  ;;  %v2322_v38 = vld [vmem:[%s5773_s16] sm:$0xff] }
0x13df   :  { %2504 = vmatpush.msra.mxu0 %v2322_v38  ;;  %v5533_v38 = vld [vmem:[%s5763_s0 + $0x18] sm:$0xf] }
0x13e0   :  { %3274 = vmatmul.msk.f32.vlgmr.msra.gmra.mxu0 %vm1004_vm9, %v2312_v17 }
0x13e6   :  { %3260 = vmatmul.msk.f32.gmra.mxu2 %vm1649_vm10, %v5407_v42 }
0x13ee   :  { %3269 = vmatmul.msk.f32.vlgmr.msra.gmra.mxu2 %vm904_vm2, %v4673_v25 }
0x1451   :  { %v5478_v50 = vpop.f32.mrf.mxu2 }
0x1459   :  { %v5480_v51 = vpop.f32.mrf.mxu2 }
0x145d   :  { %v2506_v9 = vpop.f32.mrf.mxu0 }
0x1461   :  { %v5483_v42 = vpop.f32.mrf.mxu2 }
0x1469   :  { %v5486_v52 = vpop.f32.mrf.mxu2 }
0x1471   :  { %v2412_v53 = vpop.f32.mrf.mxu2 }
0x1472   :  { %v2415_v54 = vperm.slane %v2412_v53, 0  ;;  %v5543_v53 = vld [vmem:[%s5764_s23 + $0x8] sm:$0xff] }
0x1474   :  { %v2417_v28 = vmul.f32 %v2415_v54, %v5472_v61  ;;  %v2416_v24 = vmul.f32 %v2415_v54, %v5470_v37 }
0x1476   :  { %3271 = vmatmul.msk.f32.vlgmr.msra.gmra.mxu1 %vm943_vm6, %v2417_v28 }
0x1477   :  { %2521 = vmatpush.msra.mxu1 %v2321_v55 }
0x1479   :  { %2522 = vmatpush.msra.mxu1 %v2320_v57  ;;  %v5548_v57 = vld [vmem:[%s5764_s23 + $0x10] sm:$0xff] }
0x147b   :  { %2523 = vmatpush.msra.mxu1 %v2319_v59 }
0x147d   :  { %2524 = vmatpush.msra.mxu1 %v2318_v60 }
0x147e   :  { %3273 = vmatmul.msk.f32.vlgmr.msrb.gmra.mxu1 %vm943_vm6, %v2416_v24 }
0x1486   :  { %3275 = vmatmul.msk.f32.vlgmr.msra.gmra.mxu1 %vm904_vm2, %v5281_v58 }
0x14f3   :  { %v2441_v63 = vpop.f32.mrf.mxu1 }
0x14fb   :  { %v2467_v0 = vpop.f32.mrf.mxu1 }
0x14fc   :  { %v2468_v1 = vadd.f32 %v2467_v0, %v2441_v63  ;;  %v5553_v63 = vld [vmem:[%s5764_s23 + $0x18] sm:$0xf] }
0x14fe   :  { %v2470_v23 = vadd.f32 %v5181_v41, %v2468_v1 }
0x1500   :  { %v2471_v2 = vsel %vm1004_vm9, %v2470_v23, 0.0 }
0x1501   :  { %2472 = vadd.xlane.f32.xlu2 %v2471_v2  ;;  %v5559_v2 = vld [vmem:[#allocation47] ss:$0 sm:$0xff] }
0x1503   :  { %v2526_v18 = vpop.f32.mrf.mxu1 }
0x1504   :  { %v5496_v58 = vadd.f32 %v2526_v18, %v2506_v9 }
0x1574   :  { %v2473_v3 = vpop.xlane.xlu2 %2472 }
0x1575   :  { %3472 = vrsqrt.f32 %v2473_v3  ;;  %vm2481_vm3 = vweird.f32 %v2473_v3  ;;  %vm2474_vm8 = vcmp.gt.f32.partialorder %v2473_v3, 0.0 }
0x157b   :  { %v3473_v5 = vpop.eup %3472 }
0x157c   :  { %v2476_v6 = vmul.f32 %v3473_v5, %v2473_v3  ;;  %vm2482_vm10 = vweird.f32 %v3473_v5 }
0x157d   :  { %vm2483_vm5 = vmor %vm2481_vm3, %vm2482_vm10 }
0x157e   :  { %v2477_v7 = vmul.f32 %v3473_v5, %v2476_v6 }
0x1580   :  { %v2478_v21 = vmul.f32 0.5, %v2477_v7 }
0x1582   :  { %v2479_v8 = vsub.f32 1.5, %v2478_v21 }
0x1584   :  { %v2480_v11 = vmul.f32 %v3473_v5, %v2479_v8 }
0x1586   :  { %v2484_v12 = vsel %vm2483_vm5, %v3473_v5, %v2480_v11 }
0x1587   :  { %v2485_v13 = vsel %vm2474_vm8, %v2484_v12, 0.0 }
0x1588   :  { %v2529_v14 = vmul.f32 %v5496_v58, %v2485_v13 }
0x158a   :  { %2548 = vmatpush.msrb.mxu0 %v2529_v14 }
0x158b   :  { %3276 = vmatmul.msk.f32.vlgmr.msrb.gmra.mxu0 %vm1004_vm9, %v2470_v23  ;;  %v5557_v23 = vld [vmem:[#allocation45] ss:$0 sm:$0xff] }
0x1608   :  { %v2550_v15 = vpop.f32.mrf.mxu0 }
0x1609   :  { %v2553_v29 = vmul.f32 %v2550_v15, %v2485_v13 }
0x160b   :  { %v2557_v22 = vadd.f32 %v5500_v19, %v2553_v29 }
0x160d   :  { %vm2558_vm12 = vcmp.ge.f32.partialorder %v2557_v22, 0.0  ;;  %v2559_v32 = vmul.f32 0.01, %v2557_v22 }
0x160f   :  { %v2560_v33 = vsel %vm2558_vm12, %v2557_v22, %v2559_v32 }
0x1610   :  { %3277 = vmatpush.xpose.msk.msrb.mxu1 %vm904_vm2, %v2560_v33 }
0x1613   :  { %3278 = vmatmul.msk.f32.vlgmr.msrb.gmra.mxu1 %vm904_vm2, %v2560_v33 }
0x1614   :  { %3293 = vmatpush.xpose.msk.msra.mxu1 %vm943_vm6, %v5470_v37 }
0x1618   :  { %3295 = vmatpush.xpose.msk.msrb.mxu1 %vm943_vm6, %v5472_v61 }
0x1690   :  { %v2581_v31 = vpop.f32.mrf.mxu1 }
0x1691   :  { %v3279_v34 = vmul.f32 -1.442695, %v2581_v31 }
0x1693   :  { %3474 = vpow2.f32 %v3279_v34 }
0x1699   :  { %v3475_v36 = vpop.eup %3474 }
0x169a   :  { %v2587_v56 = vadd.f32 1.0, %v3475_v36 }
0x169c   :  { %3476 = vrcp.f32 %v2587_v56  ;;  %v2599_v16 = vand.u32 2147483648, %v2587_v56  ;;  %v2597_v62 = vand.u32 2147483647, %v2587_v56  ;;  %vm2593_vm1 = vweird.f32 %v2587_v56 }
0x169e   :  { %v2600_v45 = vor.u32 1.1754944e-38, %v2599_v16  ;;  %vm2598_vm7 = vcmp.eq.f32.partialorder %v2597_v62, 8.507059e+37 }
0x16a2   :  { %v3477_v39 = vpop.eup %3476 }
0x16a3   :  { %v2589_v40 = vmul.f32 %v3477_v39, %v2587_v56  ;;  %vm2594_vm14 = vweird.f32 %v3477_v39 }
0x16a4   :  { %vm2595_vm11 = vmor %vm2593_vm1, %vm2594_vm14 }
0x16a5   :  { %v2590_v43 = vsub.f32 1.0, %v2589_v40 }
0x16a7   :  { %v2591_v20 = vmul.f32 %v3477_v39, %v2590_v43 }
0x16a9   :  { %v2592_v44 = vadd.f32 %v3477_v39, %v2591_v20 }
0x16ab   :  { %v2596_v27 = vsel %vm2595_vm11, %v3477_v39, %v2592_v44 }
0x16ac   :  { %v2601_v26 = vsel %vm2598_vm7, %v2600_v45, %v2596_v27 }
0x16ad   :  { %2618 = vmatpush.msrb.mxu2 %v2601_v26 }
0x16ae   :  { %3280 = vmatmul.msk.f32.vlgmr.msrb.gmra.mxu2 %vm1004_vm9, %v5510_v49 }
0x16af   :  { %3305 = vmatpush.xpose.msk.msra.mxu2 %vm904_vm2, %v5486_v52 }
0x16b3   :  { %3306 = vmatpush.xpose.msk.msra.mxu2 %vm904_vm2, %v5483_v42  ;;  %v5538_v42 = vld [vmem:[%s5764_s23] sm:$0xff] }
0x16b6   :  { %3281 = vmatmul.msk.f32.gmra.mxu2 %vm1004_vm9, %v5519_v10 }
0x16b7   :  { %3307 = vmatpush.xpose.msk.msra.mxu2 %vm904_vm2, %v5480_v51 }
0x16bb   :  { %3308 = vmatpush.xpose.msk.msra.mxu2 %vm904_vm2, %v5478_v50 }
0x16be   :  { %3282 = vmatmul.msk.f32.gmra.mxu2 %vm1004_vm9, %v5528_v4 }
0x16c6   :  { %3283 = vmatmul.msk.f32.gmra.mxu2 %vm1004_vm9, %v5533_v38 }
0x1731   :  { %v2620_v17 = vpop.f32.mrf.mxu2 }
0x1732   :  { %v2632_v51 = vmul.f32 %v5538_v42, %v2620_v17 }
0x1734   :  { %v2636_v52 = vsel %vm1004_vm9, %v2632_v51, 0.0 }
0x1735   :  { %2637 = vadd.xlane.f32.xlu0 %v2636_v52 }
0x1739   :  { %v2623_v50 = vpop.f32.mrf.mxu2 }
0x173a   :  { %v2633_v54 = vmul.f32 %v5543_v53, %v2623_v50 }
0x173c   :  { %v2639_v28 = vsel %vm1004_vm9, %v2633_v54, 0.0 }
0x173d   :  { %2640 = vadd.xlane.f32.xlu1 %v2639_v28 }
0x1741   :  { %v2626_v55 = vpop.f32.mrf.mxu2 }
0x1742   :  { %v2634_v59 = vmul.f32 %v5548_v57, %v2626_v55 }
0x1744   :  { %v2642_v60 = vsel %vm1004_vm9, %v2634_v59, 0.0 }
0x1745   :  { %2643 = vadd.xlane.f32.xlu2 %v2642_v60 }
0x1749   :  { %v2629_v24 = vpop.f32.mrf.mxu2 }
0x174a   :  { %v2635_v0 = vmul.f32 %v5553_v63, %v2629_v24 }
0x174c   :  { %v2645_v1 = vsel %vm1172_vm4, %v2635_v0, 0.0 }
0x174d   :  { %2646 = vadd.xlane.f32.xlu0 %v2645_v1 }
0x17a8   :  { %v2638_v3 = vpop.xlane.xlu0 %2637 }
0x17a9   :  { %v2651_v5 = vmul.f32 %v5557_v23, %v2638_v3 }
0x17ab   :  { %v2658_v6 = vadd.f32 %v5559_v2, %v2651_v5 }
0x17ad   :  { %v2662_v7 = vmul.f32 %v2658_v6, %v5460_v30 }
0x17af   :  { %v2666_v21 = vadd.f32 %v2662_v7, %v5460_v30 }
0x17b0   :  { %v2641_v8 = vpop.xlane.xlu1 %2640 }
0x17b1   :  { %v2652_v9 = vmul.f32 %v5557_v23, %v2641_v8  ;;  %3284 = vmatmul.msk.f32.vlgmr.msrb.gmra.mxu3 %vm904_vm2, %v2666_v21 }
0x17b3   :  { %v2659_v18 = vadd.f32 %v5559_v2, %v2652_v9 }
0x17b5   :  { %v2663_v11 = vmul.f32 %v2659_v18, %v5456_v48 }
0x17b7   :  { %v2667_v12 = vadd.f32 %v2663_v11, %v5456_v48 }
0x17b8   :  { %v2644_v13 = vpop.xlane.xlu2 %2643 }
0x17b9   :  { %v2653_v14 = vmul.f32 %v5557_v23, %v2644_v13  ;;  %3285 = vmatmul.msk.f32.gmra.mxu3 %vm904_vm2, %v2667_v12 }
0x17bb   :  { %v2660_v15 = vadd.f32 %v5559_v2, %v2653_v14 }
0x17bd   :  { %v2664_v30 = vmul.f32 %v2660_v15, %v5450_v46 }
0x17bf   :  { %v2668_v29 = vadd.f32 %v2664_v30, %v5450_v46 }
0x17c0   :  { %v2647_v22 = vpop.xlane.xlu0 %2646 }
0x17c1   :  { %v2654_v32 = vmul.f32 %v5557_v23, %v2647_v22  ;;  %3286 = vmatmul.msk.f32.gmra.mxu3 %vm904_vm2, %v2668_v29 }
0x17c3   :  { %v2661_v33 = vadd.f32 %v5559_v2, %v2654_v32 }
0x17c5   :  { %v2665_v48 = vmul.f32 %v2661_v33, %v5443_v47 }
0x17c7   :  { %v2669_v31 = vadd.f32 %v2665_v48, %v5443_v47 }
0x17c9   :  { %3287 = vmatmul.msk.f32.gmra.mxu3 %vm904_vm2, %v2669_v31 }
0x1834   :  { %v2699_v34 = vpop.f32.mrf.mxu3 }
0x1835   :  { %v2700_v47 = vadd.f32 %v5435_v35, %v2699_v34 }
0x1837   :  { %v2715_v27 = vmul.f32 0.01, %v2700_v47  ;;  %vm2711_vm10 = vcmp.ge.f32.partialorder %v2700_v47, 0.0 }
0x1839   :  { %v5597_v17 = vsel %vm2711_vm10, %v2700_v47, %v2715_v27  ;;  %v4675_v47 = vmov 0  }
0x183a   :  { %3427 = vset.pattern.permute.xlu0 %v4675_v47 }
0x183c   :  { %v2702_v36 = vpop.f32.mrf.mxu3 }
0x183d   :  { %v2703_v16 = vadd.f32 %v5435_v35, %v2702_v36 }
0x183f   :  { %v2716_v44 = vmul.f32 0.01, %v2703_v16  ;;  %vm2712_vm15 = vcmp.ge.f32.partialorder %v2703_v16, 0.0 }
0x1841   :  { %v5593_v26 = vsel %vm2712_vm15, %v2703_v16, %v2716_v44 }
0x1844   :  { %v2705_v56 = vpop.f32.mrf.mxu3 }
0x1845   :  { %v2706_v40 = vadd.f32 %v5435_v35, %v2705_v56 }
0x1847   :  { %v2717_v20 = vmul.f32 0.01, %v2706_v40  ;;  %vm2713_vm13 = vcmp.ge.f32.partialorder %v2706_v40, 0.0 }
0x1849   :  { %v5589_v45 = vsel %vm2713_vm13, %v2706_v40, %v2717_v20  ;;  %v2952_v20 = vld [vmem:[#allocation48] sm:$0x1] }
0x184a   :  { %3314 = vmatmul.msk.f32.vlgmr.msra.gmra.mxu3 %vm904_vm2, %v2952_v20 }
0x184c   :  { %v2708_v39 = vpop.f32.mrf.mxu3 }
0x184d   :  { %v2709_v46 = vadd.f32 %v5435_v35, %v2708_v39 }
0x184f   :  { %vm2714_vm0 = vcmp.ge.f32.partialorder %v2709_v46, 0.0  ;;  %v2718_v43 = vmul.f32 0.01, %v2709_v46 }
0x1851   :  { %v5584_v62 = vsel %vm2714_vm0, %v2709_v46, %v2718_v43 }
0x1852   :  { %3288 = vmatpush.xpose.msk.msra.mxu0 %vm904_vm2, %v5584_v62 }
0x1856   :  { %3289 = vmatpush.xpose.msk.msra.mxu0 %vm904_vm2, %v5589_v45 }
0x185a   :  { %3290 = vmatpush.xpose.msk.msra.mxu0 %vm904_vm2, %v5593_v26 }
0x185e   :  { %3291 = vmatpush.xpose.msk.msra.mxu0 %vm904_vm2, %v5597_v17 }
0x1861   :  { %3292 = vmatmul.msk.f32.vlgmr.msra.gmra.mxu0 %vm904_vm2, %v4673_v25 }
0x18de   :  { %v2752_v35 = vpop.f32.mrf.mxu0 }
0x18df   :  { %v2755_v51 = vperm.slane %v2752_v35, 0 }
0x18e1   :  { %v2757_v52 = vmul.f32 %v2755_v51, %v5472_v61  ;;  %v2756_v50 = vmul.f32 %v2755_v51, %v5470_v37 }
0x18e3   :  { %3294 = vmatmul.msk.f32.vlgmr.msra.gmra.mxu1 %vm943_vm6, %v2757_v52 }
0x18eb   :  { %3296 = vmatmul.msk.f32.vlgmr.msrb.gmra.mxu1 %vm943_vm6, %v2756_v50 }
0x1960   :  { %v2778_v54 = vpop.f32.mrf.mxu1 }
0x1968   :  { %v2801_v28 = vpop.f32.mrf.mxu1 }
0x1969   :  { %v2802_v55 = vadd.f32 %v2801_v28, %v2778_v54 }
0x196b   :  { %v2804_v59 = vadd.f32 %v5181_v41, %v2802_v55 }
0x196d   :  { %v2805_v60 = vsel %vm1004_vm9, %v2804_v59, 0.0 }
0x196e   :  { %2806 = vadd.xlane.f32.xlu1 %v2805_v60 }
0x19e1   :  { %v2807_v24 = vpop.xlane.xlu1 %2806 }
0x19e2   :  { %3478 = vrsqrt.f32 %v2807_v24  ;;  %vm2815_vm5 = vweird.f32 %v2807_v24  ;;  %vm2808_vm6 = vcmp.gt.f32.partialorder %v2807_v24, 0.0 }
0x19e8   :  { %v3479_v25 = vpop.eup %3478 }
0x19e9   :  { %v2810_v0 = vmul.f32 %v3479_v25, %v2807_v24  ;;  %vm2816_vm3 = vweird.f32 %v3479_v25 }
0x19ea   :  { %vm2817_vm8 = vmor %vm2815_vm5, %vm2816_vm3 }
0x19eb   :  { %v2811_v1 = vmul.f32 %v3479_v25, %v2810_v0 }
0x19ed   :  { %v2812_v61 = vmul.f32 0.5, %v2811_v1 }
0x19ef   :  { %v2813_v3 = vsub.f32 1.5, %v2812_v61 }
0x19f1   :  { %v2814_v5 = vmul.f32 %v3479_v25, %v2813_v3 }
0x19f3   :  { %v2818_v37 = vsel %vm2817_vm8, %v3479_v25, %v2814_v5 }
0x19f4   :  { %v2819_v6 = vsel %vm2808_vm6, %v2818_v37, 0.0 }
0x19f5   :  { %v2820_v7 = vmul.f32 %v2819_v6, %v5496_v58 }
0x19f7   :  { %2839 = vmatpush.msrb.mxu0 %v2820_v7 }
0x19f8   :  { %3297 = vmatmul.msk.f32.vlgmr.msrb.gmra.mxu0 %vm1004_vm9, %v2804_v59 }
0x1a75   :  { %v2841_v41 = vpop.f32.mrf.mxu0 }
0x1a76   :  { %v2844_v21 = vmul.f32 %v2841_v41, %v2819_v6 }
0x1a78   :  { %v2845_v8 = vadd.f32 %v5500_v19, %v2844_v21 }
0x1a7a   :  { %vm2846_vm12 = vcmp.ge.f32.partialorder %v2845_v8, 0.0  ;;  %v2847_v9 = vmul.f32 0.01, %v2845_v8 }
0x1a7c   :  { %v2848_v18 = vsel %vm2846_vm12, %v2845_v8, %v2847_v9 }
0x1a7d   :  { %3298 = vmatpush.xpose.msk.msra.mxu1 %vm904_vm2, %v2848_v18 }
0x1a80   :  { %3299 = vmatmul.msk.f32.vlgmr.msra.gmra.mxu1 %vm904_vm2, %v2848_v18 }
0x1afd   :  { %v2869_v11 = vpop.f32.mrf.mxu1 }
0x1afe   :  { %v3300_v12 = vmul.f32 -1.442695, %v2869_v11 }
0x1b00   :  { %3480 = vpow2.f32 %v3300_v12 }
0x1b06   :  { %v3481_v13 = vpop.eup %3480 }
0x1b07   :  { %v2875_v14 = vadd.f32 1.0, %v3481_v13 }
0x1b09   :  { %3482 = vrcp.f32 %v2875_v14  ;;  %v2887_v29 = vand.u32 2147483648, %v2875_v14  ;;  %v2885_v19 = vand.u32 2147483647, %v2875_v14  ;;  %vm2881_vm1 = vweird.f32 %v2875_v14 }
0x1b0b   :  { %v2888_v33 = vor.u32 1.1754944e-38, %v2887_v29  ;;  %vm2886_vm7 = vcmp.eq.f32.partialorder %v2885_v19, 8.507059e+37 }
0x1b0f   :  { %v3483_v58 = vpop.eup %3482 }
0x1b10   :  { %v2877_v15 = vmul.f32 %v3483_v58, %v2875_v14  ;;  %vm2882_vm14 = vweird.f32 %v3483_v58 }
0x1b11   :  { %vm2883_vm11 = vmor %vm2881_vm1, %vm2882_vm14 }
0x1b12   :  { %v2878_v30 = vsub.f32 1.0, %v2877_v15 }
0x1b14   :  { %v2879_v22 = vmul.f32 %v3483_v58, %v2878_v30 }
0x1b16   :  { %v2880_v32 = vadd.f32 %v3483_v58, %v2879_v22 }
0x1b18   :  { %v2884_v48 = vsel %vm2883_vm11, %v3483_v58, %v2880_v32 }
0x1b19   :  { %v2889_v31 = vsel %vm2886_vm7, %v2888_v33, %v2884_v48 }
0x1b1a   :  { %2906 = vmatpush.msra.mxu0 %v2889_v31 }
0x1b1b   :  { %3301 = vmatmul.msk.f32.vlgmr.msra.gmra.mxu0 %vm1004_vm9, %v5510_v49 }
0x1b23   :  { %3302 = vmatmul.msk.f32.gmra.mxu0 %vm1004_vm9, %v5519_v10 }
0x1b2b   :  { %3303 = vmatmul.msk.f32.gmra.mxu0 %vm1004_vm9, %v5528_v4 }
0x1b33   :  { %3304 = vmatmul.msk.f32.gmra.mxu0 %vm1004_vm9, %v5533_v38 }
0x1b98   :  { %v2908_v34 = vpop.f32.mrf.mxu0 }
0x1b99   :  { %v2920_v38 = vmul.f32 %v5538_v42, %v2908_v34 }
0x1b9b   :  { %v2924_v16 = vsel %vm1004_vm9, %v2920_v38, 0.0 }
0x1ba0   :  { %v2911_v36 = vpop.f32.mrf.mxu0 }
0x1ba1   :  { %v2921_v56 = vmul.f32 %v5543_v53, %v2911_v36  ;;  %v2953_v53 = vld [vmem:[#allocation50] sm:$0x1] }
0x1ba2   :  { %3309 = vmatmul.msk.f32.vlgmr.msra.gmra.mxu2 %vm904_vm2, %v2953_v53 }
0x1ba3   :  { %v2927_v39 = vsel %vm1004_vm9, %v2921_v56, 0.0 }
0x1ba4   :  { %2928 = vadd.xlane.f32.xlu1 %v2927_v39 }
0x1ba8   :  { %v2914_v40 = vpop.f32.mrf.mxu0 }
0x1ba9   :  { %v2922_v46 = vmul.f32 %v5548_v57, %v2914_v40  ;;  %v3061_v57 = vld [vmem:[#allocation2] sm:$0x1] }
0x1bab   :  { %v2930_v49 = vsel %vm1004_vm9, %v2922_v46, 0.0  ;;  %vm3069_vm9 = vcmask 221184  }
0x1bac   :  { %2931 = vadd.xlane.f32.xlu0 %v2930_v49 }
0x1bb0   :  { %v2917_v10 = vpop.f32.mrf.mxu0 }
0x1bb1   :  { %v2923_v43 = vmul.f32 %v5553_v63, %v2917_v10 }
0x1bb3   :  { %v2933_v4 = vsel %vm1172_vm4, %v2923_v43, 0.0 }
0x1bb4   :  { %2934 = vadd.xlane.f32.xlu2 %v2933_v4 }
0x1bbc   :  { %2925 = vadd.xlane.f32.xlu2 %v2924_v16 }
0x1bc0   :  { %3064 = vperm.xlu0 %3427, %v3061_v57  }
0x1c17   :  { %v2929_v27 = vpop.xlane.xlu1 %2928 }
0x1c18   :  { %v2937_v51 = vmul.f32 %v5557_v23, %v2929_v27 }
0x1c1a   :  { %v2941_v28 = vadd.f32 %v5559_v2, %v2937_v51 }
0x1c1c   :  { %v2945_v25 = vmul.f32 %v2941_v28, %v5593_v26 }
0x1c1e   :  { %v2949_v61 = vadd.f32 %v2945_v25, %v5593_v26 }
0x1c1f   :  { %v2932_v44 = vpop.xlane.xlu0 %2931 }
0x1c20   :  { %v2938_v63 = vmul.f32 %v5557_v23, %v2932_v44 }
0x1c22   :  { %v2942_v52 = vadd.f32 %v5559_v2, %v2938_v63 }
0x1c24   :  { %v2946_v55 = vmul.f32 %v2942_v52, %v5589_v45 }
0x1c25   :  { %v2986_v5 = vpop.f32.mrf.mxu2 }
0x1c26   :  { %v2950_v0 = vadd.f32 %v2946_v55, %v5589_v45  ;;  %v3021_v45 = vpop.f32.mrf.mxu3 }
0x1c27   :  { %v2935_v35 = vpop.xlane.xlu2 %2934 }
0x1c28   :  { %v2939_v42 = vmul.f32 %v5557_v23, %v2935_v35 }
0x1c2a   :  { %v2943_v50 = vadd.f32 %v5559_v2, %v2939_v42 }
0x1c2c   :  { %v2947_v54 = vmul.f32 %v2943_v50, %v5584_v62 }
0x1c2e   :  { %v2951_v59 = vadd.f32 %v2947_v54, %v5584_v62 }
0x1c2f   :  { %v2926_v60 = vpop.xlane.xlu2 %2925 }
0x1c30   :  { %v2936_v24 = vmul.f32 %v5557_v23, %v2926_v60  ;;  %3315 = vmatpush.xpose.msk.msrb.mxu1 %vm904_vm2, %v2951_v59  ;;  %v3024_v23 = vld [vmem:[#allocation51] sm:$0x1] }
0x1c32   :  { %v2940_v1 = vadd.f32 %v5559_v2, %v2936_v24  ;;  %v3065_v37 = vpop.permute.xlu0 %3064  ;;  %v3022_v2 = vadd.f32 %v3021_v45, %v2986_v5 }
0x1c33   :  { %v3067_v6 = vperm.slane %v3065_v37, 0 }
0x1c34   :  { %3316 = vmatpush.xpose.msk.msrb.mxu1 %vm904_vm2, %v2950_v0  ;;  %v2944_v3 = vmul.f32 %v2940_v1, %v5597_v17 }
0x1c36   :  { %v2948_v62 = vadd.f32 %v2944_v3, %v5597_v17 }
0x1c38   :  { %3317 = vmatpush.xpose.msk.msrb.mxu1 %vm904_vm2, %v2949_v61 }
0x1c3c   :  { %3318 = vmatpush.xpose.msk.msrb.mxu1 %vm904_vm2, %v2948_v62 }
0x1c3f   :  { %3319 = vmatmul.msk.f32.vlgmr.msrb.gmra.mxu1 %vm904_vm2, %v3024_v23 }
0x1cbc   :  { %v3057_v7 = vpop.f32.mrf.mxu1 }
0x1cbd   :  { %v3060_v26 = vadd.f32 %v3057_v7, %v3022_v2 }
0x1cbf   :  { %v3068_v41 = vadd.f32 %v3067_v6, %v3060_v26 }
0x1cc1   :  { %3070 = vst.msk [vmem:[#allocation68] sm:$0x1] %vm3069_vm9, %v3068_v41 }
0x1cc2   :  { %4523 = shalt.err (!%p4520_p4)
}
0x1cc3   :  { %3081 = dma.vmem_to_hbm [thread:$0]  %s3077_s25, 16, %s3079_s3, [#allocation5]  }
0x1cc4   :  { %4568 = dma.done.wait [#allocation5], 16  }
0x1cc5   :  { %4569 = vsyncadd [#allocation5], 4294967280 }
0x1cc6   :  { %3086 = vsyncpa [#allocation4], 1 }
0x1cc7   :  { %3087 = vsyncpa [#allocation7], 1 }
0x1cc8   :  { %3088 = vsyncpa [#allocation10], 1 }
0x1cc9   :  { %3089 = vsyncpa [#allocation13], 1 }
0x1cca   :  { %3090 = vsyncpa [#allocation16], 1 }
0x1ccb   :  { %3091 = vsyncpa [#allocation19], 1 }
0x1ccc   :  { %3092 = vsyncpa [#allocation22], 1 }
0x1ccd   :  { %3093 = vsyncpa [#allocation25], 1 }
0x1cce   :  { %3094 = vsyncpa [#allocation28], 1 }
0x1ccf   :  { %3095 = vsyncpa [#allocation31], 1 }
0x1cd0   :  { %3096 = vsyncpa [#allocation34], 1 }
0x1cd1   :  { %3097 = vsyncpa [#allocation37], 1 }
0x1cd2   :  { %3098 = vsyncpa [#allocation40], 1 }
0x1cd3   :  { %3099 = vsyncpa [#allocation43], 1 }
0x1cd4   :  { %3100 = vsyncpa [#allocation46], 1 }
0x1cd5   :  { %3101 = vsyncpa [#allocation49], 1 }
0x1cd6   :  { %3102 = vsyncpa [#allocation52], 1 }
0x1cd7   :  { %3103 = vsyncpa [#allocation55], 1 }
0x1cd8   :  { %3104 = vsyncpa [#allocation58], 1 }
0x1cd9   :  { %3105 = vsyncpa [#allocation61], 1 }
0x1cda   :  { %3106 = vsyncpa [#allocation64], 1 }
0x1cdb   :  { %3107 = vsyncpa [#allocation67], 1 }
0x1cdc   :  { %3108 = vsyncpa [#allocation5], 1 }

</bundles_post_ra>
